<compile_context>
chip_gen: v6e
topology: v6e:2x2x1
jax: 0.10.0
libtpu: 0.0.40
codegen_flags: <defaults>
</compile_context>

<pallas_src>
import functools

import jax
import jax.numpy as jnp
import numpy as np
from jax.experimental import pallas as pl
from jax.experimental.pallas import tpu as pltpu


# ----------------------------------------------------------------------------
# Pallas kernel: tiled matmul (bf16 MXU, f32 accumulate) + shift (+ ReLU)
# ----------------------------------------------------------------------------
def _fused_matmul_kernel(x_ref, w_ref, shift_ref, o_ref, acc_ref, *, apply_relu):
    @pl.when(pl.program_id(2) == 0)
    def _init():
        acc_ref[...] = jnp.zeros_like(acc_ref)

    acc_ref[...] += jnp.dot(
        x_ref[...], w_ref[...], preferred_element_type=jnp.float32
    )

    @pl.when(pl.program_id(2) == pl.num_programs(2) - 1)
    def _finalize():
        y = acc_ref[...] + shift_ref[...]          # f32 epilogue (v5e-safe)
        if apply_relu:
            y = jnp.maximum(y, 0.0)
        o_ref[...] = y.astype(o_ref.dtype)


def _round_up(x, m):
    return (x + m - 1) // m * m


def _pick_k_tiling(K):
    Kp = _round_up(K, 128)
    if Kp >= 512:
        return 512, _round_up(K, 512)
    return Kp, Kp


def _pick_n_tiling(N):
    if N >= 128:
        Np = _round_up(N, 256)       # fill the 256x256 MXU on v6e/v7x
        return min(256, Np), Np
    return 128, 128                  # lane-dense minimum


def pack_matmul(wmat_f32, shift, relu):
    """Pre-pack a (K, N) f32 weight once: pad to tile multiples, cast to bf16."""
    K, N = wmat_f32.shape
    TK, Kp = _pick_k_tiling(K)
    TN, Np = _pick_n_tiling(N)
    wp = jnp.pad(wmat_f32, ((0, Kp - K), (0, Np - N))).astype(jnp.bfloat16)
    sp = jnp.pad(shift.astype(jnp.float32), (0, Np - N)).reshape(1, Np)
    return {"w": wp, "shift": sp, "relu": relu,
            "k": K, "n": N, "tk": TK, "tn": TN}


def fused_matmul_prepacked(x, p):
    """out[m, n] = relu?( sum_k x[m, k] * w_packed[k, n] + shift[n] ), f32."""
    w, shift = p["w"], p["shift"]
    K, N, TK, TN = p["k"], p["n"], p["tk"], p["tn"]
    Kp, Np = w.shape
    M = x.shape[0]
    assert x.shape[1] == K

    TM = min(256, _round_up(M, 8))
    Mp = _round_up(M, TM)
    xp = jnp.pad(x.astype(jnp.bfloat16), ((0, Mp - M), (0, Kp - K)))

    grid = (Mp // TM, Np // TN, Kp // TK)
    out = pl.pallas_call(
        functools.partial(_fused_matmul_kernel, apply_relu=p["relu"]),
        out_shape=jax.ShapeDtypeStruct((Mp, Np), jnp.float32),
        grid=grid,
        in_specs=[
            pl.BlockSpec((TM, TK), lambda i, j, k: (i, k)),
            pl.BlockSpec((TK, TN), lambda i, j, k: (k, j)),
            pl.BlockSpec((1, TN), lambda i, j, k: (0, j)),
        ],
        out_specs=pl.BlockSpec((TM, TN), lambda i, j, k: (i, j)),
        scratch_shapes=[pltpu.VMEM((TM, TN), jnp.float32)],
        compiler_params=pltpu.CompilerParams(
            dimension_semantics=("parallel", "parallel", "arbitrary"),
            vmem_limit_bytes=32 * 1024 * 1024,
        ),
        cost_estimate=pl.CostEstimate(
            flops=2 * Mp * Np * Kp,
            transcendentals=0,
            bytes_accessed=Mp * Kp * 2 + Kp * Np * 2 + Np * 4 + Mp * Np * 4,
        ),
    )(xp, w, shift)
    return out[:M, :N]


# ----------------------------------------------------------------------------
# Conv2d (+ folded BN + ReLU) via bf16 im2col + Pallas matmul
# ----------------------------------------------------------------------------
def pack_conv(conv_p, bn_p, relu, stride, padding):
    w = conv_p["w"]          # (Cout, Cin, KH, KW), PyTorch layout
    b = conv_p["b"]
    Cout, Cin, KH, KW = w.shape
    if bn_p is None:
        scale = jnp.ones((Cout,), jnp.float32)
        shift = b.astype(jnp.float32)
    else:
        s = bn_p["gamma"] * jax.lax.rsqrt(bn_p["var"] + 1e-5)
        scale = s
        shift = (b - bn_p["mean"]) * s + bn_p["beta"]
    # fold BN scale into the weight; (K, Cout) matches im2col column order
    wmat = w.reshape(Cout, Cin * KH * KW).T.astype(jnp.float32) * scale[None, :]
    pk = pack_matmul(wmat, shift, relu)
    pk.update(cin=Cin, khw=(KH, KW), cout=Cout, stride=stride, padding=padding)
    return pk


def conv2d_prepacked(x, p):
    """x: (N, H, W, Cin) NHWC f32 -> (N, Ho, Wo, Cout) f32."""
    KH, KW = p["khw"]
    Cin, Cout = p["cin"], p["cout"]
    stride, padding = p["stride"], p["padding"]
    N, H, W_, C = x.shape
    assert C == Cin
    Ho = (H + 2 * padding - KH) // stride + 1
    Wo = (W_ + 2 * padding - KW) // stride + 1

    xb = x.astype(jnp.bfloat16)          # halves im2col / kernel-input DMA
    if KH == 1 and KW == 1 and padding == 0:
        xcol = xb[:, ::stride, ::stride, :].reshape(N * Ho * Wo, Cin)
    else:
        # TODO(synk): fold the (kh, kw) window reduction into the Pallas grid
        # instead of materializing the KH*KW-expanded im2col tensor in HBM.
        xp = jnp.pad(xb, ((0, 0), (padding, padding), (padding, padding), (0, 0)))
        cols = []
        for kh in range(KH):
            for kw in range(KW):
                cols.append(
                    xp[:, kh:kh + stride * Ho:stride, kw:kw + stride * Wo:stride, :]
                )
        patches = jnp.stack(cols, axis=-1)          # (N,Ho,Wo,Cin,KH*KW)
        xcol = patches.reshape(N * Ho * Wo, Cin * KH * KW)

    y = fused_matmul_prepacked(xcol, p)
    return y.reshape(N, Ho, Wo, Cout)


def maxpool_3x3_s2_p1(x):
    # glue: 3x3 / stride-2 / pad-1 max pool (matches nn.MaxPool2d(3, 2, 1))
    N, H, W, C = x.shape
    Ho = (H + 2 - 3) // 2 + 1
    Wo = (W + 2 - 3) // 2 + 1
    xp = jnp.pad(x, ((0, 0), (1, 1), (1, 1), (0, 0)), constant_values=-jnp.inf)
    out = None
    for kh in range(3):
        for kw in range(3):
            sl = xp[:, kh:kh + 2 * Ho:2, kw:kw + 2 * Wo:2, :]
            out = sl if out is None else jnp.maximum(out, sl)
    return out


# ----------------------------------------------------------------------------
# Deterministic parameter initialization (mirrors the PyTorch module shapes)
# ----------------------------------------------------------------------------
class KeyGen:
    def __init__(self, key):
        self.key = key
        self.i = 0

    def __call__(self):
        self.i += 1
        return jax.random.fold_in(self.key, self.i)


def init_conv(key, cin, cout, k):
    k1, k2 = jax.random.split(key)
    fan_in = cin * k * k
    bound = 1.0 / np.sqrt(fan_in)
    w = jax.random.uniform(k1, (cout, cin, k, k), jnp.float32, -bound, bound)
    b = jax.random.uniform(k2, (cout,), jnp.float32, -bound, bound)
    return {"w": w, "b": b}


def init_bn(key, c):
    k1, k2, k3, k4 = jax.random.split(key, 4)
    return {
        "gamma": 1.0 + 0.1 * jax.random.normal(k1, (c,), jnp.float32),
        "beta": 0.1 * jax.random.normal(k2, (c,), jnp.float32),
        "mean": 0.1 * jax.random.normal(k3, (c,), jnp.float32),
        "var": 1.0 + 0.1 * jnp.abs(jax.random.normal(k4, (c,), jnp.float32)),
    }


def init_bottleneck(kg, in_dim, mid_dim, out_dim, down):
    p = {"down": down}
    p["cb1_conv"] = init_conv(kg(), in_dim, mid_dim, 1)
    p["cb1_bn"] = init_bn(kg(), mid_dim)
    p["cb2_conv"] = init_conv(kg(), mid_dim, mid_dim, 3)
    p["cb2_bn"] = init_bn(kg(), mid_dim)
    p["cb3_conv"] = init_conv(kg(), mid_dim, out_dim, 1)
    p["cb3_bn"] = init_bn(kg(), out_dim)
    if down:
        p["downsample"] = init_conv(kg(), in_dim, out_dim, 1)
    p["dim_equalizer"] = init_conv(kg(), in_dim, out_dim, 1)
    return p


def init_resnet(key, base_dim, num_classes=10):
    kg = KeyGen(key)
    b = base_dim
    params = {"stem_conv": init_conv(kg(), 3, b, 7)}
    params["layer_2"] = [
        init_bottleneck(kg, b, b, b * 4, False),
        init_bottleneck(kg, b * 4, b, b * 4, False),
        init_bottleneck(kg, b * 4, b, b * 4, True),
    ]
    params["layer_3"] = [
        init_bottleneck(kg, b * 4, b * 2, b * 8, False),
        init_bottleneck(kg, b * 8, b * 2, b * 8, False),
        init_bottleneck(kg, b * 8, b * 2, b * 8, False),
        init_bottleneck(kg, b * 8, b * 2, b * 8, True),
    ]
    params["layer_4"] = [
        init_bottleneck(kg, b * 8, b * 4, b * 16, False),
        init_bottleneck(kg, b * 16, b * 4, b * 16, False),
        init_bottleneck(kg, b * 16, b * 4, b * 16, False),
        init_bottleneck(kg, b * 16, b * 4, b * 16, False),
        init_bottleneck(kg, b * 16, b * 4, b * 16, False),
        init_bottleneck(kg, b * 16, b * 4, b * 16, True),
    ]
    params["layer_5"] = [
        init_bottleneck(kg, b * 16, b * 8, b * 32, False),
        init_bottleneck(kg, b * 32, b * 8, b * 32, False),
        init_bottleneck(kg, b * 32, b * 8, b * 32, False),
    ]
    kfc = kg()
    fan_in = b * 32
    bound = 1.0 / np.sqrt(fan_in)
    k1, k2 = jax.random.split(kfc)
    params["fc_w"] = jax.random.uniform(k1, (num_classes, b * 32), jnp.float32, -bound, bound)
    params["fc_b"] = jax.random.uniform(k2, (num_classes,), jnp.float32, -bound, bound)
    return params


# ----------------------------------------------------------------------------
# One-time weight packing (BN fold + reshape + pad + bf16 cast, done ONCE)
# ----------------------------------------------------------------------------
def prepare_packed(params):
    def pack_bottleneck(p):
        q = {"down": p["down"]}
        s1 = 2 if p["down"] else 1
        q["cb1"] = pack_conv(p["cb1_conv"], p["cb1_bn"], True, s1, 0)
        q["cb2"] = pack_conv(p["cb2_conv"], p["cb2_bn"], True, 1, 1)
        q["cb3"] = pack_conv(p["cb3_conv"], p["cb3_bn"], True, 1, 0)
        if p["down"]:
            # reference module's downsample is a bare Conv2d (no BN), keep it so
            q["downsample"] = pack_conv(p["downsample"], None, False, 2, 0)
        q["dim_equalizer"] = pack_conv(p["dim_equalizer"], None, False, 1, 0)
        return q

    packed = {"stem": pack_conv(params["stem_conv"], None, True, 2, 3)}
    for name in ("layer_2", "layer_3", "layer_4", "layer_5"):
        packed[name] = [pack_bottleneck(p) for p in params[name]]
    packed["fc"] = pack_matmul(
        params["fc_w"].T.astype(jnp.float32), params["fc_b"], relu=False
    )
    return packed


# ----------------------------------------------------------------------------
# Forward pass
# ----------------------------------------------------------------------------
def bottleneck_forward(q, x):
    if q["down"]:
        ds = conv2d_prepacked(x, q["downsample"])
        out = conv2d_prepacked(x, q["cb1"])
        out = conv2d_prepacked(out, q["cb2"])
        out = conv2d_prepacked(out, q["cb3"])
        return out + ds
    out = conv2d_prepacked(x, q["cb1"])
    out = conv2d_prepacked(out, q["cb2"])
    out = conv2d_prepacked(out, q["cb3"])
    if x.shape != out.shape:
        x = conv2d_prepacked(x, q["dim_equalizer"])
    return out + x


def resnet_forward(packed, x_nchw):
    # boundary: accept PyTorch-style NCHW, run NHWC internally
    x = jnp.transpose(x_nchw, (0, 2, 3, 1)).astype(jnp.float32)

    # layer_1: Conv2d(3, base, 7, 2, 3) -> ReLU -> MaxPool2d(3, 2, 1)
    x = conv2d_prepacked(x, packed["stem"])
    x = maxpool_3x3_s2_p1(x)

    for name in ("layer_2", "layer_3", "layer_4", "layer_5"):
        for blk in packed[name]:
            x = bottleneck_forward(blk, x)

    # AvgPool2d(1, 1) is identity; flatten in PyTorch NCHW order, then FC.
    N = x.shape[0]
    feat = jnp.transpose(x, (0, 3, 1, 2)).reshape(N, -1)
    return fused_matmul_prepacked(feat, packed["fc"])


# ----------------------------------------------------------------------------
if __name__ == "__main__":
    key = jax.random.PRNGKey(0)
    base_dim = 4
    num_classes = 10

    params = init_resnet(jax.random.fold_in(key, 1), base_dim, num_classes)
    packed = prepare_packed(params)   # BN fold / pad / bf16 cast once

    # 32x32 input so spatial reduces to 1x1 before the FC layer
    # (32 -> 16 conv -> 8 pool -> 4 -> 2 -> 1 through the down-bottlenecks).
    x = jax.random.normal(jax.random.fold_in(key, 2), (2, 3, 32, 32), jnp.float32)

    fwd = jax.jit(lambda inp: resnet_forward(packed, inp))
    out = fwd(x)
    out = jax.block_until_ready(out)

    assert out.shape == (2, num_classes), out.shape
    assert bool(jnp.all(jnp.isfinite(out)))
    print("KERNEL_OK")
</pallas_src>

<mosaic_0001>
module attributes {stable_mosaic.version = 11 : i64} {
  func.func @_fused_matmul_kernel(%arg0: i32, %arg1: i32, %arg2: i32, %arg3: memref<256x256xbf16, #tpu.memory_space<vmem>>, %arg4: memref<256x128xbf16, #tpu.memory_space<vmem>>, %arg5: memref<1x128xf32, #tpu.memory_space<vmem>>, %arg6: memref<256x128xf32, #tpu.memory_space<vmem>>, %arg7: memref<256x128xf32, #tpu.memory_space<vmem>>) attributes {dimension_semantics = [#tpu.dimension_semantics<parallel>, #tpu.dimension_semantics<parallel>, #tpu.dimension_semantics<arbitrary>], iteration_bounds = array<i64: 2, 1, 1>, scalar_prefetch = 0 : i64, scratch_operands = 1 : i64, tpu.core_type = #tpu.core_type<tc>, window_params = [{transform_indices = @transform_0, window_bounds = array<i64: 256, 256>}, {transform_indices = @transform_1, window_bounds = array<i64: 256, 128>}, {transform_indices = @transform_2, window_bounds = array<i64: 1, 128>}, {transform_indices = @transform_3, window_bounds = array<i64: 256, 128>}]} {
    %c0_i32 = arith.constant 0 : i32
    %0 = arith.cmpi eq, %arg2, %c0_i32 : i32
    %1 = arith.extui %0 : i1 to i32
    %c0_i32_0 = arith.constant 0 : i32
    %2 = arith.cmpi ne, %1, %c0_i32_0 : i32
    scf.if %2 {
      %cst_10 = arith.constant 0.000000e+00 : f32
      %12 = vector.broadcast %cst_10 : f32 to vector<256x128xf32>
      %c0_11 = arith.constant 0 : index
      %c0_12 = arith.constant 0 : index
      %13 = vector.load %arg7[%c0_11, %c0_12] : memref<256x128xf32, #tpu.memory_space<vmem>>, vector<256x128xf32>
      tpu.vector_store %arg7[%c0_11, %c0_12], %12 {strides = array<i32>} : memref<256x128xf32, #tpu.memory_space<vmem>>, vector<256x128xf32>,
    } else {
    }
    %c0 = arith.constant 0 : index
    %c0_1 = arith.constant 0 : index
    %3 = vector.load %arg7[%c0, %c0_1] : memref<256x128xf32, #tpu.memory_space<vmem>>, vector<256x128xf32>
    %c0_2 = arith.constant 0 : index
    %c0_3 = arith.constant 0 : index
    %4 = vector.load %arg3[%c0_2, %c0_3] : memref<256x256xbf16, #tpu.memory_space<vmem>>, vector<256x256xbf16>
    %c0_4 = arith.constant 0 : index
    %c0_5 = arith.constant 0 : index
    %5 = vector.load %arg4[%c0_4, %c0_5] : memref<256x128xbf16, #tpu.memory_space<vmem>>, vector<256x128xbf16>
    %cst = arith.constant dense<0.000000e+00> : vector<256x128xf32>
    %6 = tpu.matmul %4, %5, %cst {dimension_numbers = #tpu.dot_dimension_numbers<[1], [0], [0], [1], [0, 0, 1, 1], [], []>} : vector<256x256xbf16>, vector<256x128xbf16>, vector<256x128xf32> -> vector<256x128xf32>
    %7 = arith.addf %3, %6 : vector<256x128xf32>
    %c0_6 = arith.constant 0 : index
    %c0_7 = arith.constant 0 : index
    %8 = vector.load %arg7[%c0_6, %c0_7] : memref<256x128xf32, #tpu.memory_space<vmem>>, vector<256x128xf32>
    tpu.vector_store %arg7[%c0_6, %c0_7], %7 {strides = array<i32>} : memref<256x128xf32, #tpu.memory_space<vmem>>, vector<256x128xf32>,
    %c0_i32_8 = arith.constant 0 : i32
    %9 = arith.cmpi eq, %arg2, %c0_i32_8 : i32
    %10 = arith.extui %9 : i1 to i32
    %c0_i32_9 = arith.constant 0 : i32
    %11 = arith.cmpi ne, %10, %c0_i32_9 : i32
    scf.if %11 {
      %c0_10 = arith.constant 0 : index
      %c0_11 = arith.constant 0 : index
      %12 = vector.load %arg7[%c0_10, %c0_11] : memref<256x128xf32, #tpu.memory_space<vmem>>, vector<256x128xf32>
      %c0_12 = arith.constant 0 : index
      %c0_13 = arith.constant 0 : index
      %13 = vector.load %arg5[%c0_12, %c0_13] : memref<1x128xf32, #tpu.memory_space<vmem>>, vector<1x128xf32>
      %14 = vector.broadcast %13 : vector<1x128xf32> to vector<256x128xf32>
      %15 = arith.addf %12, %14 : vector<256x128xf32>
      %cst_14 = arith.constant 0.000000e+00 : f32
      %16 = vector.broadcast %cst_14 : f32 to vector<256x128xf32>
      %17 = arith.maximumf %15, %16 : vector<256x128xf32>
      %c0_15 = arith.constant 0 : index
      %c0_16 = arith.constant 0 : index
      %18 = vector.load %arg6[%c0_15, %c0_16] : memref<256x128xf32, #tpu.memory_space<vmem>>, vector<256x128xf32>
      tpu.vector_store %arg6[%c0_15, %c0_16], %17 {strides = array<i32>} : memref<256x128xf32, #tpu.memory_space<vmem>>, vector<256x128xf32>,
    } else {
    }
    return
  }
  func.func @transform_0(%arg0: i32, %arg1: i32, %arg2: i32) -> (i32, i32) {
    %c0_i32 = arith.constant 0 : i32
    return %arg0, %arg2 : i32, i32
  }
  func.func @transform_1(%arg0: i32, %arg1: i32, %arg2: i32) -> (i32, i32) {
    %c0_i32 = arith.constant 0 : i32
    return %arg2, %arg1 : i32, i32
  }
  func.func @transform_2(%arg0: i32, %arg1: i32, %arg2: i32) -> (i32, i32) {
    %c0_i32 = arith.constant 0 : i32
    %c0_i32_0 = arith.constant 0 : i32
    return %c0_i32, %arg1 : i32, i32
  }
  func.func @transform_3(%arg0: i32, %arg1: i32, %arg2: i32) -> (i32, i32) {
    %c0_i32 = arith.constant 0 : i32
    return %arg0, %arg1 : i32, i32
  }
}

module attributes {stable_mosaic.version = 11 : i64} {
  func.func @_fused_matmul_kernel(%arg0: i32, %arg1: i32, %arg2: i32, %arg3: memref<128x128xbf16, #tpu.memory_space<vmem>>, %arg4: memref<128x128xbf16, #tpu.memory_space<vmem>>, %arg5: memref<1x128xf32, #tpu.memory_space<vmem>>, %arg6: memref<128x128xf32, #tpu.memory_space<vmem>>, %arg7: memref<128x128xf32, #tpu.memory_space<vmem>>) attributes {dimension_semantics = [#tpu.dimension_semantics<parallel>, #tpu.dimension_semantics<parallel>, #tpu.dimension_semantics<arbitrary>], iteration_bounds = array<i64: 1, 1, 1>, scalar_prefetch = 0 : i64, scratch_operands = 1 : i64, tpu.core_type = #tpu.core_type<tc>, window_params = [{transform_indices = @transform_0, window_bounds = array<i64: 128, 128>}, {transform_indices = @transform_1, window_bounds = array<i64: 128, 128>}, {transform_indices = @transform_2, window_bounds = array<i64: 1, 128>}, {transform_indices = @transform_3, window_bounds = array<i64: 128, 128>}]} {
    %c0_i32 = arith.constant 0 : i32
    %0 = arith.cmpi eq, %arg2, %c0_i32 : i32
    %1 = arith.extui %0 : i1 to i32
    %c0_i32_0 = arith.constant 0 : i32
    %2 = arith.cmpi ne, %1, %c0_i32_0 : i32
    scf.if %2 {
      %cst_10 = arith.constant 0.000000e+00 : f32
      %12 = vector.broadcast %cst_10 : f32 to vector<128x128xf32>
      %c0_11 = arith.constant 0 : index
      %c0_12 = arith.constant 0 : index
      %13 = vector.load %arg7[%c0_11, %c0_12] : memref<128x128xf32, #tpu.memory_space<vmem>>, vector<128x128xf32>
      tpu.vector_store %arg7[%c0_11, %c0_12], %12 {strides = array<i32>} : memref<128x128xf32, #tpu.memory_space<vmem>>, vector<128x128xf32>,
    } else {
    }
    %c0 = arith.constant 0 : index
    %c0_1 = arith.constant 0 : index
    %3 = vector.load %arg7[%c0, %c0_1] : memref<128x128xf32, #tpu.memory_space<vmem>>, vector<128x128xf32>
    %c0_2 = arith.constant 0 : index
    %c0_3 = arith.constant 0 : index
    %4 = vector.load %arg3[%c0_2, %c0_3] : memref<128x128xbf16, #tpu.memory_space<vmem>>, vector<128x128xbf16>
    %c0_4 = arith.constant 0 : index
    %c0_5 = arith.constant 0 : index
    %5 = vector.load %arg4[%c0_4, %c0_5] : memref<128x128xbf16, #tpu.memory_space<vmem>>, vector<128x128xbf16>
    %cst = arith.constant dense<0.000000e+00> : vector<128x128xf32>
    %6 = tpu.matmul %4, %5, %cst {dimension_numbers = #tpu.dot_dimension_numbers<[1], [0], [0], [1], [0, 0, 1, 1], [], []>} : vector<128x128xbf16>, vector<128x128xbf16>, vector<128x128xf32> -> vector<128x128xf32>
    %7 = arith.addf %3, %6 : vector<128x128xf32>
    %c0_6 = arith.constant 0 : index
    %c0_7 = arith.constant 0 : index
    %8 = vector.load %arg7[%c0_6, %c0_7] : memref<128x128xf32, #tpu.memory_space<vmem>>, vector<128x128xf32>
    tpu.vector_store %arg7[%c0_6, %c0_7], %7 {strides = array<i32>} : memref<128x128xf32, #tpu.memory_space<vmem>>, vector<128x128xf32>,
    %c0_i32_8 = arith.constant 0 : i32
    %9 = arith.cmpi eq, %arg2, %c0_i32_8 : i32
    %10 = arith.extui %9 : i1 to i32
    %c0_i32_9 = arith.constant 0 : i32
    %11 = arith.cmpi ne, %10, %c0_i32_9 : i32
    scf.if %11 {
      %c0_10 = arith.constant 0 : index
      %c0_11 = arith.constant 0 : index
      %12 = vector.load %arg7[%c0_10, %c0_11] : memref<128x128xf32, #tpu.memory_space<vmem>>, vector<128x128xf32>
      %c0_12 = arith.constant 0 : index
      %c0_13 = arith.constant 0 : index
      %13 = vector.load %arg5[%c0_12, %c0_13] : memref<1x128xf32, #tpu.memory_space<vmem>>, vector<1x128xf32>
      %14 = vector.broadcast %13 : vector<1x128xf32> to vector<128x128xf32>
      %15 = arith.addf %12, %14 : vector<128x128xf32>
      %cst_14 = arith.constant 0.000000e+00 : f32
      %16 = vector.broadcast %cst_14 : f32 to vector<128x128xf32>
      %17 = arith.maximumf %15, %16 : vector<128x128xf32>
      %c0_15 = arith.constant 0 : index
      %c0_16 = arith.constant 0 : index
      %18 = vector.load %arg6[%c0_15, %c0_16] : memref<128x128xf32, #tpu.memory_space<vmem>>, vector<128x128xf32>
      tpu.vector_store %arg6[%c0_15, %c0_16], %17 {strides = array<i32>} : memref<128x128xf32, #tpu.memory_space<vmem>>, vector<128x128xf32>,
    } else {
    }
    return
  }
  func.func @transform_0(%arg0: i32, %arg1: i32, %arg2: i32) -> (i32, i32) {
    %c0_i32 = arith.constant 0 : i32
    return %arg0, %arg2 : i32, i32
  }
  func.func @transform_1(%arg0: i32, %arg1: i32, %arg2: i32) -> (i32, i32) {
    %c0_i32 = arith.constant 0 : i32
    return %arg2, %arg1 : i32, i32
  }
  func.func @transform_2(%arg0: i32, %arg1: i32, %arg2: i32) -> (i32, i32) {
    %c0_i32 = arith.constant 0 : i32
    %c0_i32_0 = arith.constant 0 : i32
    return %c0_i32, %arg1 : i32, i32
  }
  func.func @transform_3(%arg0: i32, %arg1: i32, %arg2: i32) -> (i32, i32) {
    %c0_i32 = arith.constant 0 : i32
    return %arg0, %arg1 : i32, i32
  }
}

module attributes {stable_mosaic.version = 11 : i64} {
  func.func @_fused_matmul_kernel(%arg0: i32, %arg1: i32, %arg2: i32, %arg3: memref<128x128xbf16, #tpu.memory_space<vmem>>, %arg4: memref<128x128xbf16, #tpu.memory_space<vmem>>, %arg5: memref<1x128xf32, #tpu.memory_space<vmem>>, %arg6: memref<128x128xf32, #tpu.memory_space<vmem>>, %arg7: memref<128x128xf32, #tpu.memory_space<vmem>>) attributes {dimension_semantics = [#tpu.dimension_semantics<parallel>, #tpu.dimension_semantics<parallel>, #tpu.dimension_semantics<arbitrary>], iteration_bounds = array<i64: 1, 1, 1>, scalar_prefetch = 0 : i64, scratch_operands = 1 : i64, tpu.core_type = #tpu.core_type<tc>, window_params = [{transform_indices = @transform_0, window_bounds = array<i64: 128, 128>}, {transform_indices = @transform_1, window_bounds = array<i64: 128, 128>}, {transform_indices = @transform_2, window_bounds = array<i64: 1, 128>}, {transform_indices = @transform_3, window_bounds = array<i64: 128, 128>}]} {
    %c0_i32 = arith.constant 0 : i32
    %0 = arith.cmpi eq, %arg2, %c0_i32 : i32
    %1 = arith.extui %0 : i1 to i32
    %c0_i32_0 = arith.constant 0 : i32
    %2 = arith.cmpi ne, %1, %c0_i32_0 : i32
    scf.if %2 {
      %cst_10 = arith.constant 0.000000e+00 : f32
      %12 = vector.broadcast %cst_10 : f32 to vector<128x128xf32>
      %c0_11 = arith.constant 0 : index
      %c0_12 = arith.constant 0 : index
      %13 = vector.load %arg7[%c0_11, %c0_12] : memref<128x128xf32, #tpu.memory_space<vmem>>, vector<128x128xf32>
      tpu.vector_store %arg7[%c0_11, %c0_12], %12 {strides = array<i32>} : memref<128x128xf32, #tpu.memory_space<vmem>>, vector<128x128xf32>,
    } else {
    }
    %c0 = arith.constant 0 : index
    %c0_1 = arith.constant 0 : index
    %3 = vector.load %arg7[%c0, %c0_1] : memref<128x128xf32, #tpu.memory_space<vmem>>, vector<128x128xf32>
    %c0_2 = arith.constant 0 : index
    %c0_3 = arith.constant 0 : index
    %4 = vector.load %arg3[%c0_2, %c0_3] : memref<128x128xbf16, #tpu.memory_space<vmem>>, vector<128x128xbf16>
    %c0_4 = arith.constant 0 : index
    %c0_5 = arith.constant 0 : index
    %5 = vector.load %arg4[%c0_4, %c0_5] : memref<128x128xbf16, #tpu.memory_space<vmem>>, vector<128x128xbf16>
    %cst = arith.constant dense<0.000000e+00> : vector<128x128xf32>
    %6 = tpu.matmul %4, %5, %cst {dimension_numbers = #tpu.dot_dimension_numbers<[1], [0], [0], [1], [0, 0, 1, 1], [], []>} : vector<128x128xbf16>, vector<128x128xbf16>, vector<128x128xf32> -> vector<128x128xf32>
    %7 = arith.addf %3, %6 : vector<128x128xf32>
    %c0_6 = arith.constant 0 : index
    %c0_7 = arith.constant 0 : index
    %8 = vector.load %arg7[%c0_6, %c0_7] : memref<128x128xf32, #tpu.memory_space<vmem>>, vector<128x128xf32>
    tpu.vector_store %arg7[%c0_6, %c0_7], %7 {strides = array<i32>} : memref<128x128xf32, #tpu.memory_space<vmem>>, vector<128x128xf32>,
    %c0_i32_8 = arith.constant 0 : i32
    %9 = arith.cmpi eq, %arg2, %c0_i32_8 : i32
    %10 = arith.extui %9 : i1 to i32
    %c0_i32_9 = arith.constant 0 : i32
    %11 = arith.cmpi ne, %10, %c0_i32_9 : i32
    scf.if %11 {
      %c0_10 = arith.constant 0 : index
      %c0_11 = arith.constant 0 : index
      %12 = vector.load %arg7[%c0_10, %c0_11] : memref<128x128xf32, #tpu.memory_space<vmem>>, vector<128x128xf32>
      %c0_12 = arith.constant 0 : index
      %c0_13 = arith.constant 0 : index
      %13 = vector.load %arg5[%c0_12, %c0_13] : memref<1x128xf32, #tpu.memory_space<vmem>>, vector<1x128xf32>
      %14 = vector.broadcast %13 : vector<1x128xf32> to vector<128x128xf32>
      %15 = arith.addf %12, %14 : vector<128x128xf32>
      %c0_14 = arith.constant 0 : index
      %c0_15 = arith.constant 0 : index
      %16 = vector.load %arg6[%c0_14, %c0_15] : memref<128x128xf32, #tpu.memory_space<vmem>>, vector<128x128xf32>
      tpu.vector_store %arg6[%c0_14, %c0_15], %15 {strides = array<i32>} : memref<128x128xf32, #tpu.memory_space<vmem>>, vector<128x128xf32>,
    } else {
    }
    return
  }
  func.func @transform_0(%arg0: i32, %arg1: i32, %arg2: i32) -> (i32, i32) {
    %c0_i32 = arith.constant 0 : i32
    return %arg0, %arg2 : i32, i32
  }
  func.func @transform_1(%arg0: i32, %arg1: i32, %arg2: i32) -> (i32, i32) {
    %c0_i32 = arith.constant 0 : i32
    return %arg2, %arg1 : i32, i32
  }
  func.func @transform_2(%arg0: i32, %arg1: i32, %arg2: i32) -> (i32, i32) {
    %c0_i32 = arith.constant 0 : i32
    %c0_i32_0 = arith.constant 0 : i32
    return %c0_i32, %arg1 : i32, i32
  }
  func.func @transform_3(%arg0: i32, %arg1: i32, %arg2: i32) -> (i32, i32) {
    %c0_i32 = arith.constant 0 : i32
    return %arg0, %arg1 : i32, i32
  }
}

module attributes {stable_mosaic.version = 11 : i64} {
  func.func @_fused_matmul_kernel(%arg0: i32, %arg1: i32, %arg2: i32, %arg3: memref<32x128xbf16, #tpu.memory_space<vmem>>, %arg4: memref<128x128xbf16, #tpu.memory_space<vmem>>, %arg5: memref<1x128xf32, #tpu.memory_space<vmem>>, %arg6: memref<32x128xf32, #tpu.memory_space<vmem>>, %arg7: memref<32x128xf32, #tpu.memory_space<vmem>>) attributes {dimension_semantics = [#tpu.dimension_semantics<parallel>, #tpu.dimension_semantics<parallel>, #tpu.dimension_semantics<arbitrary>], iteration_bounds = array<i64: 1, 1, 1>, scalar_prefetch = 0 : i64, scratch_operands = 1 : i64, tpu.core_type = #tpu.core_type<tc>, window_params = [{transform_indices = @transform_0, window_bounds = array<i64: 32, 128>}, {transform_indices = @transform_1, window_bounds = array<i64: 128, 128>}, {transform_indices = @transform_2, window_bounds = array<i64: 1, 128>}, {transform_indices = @transform_3, window_bounds = array<i64: 32, 128>}]} {
    %c0_i32 = arith.constant 0 : i32
    %0 = arith.cmpi eq, %arg2, %c0_i32 : i32
    %1 = arith.extui %0 : i1 to i32
    %c0_i32_0 = arith.constant 0 : i32
    %2 = arith.cmpi ne, %1, %c0_i32_0 : i32
    scf.if %2 {
      %cst_10 = arith.constant 0.000000e+00 : f32
      %12 = vector.broadcast %cst_10 : f32 to vector<32x128xf32>
      %c0_11 = arith.constant 0 : index
      %c0_12 = arith.constant 0 : index
      %13 = vector.load %arg7[%c0_11, %c0_12] : memref<32x128xf32, #tpu.memory_space<vmem>>, vector<32x128xf32>
      tpu.vector_store %arg7[%c0_11, %c0_12], %12 {strides = array<i32>} : memref<32x128xf32, #tpu.memory_space<vmem>>, vector<32x128xf32>,
    } else {
    }
    %c0 = arith.constant 0 : index
    %c0_1 = arith.constant 0 : index
    %3 = vector.load %arg7[%c0, %c0_1] : memref<32x128xf32, #tpu.memory_space<vmem>>, vector<32x128xf32>
    %c0_2 = arith.constant 0 : index
    %c0_3 = arith.constant 0 : index
    %4 = vector.load %arg3[%c0_2, %c0_3] : memref<32x128xbf16, #tpu.memory_space<vmem>>, vector<32x128xbf16>
    %c0_4 = arith.constant 0 : index
    %c0_5 = arith.constant 0 : index
    %5 = vector.load %arg4[%c0_4, %c0_5] : memref<128x128xbf16, #tpu.memory_space<vmem>>, vector<128x128xbf16>
    %cst = arith.constant dense<0.000000e+00> : vector<32x128xf32>
    %6 = tpu.matmul %4, %5, %cst {dimension_numbers = #tpu.dot_dimension_numbers<[1], [0], [0], [1], [0, 0, 1, 1], [], []>} : vector<32x128xbf16>, vector<128x128xbf16>, vector<32x128xf32> -> vector<32x128xf32>
    %7 = arith.addf %3, %6 : vector<32x128xf32>
    %c0_6 = arith.constant 0 : index
    %c0_7 = arith.constant 0 : index
    %8 = vector.load %arg7[%c0_6, %c0_7] : memref<32x128xf32, #tpu.memory_space<vmem>>, vector<32x128xf32>
    tpu.vector_store %arg7[%c0_6, %c0_7], %7 {strides = array<i32>} : memref<32x128xf32, #tpu.memory_space<vmem>>, vector<32x128xf32>,
    %c0_i32_8 = arith.constant 0 : i32
    %9 = arith.cmpi eq, %arg2, %c0_i32_8 : i32
    %10 = arith.extui %9 : i1 to i32
    %c0_i32_9 = arith.constant 0 : i32
    %11 = arith.cmpi ne, %10, %c0_i32_9 : i32
    scf.if %11 {
      %c0_10 = arith.constant 0 : index
      %c0_11 = arith.constant 0 : index
      %12 = vector.load %arg7[%c0_10, %c0_11] : memref<32x128xf32, #tpu.memory_space<vmem>>, vector<32x128xf32>
      %c0_12 = arith.constant 0 : index
      %c0_13 = arith.constant 0 : index
      %13 = vector.load %arg5[%c0_12, %c0_13] : memref<1x128xf32, #tpu.memory_space<vmem>>, vector<1x128xf32>
      %14 = vector.broadcast %13 : vector<1x128xf32> to vector<32x128xf32>
      %15 = arith.addf %12, %14 : vector<32x128xf32>
      %cst_14 = arith.constant 0.000000e+00 : f32
      %16 = vector.broadcast %cst_14 : f32 to vector<32x128xf32>
      %17 = arith.maximumf %15, %16 : vector<32x128xf32>
      %c0_15 = arith.constant 0 : index
      %c0_16 = arith.constant 0 : index
      %18 = vector.load %arg6[%c0_15, %c0_16] : memref<32x128xf32, #tpu.memory_space<vmem>>, vector<32x128xf32>
      tpu.vector_store %arg6[%c0_15, %c0_16], %17 {strides = array<i32>} : memref<32x128xf32, #tpu.memory_space<vmem>>, vector<32x128xf32>,
    } else {
    }
    return
  }
  func.func @transform_0(%arg0: i32, %arg1: i32, %arg2: i32) -> (i32, i32) {
    %c0_i32 = arith.constant 0 : i32
    return %arg0, %arg2 : i32, i32
  }
  func.func @transform_1(%arg0: i32, %arg1: i32, %arg2: i32) -> (i32, i32) {
    %c0_i32 = arith.constant 0 : i32
    return %arg2, %arg1 : i32, i32
  }
  func.func @transform_2(%arg0: i32, %arg1: i32, %arg2: i32) -> (i32, i32) {
    %c0_i32 = arith.constant 0 : i32
    %c0_i32_0 = arith.constant 0 : i32
    return %c0_i32, %arg1 : i32, i32
  }
  func.func @transform_3(%arg0: i32, %arg1: i32, %arg2: i32) -> (i32, i32) {
    %c0_i32 = arith.constant 0 : i32
    return %arg0, %arg1 : i32, i32
  }
}

module attributes {stable_mosaic.version = 11 : i64} {
  func.func @_fused_matmul_kernel(%arg0: i32, %arg1: i32, %arg2: i32, %arg3: memref<32x128xbf16, #tpu.memory_space<vmem>>, %arg4: memref<128x128xbf16, #tpu.memory_space<vmem>>, %arg5: memref<1x128xf32, #tpu.memory_space<vmem>>, %arg6: memref<32x128xf32, #tpu.memory_space<vmem>>, %arg7: memref<32x128xf32, #tpu.memory_space<vmem>>) attributes {dimension_semantics = [#tpu.dimension_semantics<parallel>, #tpu.dimension_semantics<parallel>, #tpu.dimension_semantics<arbitrary>], iteration_bounds = array<i64: 1, 1, 1>, scalar_prefetch = 0 : i64, scratch_operands = 1 : i64, tpu.core_type = #tpu.core_type<tc>, window_params = [{transform_indices = @transform_0, window_bounds = array<i64: 32, 128>}, {transform_indices = @transform_1, window_bounds = array<i64: 128, 128>}, {transform_indices = @transform_2, window_bounds = array<i64: 1, 128>}, {transform_indices = @transform_3, window_bounds = array<i64: 32, 128>}]} {
    %c0_i32 = arith.constant 0 : i32
    %0 = arith.cmpi eq, %arg2, %c0_i32 : i32
    %1 = arith.extui %0 : i1 to i32
    %c0_i32_0 = arith.constant 0 : i32
    %2 = arith.cmpi ne, %1, %c0_i32_0 : i32
    scf.if %2 {
      %cst_10 = arith.constant 0.000000e+00 : f32
      %12 = vector.broadcast %cst_10 : f32 to vector<32x128xf32>
      %c0_11 = arith.constant 0 : index
      %c0_12 = arith.constant 0 : index
      %13 = vector.load %arg7[%c0_11, %c0_12] : memref<32x128xf32, #tpu.memory_space<vmem>>, vector<32x128xf32>
      tpu.vector_store %arg7[%c0_11, %c0_12], %12 {strides = array<i32>} : memref<32x128xf32, #tpu.memory_space<vmem>>, vector<32x128xf32>,
    } else {
    }
    %c0 = arith.constant 0 : index
    %c0_1 = arith.constant 0 : index
    %3 = vector.load %arg7[%c0, %c0_1] : memref<32x128xf32, #tpu.memory_space<vmem>>, vector<32x128xf32>
    %c0_2 = arith.constant 0 : index
    %c0_3 = arith.constant 0 : index
    %4 = vector.load %arg3[%c0_2, %c0_3] : memref<32x128xbf16, #tpu.memory_space<vmem>>, vector<32x128xbf16>
    %c0_4 = arith.constant 0 : index
    %c0_5 = arith.constant 0 : index
    %5 = vector.load %arg4[%c0_4, %c0_5] : memref<128x128xbf16, #tpu.memory_space<vmem>>, vector<128x128xbf16>
    %cst = arith.constant dense<0.000000e+00> : vector<32x128xf32>
    %6 = tpu.matmul %4, %5, %cst {dimension_numbers = #tpu.dot_dimension_numbers<[1], [0], [0], [1], [0, 0, 1, 1], [], []>} : vector<32x128xbf16>, vector<128x128xbf16>, vector<32x128xf32> -> vector<32x128xf32>
    %7 = arith.addf %3, %6 : vector<32x128xf32>
    %c0_6 = arith.constant 0 : index
    %c0_7 = arith.constant 0 : index
    %8 = vector.load %arg7[%c0_6, %c0_7] : memref<32x128xf32, #tpu.memory_space<vmem>>, vector<32x128xf32>
    tpu.vector_store %arg7[%c0_6, %c0_7], %7 {strides = array<i32>} : memref<32x128xf32, #tpu.memory_space<vmem>>, vector<32x128xf32>,
    %c0_i32_8 = arith.constant 0 : i32
    %9 = arith.cmpi eq, %arg2, %c0_i32_8 : i32
    %10 = arith.extui %9 : i1 to i32
    %c0_i32_9 = arith.constant 0 : i32
    %11 = arith.cmpi ne, %10, %c0_i32_9 : i32
    scf.if %11 {
      %c0_10 = arith.constant 0 : index
      %c0_11 = arith.constant 0 : index
      %12 = vector.load %arg7[%c0_10, %c0_11] : memref<32x128xf32, #tpu.memory_space<vmem>>, vector<32x128xf32>
      %c0_12 = arith.constant 0 : index
      %c0_13 = arith.constant 0 : index
      %13 = vector.load %arg5[%c0_12, %c0_13] : memref<1x128xf32, #tpu.memory_space<vmem>>, vector<1x128xf32>
      %14 = vector.broadcast %13 : vector<1x128xf32> to vector<32x128xf32>
      %15 = arith.addf %12, %14 : vector<32x128xf32>
      %c0_14 = arith.constant 0 : index
      %c0_15 = arith.constant 0 : index
      %16 = vector.load %arg6[%c0_14, %c0_15] : memref<32x128xf32, #tpu.memory_space<vmem>>, vector<32x128xf32>
      tpu.vector_store %arg6[%c0_14, %c0_15], %15 {strides = array<i32>} : memref<32x128xf32, #tpu.memory_space<vmem>>, vector<32x128xf32>,
    } else {
    }
    return
  }
  func.func @transform_0(%arg0: i32, %arg1: i32, %arg2: i32) -> (i32, i32) {
    %c0_i32 = arith.constant 0 : i32
    return %arg0, %arg2 : i32, i32
  }
  func.func @transform_1(%arg0: i32, %arg1: i32, %arg2: i32) -> (i32, i32) {
    %c0_i32 = arith.constant 0 : i32
    return %arg2, %arg1 : i32, i32
  }
  func.func @transform_2(%arg0: i32, %arg1: i32, %arg2: i32) -> (i32, i32) {
    %c0_i32 = arith.constant 0 : i32
    %c0_i32_0 = arith.constant 0 : i32
    return %c0_i32, %arg1 : i32, i32
  }
  func.func @transform_3(%arg0: i32, %arg1: i32, %arg2: i32) -> (i32, i32) {
    %c0_i32 = arith.constant 0 : i32
    return %arg0, %arg1 : i32, i32
  }
}

module attributes {stable_mosaic.version = 11 : i64} {
  func.func @_fused_matmul_kernel(%arg0: i32, %arg1: i32, %arg2: i32, %arg3: memref<8x128xbf16, #tpu.memory_space<vmem>>, %arg4: memref<128x128xbf16, #tpu.memory_space<vmem>>, %arg5: memref<1x128xf32, #tpu.memory_space<vmem>>, %arg6: memref<8x128xf32, #tpu.memory_space<vmem>>, %arg7: memref<8x128xf32, #tpu.memory_space<vmem>>) attributes {dimension_semantics = [#tpu.dimension_semantics<parallel>, #tpu.dimension_semantics<parallel>, #tpu.dimension_semantics<arbitrary>], iteration_bounds = array<i64: 1, 1, 1>, scalar_prefetch = 0 : i64, scratch_operands = 1 : i64, tpu.core_type = #tpu.core_type<tc>, window_params = [{transform_indices = @transform_0, window_bounds = array<i64: 8, 128>}, {transform_indices = @transform_1, window_bounds = array<i64: 128, 128>}, {transform_indices = @transform_2, window_bounds = array<i64: 1, 128>}, {transform_indices = @transform_3, window_bounds = array<i64: 8, 128>}]} {
    %c0_i32 = arith.constant 0 : i32
    %0 = arith.cmpi eq, %arg2, %c0_i32 : i32
    %1 = arith.extui %0 : i1 to i32
    %c0_i32_0 = arith.constant 0 : i32
    %2 = arith.cmpi ne, %1, %c0_i32_0 : i32
    scf.if %2 {
      %cst_10 = arith.constant 0.000000e+00 : f32
      %12 = vector.broadcast %cst_10 : f32 to vector<8x128xf32>
      %c0_11 = arith.constant 0 : index
      %c0_12 = arith.constant 0 : index
      %13 = vector.load %arg7[%c0_11, %c0_12] : memref<8x128xf32, #tpu.memory_space<vmem>>, vector<8x128xf32>
      tpu.vector_store %arg7[%c0_11, %c0_12], %12 {strides = array<i32>} : memref<8x128xf32, #tpu.memory_space<vmem>>, vector<8x128xf32>,
    } else {
    }
    %c0 = arith.constant 0 : index
    %c0_1 = arith.constant 0 : index
    %3 = vector.load %arg7[%c0, %c0_1] : memref<8x128xf32, #tpu.memory_space<vmem>>, vector<8x128xf32>
    %c0_2 = arith.constant 0 : index
    %c0_3 = arith.constant 0 : index
    %4 = vector.load %arg3[%c0_2, %c0_3] : memref<8x128xbf16, #tpu.memory_space<vmem>>, vector<8x128xbf16>
    %c0_4 = arith.constant 0 : index
    %c0_5 = arith.constant 0 : index
    %5 = vector.load %arg4[%c0_4, %c0_5] : memref<128x128xbf16, #tpu.memory_space<vmem>>, vector<128x128xbf16>
    %cst = arith.constant dense<0.000000e+00> : vector<8x128xf32>
    %6 = tpu.matmul %4, %5, %cst {dimension_numbers = #tpu.dot_dimension_numbers<[1], [0], [0], [1], [0, 0, 1, 1], [], []>} : vector<8x128xbf16>, vector<128x128xbf16>, vector<8x128xf32> -> vector<8x128xf32>
    %7 = arith.addf %3, %6 : vector<8x128xf32>
    %c0_6 = arith.constant 0 : index
    %c0_7 = arith.constant 0 : index
    %8 = vector.load %arg7[%c0_6, %c0_7] : memref<8x128xf32, #tpu.memory_space<vmem>>, vector<8x128xf32>
    tpu.vector_store %arg7[%c0_6, %c0_7], %7 {strides = array<i32>} : memref<8x128xf32, #tpu.memory_space<vmem>>, vector<8x128xf32>,
    %c0_i32_8 = arith.constant 0 : i32
    %9 = arith.cmpi eq, %arg2, %c0_i32_8 : i32
    %10 = arith.extui %9 : i1 to i32
    %c0_i32_9 = arith.constant 0 : i32
    %11 = arith.cmpi ne, %10, %c0_i32_9 : i32
    scf.if %11 {
      %c0_10 = arith.constant 0 : index
      %c0_11 = arith.constant 0 : index
      %12 = vector.load %arg7[%c0_10, %c0_11] : memref<8x128xf32, #tpu.memory_space<vmem>>, vector<8x128xf32>
      %c0_12 = arith.constant 0 : index
      %c0_13 = arith.constant 0 : index
      %13 = vector.load %arg5[%c0_12, %c0_13] : memref<1x128xf32, #tpu.memory_space<vmem>>, vector<1x128xf32>
      %14 = vector.broadcast %13 : vector<1x128xf32> to vector<8x128xf32>
      %15 = arith.addf %12, %14 : vector<8x128xf32>
      %cst_14 = arith.constant 0.000000e+00 : f32
      %16 = vector.broadcast %cst_14 : f32 to vector<8x128xf32>
      %17 = arith.maximumf %15, %16 : vector<8x128xf32>
      %c0_15 = arith.constant 0 : index
      %c0_16 = arith.constant 0 : index
      %18 = vector.load %arg6[%c0_15, %c0_16] : memref<8x128xf32, #tpu.memory_space<vmem>>, vector<8x128xf32>
      tpu.vector_store %arg6[%c0_15, %c0_16], %17 {strides = array<i32>} : memref<8x128xf32, #tpu.memory_space<vmem>>, vector<8x128xf32>,
    } else {
    }
    return
  }
  func.func @transform_0(%arg0: i32, %arg1: i32, %arg2: i32) -> (i32, i32) {
    %c0_i32 = arith.constant 0 : i32
    return %arg0, %arg2 : i32, i32
  }
  func.func @transform_1(%arg0: i32, %arg1: i32, %arg2: i32) -> (i32, i32) {
    %c0_i32 = arith.constant 0 : i32
    return %arg2, %arg1 : i32, i32
  }
  func.func @transform_2(%arg0: i32, %arg1: i32, %arg2: i32) -> (i32, i32) {
    %c0_i32 = arith.constant 0 : i32
    %c0_i32_0 = arith.constant 0 : i32
    return %c0_i32, %arg1 : i32, i32
  }
  func.func @transform_3(%arg0: i32, %arg1: i32, %arg2: i32) -> (i32, i32) {
    %c0_i32 = arith.constant 0 : i32
    return %arg0, %arg1 : i32, i32
  }
}

module attributes {stable_mosaic.version = 11 : i64} {
  func.func @_fused_matmul_kernel(%arg0: i32, %arg1: i32, %arg2: i32, %arg3: memref<8x128xbf16, #tpu.memory_space<vmem>>, %arg4: memref<128x128xbf16, #tpu.memory_space<vmem>>, %arg5: memref<1x128xf32, #tpu.memory_space<vmem>>, %arg6: memref<8x128xf32, #tpu.memory_space<vmem>>, %arg7: memref<8x128xf32, #tpu.memory_space<vmem>>) attributes {dimension_semantics = [#tpu.dimension_semantics<parallel>, #tpu.dimension_semantics<parallel>, #tpu.dimension_semantics<arbitrary>], iteration_bounds = array<i64: 1, 1, 1>, scalar_prefetch = 0 : i64, scratch_operands = 1 : i64, tpu.core_type = #tpu.core_type<tc>, window_params = [{transform_indices = @transform_0, window_bounds = array<i64: 8, 128>}, {transform_indices = @transform_1, window_bounds = array<i64: 128, 128>}, {transform_indices = @transform_2, window_bounds = array<i64: 1, 128>}, {transform_indices = @transform_3, window_bounds = array<i64: 8, 128>}]} {
    %c0_i32 = arith.constant 0 : i32
    %0 = arith.cmpi eq, %arg2, %c0_i32 : i32
    %1 = arith.extui %0 : i1 to i32
    %c0_i32_0 = arith.constant 0 : i32
    %2 = arith.cmpi ne, %1, %c0_i32_0 : i32
    scf.if %2 {
      %cst_10 = arith.constant 0.000000e+00 : f32
      %12 = vector.broadcast %cst_10 : f32 to vector<8x128xf32>
      %c0_11 = arith.constant 0 : index
      %c0_12 = arith.constant 0 : index
      %13 = vector.load %arg7[%c0_11, %c0_12] : memref<8x128xf32, #tpu.memory_space<vmem>>, vector<8x128xf32>
      tpu.vector_store %arg7[%c0_11, %c0_12], %12 {strides = array<i32>} : memref<8x128xf32, #tpu.memory_space<vmem>>, vector<8x128xf32>,
    } else {
    }
    %c0 = arith.constant 0 : index
    %c0_1 = arith.constant 0 : index
    %3 = vector.load %arg7[%c0, %c0_1] : memref<8x128xf32, #tpu.memory_space<vmem>>, vector<8x128xf32>
    %c0_2 = arith.constant 0 : index
    %c0_3 = arith.constant 0 : index
    %4 = vector.load %arg3[%c0_2, %c0_3] : memref<8x128xbf16, #tpu.memory_space<vmem>>, vector<8x128xbf16>
    %c0_4 = arith.constant 0 : index
    %c0_5 = arith.constant 0 : index
    %5 = vector.load %arg4[%c0_4, %c0_5] : memref<128x128xbf16, #tpu.memory_space<vmem>>, vector<128x128xbf16>
    %cst = arith.constant dense<0.000000e+00> : vector<8x128xf32>
    %6 = tpu.matmul %4, %5, %cst {dimension_numbers = #tpu.dot_dimension_numbers<[1], [0], [0], [1], [0, 0, 1, 1], [], []>} : vector<8x128xbf16>, vector<128x128xbf16>, vector<8x128xf32> -> vector<8x128xf32>
    %7 = arith.addf %3, %6 : vector<8x128xf32>
    %c0_6 = arith.constant 0 : index
    %c0_7 = arith.constant 0 : index
    %8 = vector.load %arg7[%c0_6, %c0_7] : memref<8x128xf32, #tpu.memory_space<vmem>>, vector<8x128xf32>
    tpu.vector_store %arg7[%c0_6, %c0_7], %7 {strides = array<i32>} : memref<8x128xf32, #tpu.memory_space<vmem>>, vector<8x128xf32>,
    %c0_i32_8 = arith.constant 0 : i32
    %9 = arith.cmpi eq, %arg2, %c0_i32_8 : i32
    %10 = arith.extui %9 : i1 to i32
    %c0_i32_9 = arith.constant 0 : i32
    %11 = arith.cmpi ne, %10, %c0_i32_9 : i32
    scf.if %11 {
      %c0_10 = arith.constant 0 : index
      %c0_11 = arith.constant 0 : index
      %12 = vector.load %arg7[%c0_10, %c0_11] : memref<8x128xf32, #tpu.memory_space<vmem>>, vector<8x128xf32>
      %c0_12 = arith.constant 0 : index
      %c0_13 = arith.constant 0 : index
      %13 = vector.load %arg5[%c0_12, %c0_13] : memref<1x128xf32, #tpu.memory_space<vmem>>, vector<1x128xf32>
      %14 = vector.broadcast %13 : vector<1x128xf32> to vector<8x128xf32>
      %15 = arith.addf %12, %14 : vector<8x128xf32>
      %cst_14 = arith.constant 0.000000e+00 : f32
      %16 = vector.broadcast %cst_14 : f32 to vector<8x128xf32>
      %17 = arith.maximumf %15, %16 : vector<8x128xf32>
      %c0_15 = arith.constant 0 : index
      %c0_16 = arith.constant 0 : index
      %18 = vector.load %arg6[%c0_15, %c0_16] : memref<8x128xf32, #tpu.memory_space<vmem>>, vector<8x128xf32>
      tpu.vector_store %arg6[%c0_15, %c0_16], %17 {strides = array<i32>} : memref<8x128xf32, #tpu.memory_space<vmem>>, vector<8x128xf32>,
    } else {
    }
    return
  }
  func.func @transform_0(%arg0: i32, %arg1: i32, %arg2: i32) -> (i32, i32) {
    %c0_i32 = arith.constant 0 : i32
    return %arg0, %arg2 : i32, i32
  }
  func.func @transform_1(%arg0: i32, %arg1: i32, %arg2: i32) -> (i32, i32) {
    %c0_i32 = arith.constant 0 : i32
    return %arg2, %arg1 : i32, i32
  }
  func.func @transform_2(%arg0: i32, %arg1: i32, %arg2: i32) -> (i32, i32) {
    %c0_i32 = arith.constant 0 : i32
    %c0_i32_0 = arith.constant 0 : i32
    return %c0_i32, %arg1 : i32, i32
  }
  func.func @transform_3(%arg0: i32, %arg1: i32, %arg2: i32) -> (i32, i32) {
    %c0_i32 = arith.constant 0 : i32
    return %arg0, %arg1 : i32, i32
  }
}

module attributes {stable_mosaic.version = 11 : i64} {
  func.func @_fused_matmul_kernel(%arg0: i32, %arg1: i32, %arg2: i32, %arg3: memref<8x128xbf16, #tpu.memory_space<vmem>>, %arg4: memref<128x128xbf16, #tpu.memory_space<vmem>>, %arg5: memref<1x128xf32, #tpu.memory_space<vmem>>, %arg6: memref<8x128xf32, #tpu.memory_space<vmem>>, %arg7: memref<8x128xf32, #tpu.memory_space<vmem>>) attributes {dimension_semantics = [#tpu.dimension_semantics<parallel>, #tpu.dimension_semantics<parallel>, #tpu.dimension_semantics<arbitrary>], iteration_bounds = array<i64: 1, 1, 1>, scalar_prefetch = 0 : i64, scratch_operands = 1 : i64, tpu.core_type = #tpu.core_type<tc>, window_params = [{transform_indices = @transform_0, window_bounds = array<i64: 8, 128>}, {transform_indices = @transform_1, window_bounds = array<i64: 128, 128>}, {transform_indices = @transform_2, window_bounds = array<i64: 1, 128>}, {transform_indices = @transform_3, window_bounds = array<i64: 8, 128>}]} {
    %c0_i32 = arith.constant 0 : i32
    %0 = arith.cmpi eq, %arg2, %c0_i32 : i32
    %1 = arith.extui %0 : i1 to i32
    %c0_i32_0 = arith.constant 0 : i32
    %2 = arith.cmpi ne, %1, %c0_i32_0 : i32
    scf.if %2 {
      %cst_10 = arith.constant 0.000000e+00 : f32
      %12 = vector.broadcast %cst_10 : f32 to vector<8x128xf32>
      %c0_11 = arith.constant 0 : index
      %c0_12 = arith.constant 0 : index
      %13 = vector.load %arg7[%c0_11, %c0_12] : memref<8x128xf32, #tpu.memory_space<vmem>>, vector<8x128xf32>
      tpu.vector_store %arg7[%c0_11, %c0_12], %12 {strides = array<i32>} : memref<8x128xf32, #tpu.memory_space<vmem>>, vector<8x128xf32>,
    } else {
    }
    %c0 = arith.constant 0 : index
    %c0_1 = arith.constant 0 : index
    %3 = vector.load %arg7[%c0, %c0_1] : memref<8x128xf32, #tpu.memory_space<vmem>>, vector<8x128xf32>
    %c0_2 = arith.constant 0 : index
    %c0_3 = arith.constant 0 : index
    %4 = vector.load %arg3[%c0_2, %c0_3] : memref<8x128xbf16, #tpu.memory_space<vmem>>, vector<8x128xbf16>
    %c0_4 = arith.constant 0 : index
    %c0_5 = arith.constant 0 : index
    %5 = vector.load %arg4[%c0_4, %c0_5] : memref<128x128xbf16, #tpu.memory_space<vmem>>, vector<128x128xbf16>
    %cst = arith.constant dense<0.000000e+00> : vector<8x128xf32>
    %6 = tpu.matmul %4, %5, %cst {dimension_numbers = #tpu.dot_dimension_numbers<[1], [0], [0], [1], [0, 0, 1, 1], [], []>} : vector<8x128xbf16>, vector<128x128xbf16>, vector<8x128xf32> -> vector<8x128xf32>
    %7 = arith.addf %3, %6 : vector<8x128xf32>
    %c0_6 = arith.constant 0 : index
    %c0_7 = arith.constant 0 : index
    %8 = vector.load %arg7[%c0_6, %c0_7] : memref<8x128xf32, #tpu.memory_space<vmem>>, vector<8x128xf32>
    tpu.vector_store %arg7[%c0_6, %c0_7], %7 {strides = array<i32>} : memref<8x128xf32, #tpu.memory_space<vmem>>, vector<8x128xf32>,
    %c0_i32_8 = arith.constant 0 : i32
    %9 = arith.cmpi eq, %arg2, %c0_i32_8 : i32
    %10 = arith.extui %9 : i1 to i32
    %c0_i32_9 = arith.constant 0 : i32
    %11 = arith.cmpi ne, %10, %c0_i32_9 : i32
    scf.if %11 {
      %c0_10 = arith.constant 0 : index
      %c0_11 = arith.constant 0 : index
      %12 = vector.load %arg7[%c0_10, %c0_11] : memref<8x128xf32, #tpu.memory_space<vmem>>, vector<8x128xf32>
      %c0_12 = arith.constant 0 : index
      %c0_13 = arith.constant 0 : index
      %13 = vector.load %arg5[%c0_12, %c0_13] : memref<1x128xf32, #tpu.memory_space<vmem>>, vector<1x128xf32>
      %14 = vector.broadcast %13 : vector<1x128xf32> to vector<8x128xf32>
      %15 = arith.addf %12, %14 : vector<8x128xf32>
      %c0_14 = arith.constant 0 : index
      %c0_15 = arith.constant 0 : index
      %16 = vector.load %arg6[%c0_14, %c0_15] : memref<8x128xf32, #tpu.memory_space<vmem>>, vector<8x128xf32>
      tpu.vector_store %arg6[%c0_14, %c0_15], %15 {strides = array<i32>} : memref<8x128xf32, #tpu.memory_space<vmem>>, vector<8x128xf32>,
    } else {
    }
    return
  }
  func.func @transform_0(%arg0: i32, %arg1: i32, %arg2: i32) -> (i32, i32) {
    %c0_i32 = arith.constant 0 : i32
    return %arg0, %arg2 : i32, i32
  }
  func.func @transform_1(%arg0: i32, %arg1: i32, %arg2: i32) -> (i32, i32) {
    %c0_i32 = arith.constant 0 : i32
    return %arg2, %arg1 : i32, i32
  }
  func.func @transform_2(%arg0: i32, %arg1: i32, %arg2: i32) -> (i32, i32) {
    %c0_i32 = arith.constant 0 : i32
    %c0_i32_0 = arith.constant 0 : i32
    return %c0_i32, %arg1 : i32, i32
  }
  func.func @transform_3(%arg0: i32, %arg1: i32, %arg2: i32) -> (i32, i32) {
    %c0_i32 = arith.constant 0 : i32
    return %arg0, %arg1 : i32, i32
  }
}

module attributes {stable_mosaic.version = 11 : i64} {
  func.func @_fused_matmul_kernel(%arg0: i32, %arg1: i32, %arg2: i32, %arg3: memref<8x256xbf16, #tpu.memory_space<vmem>>, %arg4: memref<256x128xbf16, #tpu.memory_space<vmem>>, %arg5: memref<1x128xf32, #tpu.memory_space<vmem>>, %arg6: memref<8x128xf32, #tpu.memory_space<vmem>>, %arg7: memref<8x128xf32, #tpu.memory_space<vmem>>) attributes {dimension_semantics = [#tpu.dimension_semantics<parallel>, #tpu.dimension_semantics<parallel>, #tpu.dimension_semantics<arbitrary>], iteration_bounds = array<i64: 1, 1, 1>, scalar_prefetch = 0 : i64, scratch_operands = 1 : i64, tpu.core_type = #tpu.core_type<tc>, window_params = [{transform_indices = @transform_0, window_bounds = array<i64: 8, 256>}, {transform_indices = @transform_1, window_bounds = array<i64: 256, 128>}, {transform_indices = @transform_2, window_bounds = array<i64: 1, 128>}, {transform_indices = @transform_3, window_bounds = array<i64: 8, 128>}]} {
    %c0_i32 = arith.constant 0 : i32
    %0 = arith.cmpi eq, %arg2, %c0_i32 : i32
    %1 = arith.extui %0 : i1 to i32
    %c0_i32_0 = arith.constant 0 : i32
    %2 = arith.cmpi ne, %1, %c0_i32_0 : i32
    scf.if %2 {
      %cst_10 = arith.constant 0.000000e+00 : f32
      %12 = vector.broadcast %cst_10 : f32 to vector<8x128xf32>
      %c0_11 = arith.constant 0 : index
      %c0_12 = arith.constant 0 : index
      %13 = vector.load %arg7[%c0_11, %c0_12] : memref<8x128xf32, #tpu.memory_space<vmem>>, vector<8x128xf32>
      tpu.vector_store %arg7[%c0_11, %c0_12], %12 {strides = array<i32>} : memref<8x128xf32, #tpu.memory_space<vmem>>, vector<8x128xf32>,
    } else {
    }
    %c0 = arith.constant 0 : index
    %c0_1 = arith.constant 0 : index
    %3 = vector.load %arg7[%c0, %c0_1] : memref<8x128xf32, #tpu.memory_space<vmem>>, vector<8x128xf32>
    %c0_2 = arith.constant 0 : index
    %c0_3 = arith.constant 0 : index
    %4 = vector.load %arg3[%c0_2, %c0_3] : memref<8x256xbf16, #tpu.memory_space<vmem>>, vector<8x256xbf16>
    %c0_4 = arith.constant 0 : index
    %c0_5 = arith.constant 0 : index
    %5 = vector.load %arg4[%c0_4, %c0_5] : memref<256x128xbf16, #tpu.memory_space<vmem>>, vector<256x128xbf16>
    %cst = arith.constant dense<0.000000e+00> : vector<8x128xf32>
    %6 = tpu.matmul %4, %5, %cst {dimension_numbers = #tpu.dot_dimension_numbers<[1], [0], [0], [1], [0, 0, 1, 1], [], []>} : vector<8x256xbf16>, vector<256x128xbf16>, vector<8x128xf32> -> vector<8x128xf32>
    %7 = arith.addf %3, %6 : vector<8x128xf32>
    %c0_6 = arith.constant 0 : index
    %c0_7 = arith.constant 0 : index
    %8 = vector.load %arg7[%c0_6, %c0_7] : memref<8x128xf32, #tpu.memory_space<vmem>>, vector<8x128xf32>
    tpu.vector_store %arg7[%c0_6, %c0_7], %7 {strides = array<i32>} : memref<8x128xf32, #tpu.memory_space<vmem>>, vector<8x128xf32>,
    %c0_i32_8 = arith.constant 0 : i32
    %9 = arith.cmpi eq, %arg2, %c0_i32_8 : i32
    %10 = arith.extui %9 : i1 to i32
    %c0_i32_9 = arith.constant 0 : i32
    %11 = arith.cmpi ne, %10, %c0_i32_9 : i32
    scf.if %11 {
      %c0_10 = arith.constant 0 : index
      %c0_11 = arith.constant 0 : index
      %12 = vector.load %arg7[%c0_10, %c0_11] : memref<8x128xf32, #tpu.memory_space<vmem>>, vector<8x128xf32>
      %c0_12 = arith.constant 0 : index
      %c0_13 = arith.constant 0 : index
      %13 = vector.load %arg5[%c0_12, %c0_13] : memref<1x128xf32, #tpu.memory_space<vmem>>, vector<1x128xf32>
      %14 = vector.broadcast %13 : vector<1x128xf32> to vector<8x128xf32>
      %15 = arith.addf %12, %14 : vector<8x128xf32>
      %cst_14 = arith.constant 0.000000e+00 : f32
      %16 = vector.broadcast %cst_14 : f32 to vector<8x128xf32>
      %17 = arith.maximumf %15, %16 : vector<8x128xf32>
      %c0_15 = arith.constant 0 : index
      %c0_16 = arith.constant 0 : index
      %18 = vector.load %arg6[%c0_15, %c0_16] : memref<8x128xf32, #tpu.memory_space<vmem>>, vector<8x128xf32>
      tpu.vector_store %arg6[%c0_15, %c0_16], %17 {strides = array<i32>} : memref<8x128xf32, #tpu.memory_space<vmem>>, vector<8x128xf32>,
    } else {
    }
    return
  }
  func.func @transform_0(%arg0: i32, %arg1: i32, %arg2: i32) -> (i32, i32) {
    %c0_i32 = arith.constant 0 : i32
    return %arg0, %arg2 : i32, i32
  }
  func.func @transform_1(%arg0: i32, %arg1: i32, %arg2: i32) -> (i32, i32) {
    %c0_i32 = arith.constant 0 : i32
    return %arg2, %arg1 : i32, i32
  }
  func.func @transform_2(%arg0: i32, %arg1: i32, %arg2: i32) -> (i32, i32) {
    %c0_i32 = arith.constant 0 : i32
    %c0_i32_0 = arith.constant 0 : i32
    return %c0_i32, %arg1 : i32, i32
  }
  func.func @transform_3(%arg0: i32, %arg1: i32, %arg2: i32) -> (i32, i32) {
    %c0_i32 = arith.constant 0 : i32
    return %arg0, %arg1 : i32, i32
  }
}

module attributes {stable_mosaic.version = 11 : i64} {
  func.func @_fused_matmul_kernel(%arg0: i32, %arg1: i32, %arg2: i32, %arg3: memref<8x128xbf16, #tpu.memory_space<vmem>>, %arg4: memref<128x128xbf16, #tpu.memory_space<vmem>>, %arg5: memref<1x128xf32, #tpu.memory_space<vmem>>, %arg6: memref<8x128xf32, #tpu.memory_space<vmem>>, %arg7: memref<8x128xf32, #tpu.memory_space<vmem>>) attributes {dimension_semantics = [#tpu.dimension_semantics<parallel>, #tpu.dimension_semantics<parallel>, #tpu.dimension_semantics<arbitrary>], iteration_bounds = array<i64: 1, 1, 1>, scalar_prefetch = 0 : i64, scratch_operands = 1 : i64, tpu.core_type = #tpu.core_type<tc>, window_params = [{transform_indices = @transform_0, window_bounds = array<i64: 8, 128>}, {transform_indices = @transform_1, window_bounds = array<i64: 128, 128>}, {transform_indices = @transform_2, window_bounds = array<i64: 1, 128>}, {transform_indices = @transform_3, window_bounds = array<i64: 8, 128>}]} {
    %c0_i32 = arith.constant 0 : i32
    %0 = arith.cmpi eq, %arg2, %c0_i32 : i32
    %1 = arith.extui %0 : i1 to i32
    %c0_i32_0 = arith.constant 0 : i32
    %2 = arith.cmpi ne, %1, %c0_i32_0 : i32
    scf.if %2 {
      %cst_10 = arith.constant 0.000000e+00 : f32
      %12 = vector.broadcast %cst_10 : f32 to vector<8x128xf32>
      %c0_11 = arith.constant 0 : index
      %c0_12 = arith.constant 0 : index
      %13 = vector.load %arg7[%c0_11, %c0_12] : memref<8x128xf32, #tpu.memory_space<vmem>>, vector<8x128xf32>
      tpu.vector_store %arg7[%c0_11, %c0_12], %12 {strides = array<i32>} : memref<8x128xf32, #tpu.memory_space<vmem>>, vector<8x128xf32>,
    } else {
    }
    %c0 = arith.constant 0 : index
    %c0_1 = arith.constant 0 : index
    %3 = vector.load %arg7[%c0, %c0_1] : memref<8x128xf32, #tpu.memory_space<vmem>>, vector<8x128xf32>
    %c0_2 = arith.constant 0 : index
    %c0_3 = arith.constant 0 : index
    %4 = vector.load %arg3[%c0_2, %c0_3] : memref<8x128xbf16, #tpu.memory_space<vmem>>, vector<8x128xbf16>
    %c0_4 = arith.constant 0 : index
    %c0_5 = arith.constant 0 : index
    %5 = vector.load %arg4[%c0_4, %c0_5] : memref<128x128xbf16, #tpu.memory_space<vmem>>, vector<128x128xbf16>
    %cst = arith.constant dense<0.000000e+00> : vector<8x128xf32>
    %6 = tpu.matmul %4, %5, %cst {dimension_numbers = #tpu.dot_dimension_numbers<[1], [0], [0], [1], [0, 0, 1, 1], [], []>} : vector<8x128xbf16>, vector<128x128xbf16>, vector<8x128xf32> -> vector<8x128xf32>
    %7 = arith.addf %3, %6 : vector<8x128xf32>
    %c0_6 = arith.constant 0 : index
    %c0_7 = arith.constant 0 : index
    %8 = vector.load %arg7[%c0_6, %c0_7] : memref<8x128xf32, #tpu.memory_space<vmem>>, vector<8x128xf32>
    tpu.vector_store %arg7[%c0_6, %c0_7], %7 {strides = array<i32>} : memref<8x128xf32, #tpu.memory_space<vmem>>, vector<8x128xf32>,
    %c0_i32_8 = arith.constant 0 : i32
    %9 = arith.cmpi eq, %arg2, %c0_i32_8 : i32
    %10 = arith.extui %9 : i1 to i32
    %c0_i32_9 = arith.constant 0 : i32
    %11 = arith.cmpi ne, %10, %c0_i32_9 : i32
    scf.if %11 {
      %c0_10 = arith.constant 0 : index
      %c0_11 = arith.constant 0 : index
      %12 = vector.load %arg7[%c0_10, %c0_11] : memref<8x128xf32, #tpu.memory_space<vmem>>, vector<8x128xf32>
      %c0_12 = arith.constant 0 : index
      %c0_13 = arith.constant 0 : index
      %13 = vector.load %arg5[%c0_12, %c0_13] : memref<1x128xf32, #tpu.memory_space<vmem>>, vector<1x128xf32>
      %14 = vector.broadcast %13 : vector<1x128xf32> to vector<8x128xf32>
      %15 = arith.addf %12, %14 : vector<8x128xf32>
      %c0_14 = arith.constant 0 : index
      %c0_15 = arith.constant 0 : index
      %16 = vector.load %arg6[%c0_14, %c0_15] : memref<8x128xf32, #tpu.memory_space<vmem>>, vector<8x128xf32>
      tpu.vector_store %arg6[%c0_14, %c0_15], %15 {strides = array<i32>} : memref<8x128xf32, #tpu.memory_space<vmem>>, vector<8x128xf32>,
    } else {
    }
    return
  }
  func.func @transform_0(%arg0: i32, %arg1: i32, %arg2: i32) -> (i32, i32) {
    %c0_i32 = arith.constant 0 : i32
    return %arg0, %arg2 : i32, i32
  }
  func.func @transform_1(%arg0: i32, %arg1: i32, %arg2: i32) -> (i32, i32) {
    %c0_i32 = arith.constant 0 : i32
    return %arg2, %arg1 : i32, i32
  }
  func.func @transform_2(%arg0: i32, %arg1: i32, %arg2: i32) -> (i32, i32) {
    %c0_i32 = arith.constant 0 : i32
    %c0_i32_0 = arith.constant 0 : i32
    return %c0_i32, %arg1 : i32, i32
  }
  func.func @transform_3(%arg0: i32, %arg1: i32, %arg2: i32) -> (i32, i32) {
    %c0_i32 = arith.constant 0 : i32
    return %arg0, %arg1 : i32, i32
  }
}

module attributes {stable_mosaic.version = 11 : i64} {
  func.func @_fused_matmul_kernel(%arg0: i32, %arg1: i32, %arg2: i32, %arg3: memref<8x128xbf16, #tpu.memory_space<vmem>>, %arg4: memref<128x256xbf16, #tpu.memory_space<vmem>>, %arg5: memref<1x256xf32, #tpu.memory_space<vmem>>, %arg6: memref<8x256xf32, #tpu.memory_space<vmem>>, %arg7: memref<8x256xf32, #tpu.memory_space<vmem>>) attributes {dimension_semantics = [#tpu.dimension_semantics<parallel>, #tpu.dimension_semantics<parallel>, #tpu.dimension_semantics<arbitrary>], iteration_bounds = array<i64: 1, 1, 1>, scalar_prefetch = 0 : i64, scratch_operands = 1 : i64, tpu.core_type = #tpu.core_type<tc>, window_params = [{transform_indices = @transform_0, window_bounds = array<i64: 8, 128>}, {transform_indices = @transform_1, window_bounds = array<i64: 128, 256>}, {transform_indices = @transform_2, window_bounds = array<i64: 1, 256>}, {transform_indices = @transform_3, window_bounds = array<i64: 8, 256>}]} {
    %c0_i32 = arith.constant 0 : i32
    %0 = arith.cmpi eq, %arg2, %c0_i32 : i32
    %1 = arith.extui %0 : i1 to i32
    %c0_i32_0 = arith.constant 0 : i32
    %2 = arith.cmpi ne, %1, %c0_i32_0 : i32
    scf.if %2 {
      %cst_10 = arith.constant 0.000000e+00 : f32
      %12 = vector.broadcast %cst_10 : f32 to vector<8x256xf32>
      %c0_11 = arith.constant 0 : index
      %c0_12 = arith.constant 0 : index
      %13 = vector.load %arg7[%c0_11, %c0_12] : memref<8x256xf32, #tpu.memory_space<vmem>>, vector<8x256xf32>
      tpu.vector_store %arg7[%c0_11, %c0_12], %12 {strides = array<i32>} : memref<8x256xf32, #tpu.memory_space<vmem>>, vector<8x256xf32>,
    } else {
    }
    %c0 = arith.constant 0 : index
    %c0_1 = arith.constant 0 : index
    %3 = vector.load %arg7[%c0, %c0_1] : memref<8x256xf32, #tpu.memory_space<vmem>>, vector<8x256xf32>
    %c0_2 = arith.constant 0 : index
    %c0_3 = arith.constant 0 : index
    %4 = vector.load %arg3[%c0_2, %c0_3] : memref<8x128xbf16, #tpu.memory_space<vmem>>, vector<8x128xbf16>
    %c0_4 = arith.constant 0 : index
    %c0_5 = arith.constant 0 : index
    %5 = vector.load %arg4[%c0_4, %c0_5] : memref<128x256xbf16, #tpu.memory_space<vmem>>, vector<128x256xbf16>
    %cst = arith.constant dense<0.000000e+00> : vector<8x256xf32>
    %6 = tpu.matmul %4, %5, %cst {dimension_numbers = #tpu.dot_dimension_numbers<[1], [0], [0], [1], [0, 0, 1, 1], [], []>} : vector<8x128xbf16>, vector<128x256xbf16>, vector<8x256xf32> -> vector<8x256xf32>
    %7 = arith.addf %3, %6 : vector<8x256xf32>
    %c0_6 = arith.constant 0 : index
    %c0_7 = arith.constant 0 : index
    %8 = vector.load %arg7[%c0_6, %c0_7] : memref<8x256xf32, #tpu.memory_space<vmem>>, vector<8x256xf32>
    tpu.vector_store %arg7[%c0_6, %c0_7], %7 {strides = array<i32>} : memref<8x256xf32, #tpu.memory_space<vmem>>, vector<8x256xf32>,
    %c0_i32_8 = arith.constant 0 : i32
    %9 = arith.cmpi eq, %arg2, %c0_i32_8 : i32
    %10 = arith.extui %9 : i1 to i32
    %c0_i32_9 = arith.constant 0 : i32
    %11 = arith.cmpi ne, %10, %c0_i32_9 : i32
    scf.if %11 {
      %c0_10 = arith.constant 0 : index
      %c0_11 = arith.constant 0 : index
      %12 = vector.load %arg7[%c0_10, %c0_11] : memref<8x256xf32, #tpu.memory_space<vmem>>, vector<8x256xf32>
      %c0_12 = arith.constant 0 : index
      %c0_13 = arith.constant 0 : index
      %13 = vector.load %arg5[%c0_12, %c0_13] : memref<1x256xf32, #tpu.memory_space<vmem>>, vector<1x256xf32>
      %14 = vector.broadcast %13 : vector<1x256xf32> to vector<8x256xf32>
      %15 = arith.addf %12, %14 : vector<8x256xf32>
      %cst_14 = arith.constant 0.000000e+00 : f32
      %16 = vector.broadcast %cst_14 : f32 to vector<8x256xf32>
      %17 = arith.maximumf %15, %16 : vector<8x256xf32>
      %c0_15 = arith.constant 0 : index
      %c0_16 = arith.constant 0 : index
      %18 = vector.load %arg6[%c0_15, %c0_16] : memref<8x256xf32, #tpu.memory_space<vmem>>, vector<8x256xf32>
      tpu.vector_store %arg6[%c0_15, %c0_16], %17 {strides = array<i32>} : memref<8x256xf32, #tpu.memory_space<vmem>>, vector<8x256xf32>,
    } else {
    }
    return
  }
  func.func @transform_0(%arg0: i32, %arg1: i32, %arg2: i32) -> (i32, i32) {
    %c0_i32 = arith.constant 0 : i32
    return %arg0, %arg2 : i32, i32
  }
  func.func @transform_1(%arg0: i32, %arg1: i32, %arg2: i32) -> (i32, i32) {
    %c0_i32 = arith.constant 0 : i32
    return %arg2, %arg1 : i32, i32
  }
  func.func @transform_2(%arg0: i32, %arg1: i32, %arg2: i32) -> (i32, i32) {
    %c0_i32 = arith.constant 0 : i32
    %c0_i32_0 = arith.constant 0 : i32
    return %c0_i32, %arg1 : i32, i32
  }
  func.func @transform_3(%arg0: i32, %arg1: i32, %arg2: i32) -> (i32, i32) {
    %c0_i32 = arith.constant 0 : i32
    return %arg0, %arg1 : i32, i32
  }
}

module attributes {stable_mosaic.version = 11 : i64} {
  func.func @_fused_matmul_kernel(%arg0: i32, %arg1: i32, %arg2: i32, %arg3: memref<8x384xbf16, #tpu.memory_space<vmem>>, %arg4: memref<384x128xbf16, #tpu.memory_space<vmem>>, %arg5: memref<1x128xf32, #tpu.memory_space<vmem>>, %arg6: memref<8x128xf32, #tpu.memory_space<vmem>>, %arg7: memref<8x128xf32, #tpu.memory_space<vmem>>) attributes {dimension_semantics = [#tpu.dimension_semantics<parallel>, #tpu.dimension_semantics<parallel>, #tpu.dimension_semantics<arbitrary>], iteration_bounds = array<i64: 1, 1, 1>, scalar_prefetch = 0 : i64, scratch_operands = 1 : i64, tpu.core_type = #tpu.core_type<tc>, window_params = [{transform_indices = @transform_0, window_bounds = array<i64: 8, 384>}, {transform_indices = @transform_1, window_bounds = array<i64: 384, 128>}, {transform_indices = @transform_2, window_bounds = array<i64: 1, 128>}, {transform_indices = @transform_3, window_bounds = array<i64: 8, 128>}]} {
    %c0_i32 = arith.constant 0 : i32
    %0 = arith.cmpi eq, %arg2, %c0_i32 : i32
    %1 = arith.extui %0 : i1 to i32
    %c0_i32_0 = arith.constant 0 : i32
    %2 = arith.cmpi ne, %1, %c0_i32_0 : i32
    scf.if %2 {
      %cst_10 = arith.constant 0.000000e+00 : f32
      %12 = vector.broadcast %cst_10 : f32 to vector<8x128xf32>
      %c0_11 = arith.constant 0 : index
      %c0_12 = arith.constant 0 : index
      %13 = vector.load %arg7[%c0_11, %c0_12] : memref<8x128xf32, #tpu.memory_space<vmem>>, vector<8x128xf32>
      tpu.vector_store %arg7[%c0_11, %c0_12], %12 {strides = array<i32>} : memref<8x128xf32, #tpu.memory_space<vmem>>, vector<8x128xf32>,
    } else {
    }
    %c0 = arith.constant 0 : index
    %c0_1 = arith.constant 0 : index
    %3 = vector.load %arg7[%c0, %c0_1] : memref<8x128xf32, #tpu.memory_space<vmem>>, vector<8x128xf32>
    %c0_2 = arith.constant 0 : index
    %c0_3 = arith.constant 0 : index
    %4 = vector.load %arg3[%c0_2, %c0_3] : memref<8x384xbf16, #tpu.memory_space<vmem>>, vector<8x384xbf16>
    %c0_4 = arith.constant 0 : index
    %c0_5 = arith.constant 0 : index
    %5 = vector.load %arg4[%c0_4, %c0_5] : memref<384x128xbf16, #tpu.memory_space<vmem>>, vector<384x128xbf16>
    %cst = arith.constant dense<0.000000e+00> : vector<8x128xf32>
    %6 = tpu.matmul %4, %5, %cst {dimension_numbers = #tpu.dot_dimension_numbers<[1], [0], [0], [1], [0, 0, 1, 1], [], []>} : vector<8x384xbf16>, vector<384x128xbf16>, vector<8x128xf32> -> vector<8x128xf32>
    %7 = arith.addf %3, %6 : vector<8x128xf32>
    %c0_6 = arith.constant 0 : index
    %c0_7 = arith.constant 0 : index
    %8 = vector.load %arg7[%c0_6, %c0_7] : memref<8x128xf32, #tpu.memory_space<vmem>>, vector<8x128xf32>
    tpu.vector_store %arg7[%c0_6, %c0_7], %7 {strides = array<i32>} : memref<8x128xf32, #tpu.memory_space<vmem>>, vector<8x128xf32>,
    %c0_i32_8 = arith.constant 0 : i32
    %9 = arith.cmpi eq, %arg2, %c0_i32_8 : i32
    %10 = arith.extui %9 : i1 to i32
    %c0_i32_9 = arith.constant 0 : i32
    %11 = arith.cmpi ne, %10, %c0_i32_9 : i32
    scf.if %11 {
      %c0_10 = arith.constant 0 : index
      %c0_11 = arith.constant 0 : index
      %12 = vector.load %arg7[%c0_10, %c0_11] : memref<8x128xf32, #tpu.memory_space<vmem>>, vector<8x128xf32>
      %c0_12 = arith.constant 0 : index
      %c0_13 = arith.constant 0 : index
      %13 = vector.load %arg5[%c0_12, %c0_13] : memref<1x128xf32, #tpu.memory_space<vmem>>, vector<1x128xf32>
      %14 = vector.broadcast %13 : vector<1x128xf32> to vector<8x128xf32>
      %15 = arith.addf %12, %14 : vector<8x128xf32>
      %cst_14 = arith.constant 0.000000e+00 : f32
      %16 = vector.broadcast %cst_14 : f32 to vector<8x128xf32>
      %17 = arith.maximumf %15, %16 : vector<8x128xf32>
      %c0_15 = arith.constant 0 : index
      %c0_16 = arith.constant 0 : index
      %18 = vector.load %arg6[%c0_15, %c0_16] : memref<8x128xf32, #tpu.memory_space<vmem>>, vector<8x128xf32>
      tpu.vector_store %arg6[%c0_15, %c0_16], %17 {strides = array<i32>} : memref<8x128xf32, #tpu.memory_space<vmem>>, vector<8x128xf32>,
    } else {
    }
    return
  }
  func.func @transform_0(%arg0: i32, %arg1: i32, %arg2: i32) -> (i32, i32) {
    %c0_i32 = arith.constant 0 : i32
    return %arg0, %arg2 : i32, i32
  }
  func.func @transform_1(%arg0: i32, %arg1: i32, %arg2: i32) -> (i32, i32) {
    %c0_i32 = arith.constant 0 : i32
    return %arg2, %arg1 : i32, i32
  }
  func.func @transform_2(%arg0: i32, %arg1: i32, %arg2: i32) -> (i32, i32) {
    %c0_i32 = arith.constant 0 : i32
    %c0_i32_0 = arith.constant 0 : i32
    return %c0_i32, %arg1 : i32, i32
  }
  func.func @transform_3(%arg0: i32, %arg1: i32, %arg2: i32) -> (i32, i32) {
    %c0_i32 = arith.constant 0 : i32
    return %arg0, %arg1 : i32, i32
  }
}

module attributes {stable_mosaic.version = 11 : i64} {
  func.func @_fused_matmul_kernel(%arg0: i32, %arg1: i32, %arg2: i32, %arg3: memref<8x128xbf16, #tpu.memory_space<vmem>>, %arg4: memref<128x256xbf16, #tpu.memory_space<vmem>>, %arg5: memref<1x256xf32, #tpu.memory_space<vmem>>, %arg6: memref<8x256xf32, #tpu.memory_space<vmem>>, %arg7: memref<8x256xf32, #tpu.memory_space<vmem>>) attributes {dimension_semantics = [#tpu.dimension_semantics<parallel>, #tpu.dimension_semantics<parallel>, #tpu.dimension_semantics<arbitrary>], iteration_bounds = array<i64: 1, 1, 1>, scalar_prefetch = 0 : i64, scratch_operands = 1 : i64, tpu.core_type = #tpu.core_type<tc>, window_params = [{transform_indices = @transform_0, window_bounds = array<i64: 8, 128>}, {transform_indices = @transform_1, window_bounds = array<i64: 128, 256>}, {transform_indices = @transform_2, window_bounds = array<i64: 1, 256>}, {transform_indices = @transform_3, window_bounds = array<i64: 8, 256>}]} {
    %c0_i32 = arith.constant 0 : i32
    %0 = arith.cmpi eq, %arg2, %c0_i32 : i32
    %1 = arith.extui %0 : i1 to i32
    %c0_i32_0 = arith.constant 0 : i32
    %2 = arith.cmpi ne, %1, %c0_i32_0 : i32
    scf.if %2 {
      %cst_10 = arith.constant 0.000000e+00 : f32
      %12 = vector.broadcast %cst_10 : f32 to vector<8x256xf32>
      %c0_11 = arith.constant 0 : index
      %c0_12 = arith.constant 0 : index
      %13 = vector.load %arg7[%c0_11, %c0_12] : memref<8x256xf32, #tpu.memory_space<vmem>>, vector<8x256xf32>
      tpu.vector_store %arg7[%c0_11, %c0_12], %12 {strides = array<i32>} : memref<8x256xf32, #tpu.memory_space<vmem>>, vector<8x256xf32>,
    } else {
    }
    %c0 = arith.constant 0 : index
    %c0_1 = arith.constant 0 : index
    %3 = vector.load %arg7[%c0, %c0_1] : memref<8x256xf32, #tpu.memory_space<vmem>>, vector<8x256xf32>
    %c0_2 = arith.constant 0 : index
    %c0_3 = arith.constant 0 : index
    %4 = vector.load %arg3[%c0_2, %c0_3] : memref<8x128xbf16, #tpu.memory_space<vmem>>, vector<8x128xbf16>
    %c0_4 = arith.constant 0 : index
    %c0_5 = arith.constant 0 : index
    %5 = vector.load %arg4[%c0_4, %c0_5] : memref<128x256xbf16, #tpu.memory_space<vmem>>, vector<128x256xbf16>
    %cst = arith.constant dense<0.000000e+00> : vector<8x256xf32>
    %6 = tpu.matmul %4, %5, %cst {dimension_numbers = #tpu.dot_dimension_numbers<[1], [0], [0], [1], [0, 0, 1, 1], [], []>} : vector<8x128xbf16>, vector<128x256xbf16>, vector<8x256xf32> -> vector<8x256xf32>
    %7 = arith.addf %3, %6 : vector<8x256xf32>
    %c0_6 = arith.constant 0 : index
    %c0_7 = arith.constant 0 : index
    %8 = vector.load %arg7[%c0_6, %c0_7] : memref<8x256xf32, #tpu.memory_space<vmem>>, vector<8x256xf32>
    tpu.vector_store %arg7[%c0_6, %c0_7], %7 {strides = array<i32>} : memref<8x256xf32, #tpu.memory_space<vmem>>, vector<8x256xf32>,
    %c0_i32_8 = arith.constant 0 : i32
    %9 = arith.cmpi eq, %arg2, %c0_i32_8 : i32
    %10 = arith.extui %9 : i1 to i32
    %c0_i32_9 = arith.constant 0 : i32
    %11 = arith.cmpi ne, %10, %c0_i32_9 : i32
    scf.if %11 {
      %c0_10 = arith.constant 0 : index
      %c0_11 = arith.constant 0 : index
      %12 = vector.load %arg7[%c0_10, %c0_11] : memref<8x256xf32, #tpu.memory_space<vmem>>, vector<8x256xf32>
      %c0_12 = arith.constant 0 : index
      %c0_13 = arith.constant 0 : index
      %13 = vector.load %arg5[%c0_12, %c0_13] : memref<1x256xf32, #tpu.memory_space<vmem>>, vector<1x256xf32>
      %14 = vector.broadcast %13 : vector<1x256xf32> to vector<8x256xf32>
      %15 = arith.addf %12, %14 : vector<8x256xf32>
      %c0_14 = arith.constant 0 : index
      %c0_15 = arith.constant 0 : index
      %16 = vector.load %arg6[%c0_14, %c0_15] : memref<8x256xf32, #tpu.memory_space<vmem>>, vector<8x256xf32>
      tpu.vector_store %arg6[%c0_14, %c0_15], %15 {strides = array<i32>} : memref<8x256xf32, #tpu.memory_space<vmem>>, vector<8x256xf32>,
    } else {
    }
    return
  }
  func.func @transform_0(%arg0: i32, %arg1: i32, %arg2: i32) -> (i32, i32) {
    %c0_i32 = arith.constant 0 : i32
    return %arg0, %arg2 : i32, i32
  }
  func.func @transform_1(%arg0: i32, %arg1: i32, %arg2: i32) -> (i32, i32) {
    %c0_i32 = arith.constant 0 : i32
    return %arg2, %arg1 : i32, i32
  }
  func.func @transform_2(%arg0: i32, %arg1: i32, %arg2: i32) -> (i32, i32) {
    %c0_i32 = arith.constant 0 : i32
    %c0_i32_0 = arith.constant 0 : i32
    return %c0_i32, %arg1 : i32, i32
  }
  func.func @transform_3(%arg0: i32, %arg1: i32, %arg2: i32) -> (i32, i32) {
    %c0_i32 = arith.constant 0 : i32
    return %arg0, %arg1 : i32, i32
  }
}

</mosaic_0001>

<bundles_post_ra>
// kernel: _lambda_.57
= control target key start
LH: loop header
LB: loop body
LE: loop exit
PB: predicated region body
PF: predicated region fallthrough
CT: control target
= control target key end

     0   :  { %s1457_s12 = smov 0   ;;  %s1459_s13 = smov 0   ;;  %s1650_s0 = inlined_call_operand.vmem [shape: bf16[512,256], index: 0, kind: input, shape index: {}]   ;;  %s1651_s1 = inlined_call_operand.vmem [shape: bf16[256,128], index: 1, kind: input, shape index: {}]   ;;  %s1652_s2 = inlined_call_operand.vmem [shape: f32[1,128], index: 2, kind: input, shape index: {}]   ;;  %s1653_s3 = inlined_call_operand.vmem [shape: f32[512,128], index: 3, kind: output, shape index: {}]  }
   0x1   :  { %s1461_s14 = smov 0  }
   0x2 LB: > { %s32_s15 = sadd.s32 1, %s1431_s13  ;;  %p1139_p0 = scmp.ge.s32.totalorder %s1435_s14, 1  ;;  %s1435_s14 = sphi %s1461_s14, %s13_s14   ;;  %s1431_s13 = sphi %s1459_s13, %s1655_s13   ;;  %s1427_s12 = sphi %s1457_s12, %s1654_s12  }
   0x3   : > { %p34_p1 = scmp.ge.s32.totalorder %s32_s15, 2  ;;  %p191_p2 = scmp.lt.s32.totalorder %s1435_s14, 3 }
   0x5   : > { %s1657_s15 = smov (%p34_p1, %s32_s15), 0  ;;  %p192_p3 = pnand %p1139_p0, %p191_p2 }
   0x6   : > { %s1140_s18 = sshll.u32 (!%p192_p3), %s1427_s12, 5 }
   0x7   : > { %195 = sbr.rel (%p192_p3) target bundleno = 307 (0x133), region = 32  ;;  %p236_p4 = scmp.lt.s32.totalorder (!%p192_p3), %s1140_s18, 63 }
   0xc   : > { %v1349_v0 = vld [vmem:[%s1651_s1 + $0x78] sm:$0xff]   ;;  %v1351_v2 = vld [vmem:[%s1651_s1 + $0x70] sm:$0xff]   ;;  %v1353_v4 = vld [vmem:[%s1651_s1 + $0x68] sm:$0xff]   ;;  %s1659_s18 = smov (!%p236_p4, %s1140_s18), 63 }
   0xd   : > { %v1350_v1 = vld [vmem:[%s1651_s1 + $0x38] sm:$0xff]   ;;  %1197 = vmatprep.subr.bf16.mxu0 %v1349_v0  ;;  %1309 = vmatprep.subr.bf16.mxu1 %v1349_v0  ;;  %v1352_v3 = vld [vmem:[%s1651_s1 + $0x30] sm:$0xff]   ;;  %v1354_v5 = vld [vmem:[%s1651_s1 + $0x28] sm:$0xff]   ;;  %s1196_s6 = sshll.u32 %s1659_s18, 3 }
   0xe   : > { %1198 = vmatpush3.bf16.msra.mxu0 %v1350_v1  ;;  %1317 = vmatpush3.bf16.msra.mxu1 %v1350_v1  ;;  %v1355_v6 = vld [vmem:[%s1651_s1 + $0x60] sm:$0xff]   ;;  %v1357_v8 = vld [vmem:[%s1651_s1 + $0x58] sm:$0xff]   ;;  %s1510_s11 = scalar_lea.vmem %s1650_s0, %s1196_s6  ;;  %v1359_v10 = vld [vmem:[%s1651_s1 + $0x50] sm:$0xff]   ;;  %s1577_s8 = scalar_lea.vmem %s1653_s3, %s1196_s6 }
   0xf   : > { %1199 = vmatprep.subr.bf16.mxu0 %v1351_v2  ;;  %1310 = vmatprep.subr.bf16.mxu1 %v1351_v2  ;;  %v1356_v7 = vld [vmem:[%s1651_s1 + $0x20] sm:$0xff]   ;;  %v1358_v9 = vld [vmem:[%s1651_s1 + $0x18] sm:$0xff]   ;;  %v1360_v13 = vld [vmem:[%s1651_s1 + $0x10] sm:$0xff]  }
  0x10   : > { %v1367_v11 = vld [vmem:[%s1510_s11 + $0x4] ss:$8 sps:$4 sm:$0xff]   ;;  %v1365_v18 = vld [vmem:[%s1510_s11] ss:$8 sps:$4 sm:$0xff]   ;;  %v1371_v20 = vld [vmem:[%s1510_s11 + $0x14] ss:$8 sps:$4 sm:$0xff]  }
  0x11   : > { %v1370_v12 = vld [vmem:[%s1510_s11 + $0x84] ss:$8 sps:$4 sm:$0xff]   ;;  %688 = vmatprep.mubr.bf16.mxu0 %v1367_v11  ;;  %v1368_v19 = vld [vmem:[%s1510_s11 + $0x80] ss:$8 sps:$4 sm:$0xff]   ;;  %v1373_v21 = vld [vmem:[%s1510_s11 + $0x94] ss:$8 sps:$4 sm:$0xff]  }
  0x12   : > { %1200 = vmatpush3.bf16.msra.mxu0 %v1352_v3  ;;  %1318 = vmatpush3.bf16.msra.mxu1 %v1352_v3  ;;  %v1361_v14 = vld [vmem:[%s1651_s1 + $0x48] sm:$0xff]   ;;  %v1363_v16 = vld [vmem:[%s1651_s1 + $0x40] sm:$0xff]   ;;  %v1375_v22 = vld [vmem:[%s1510_s11 + $0x10] ss:$8 sps:$4 sm:$0xff]  }
  0x13   : > { %1201 = vmatprep.subr.bf16.mxu0 %v1353_v4  ;;  %1311 = vmatprep.subr.bf16.mxu1 %v1353_v4  ;;  %v1362_v15 = vld [vmem:[%s1651_s1 + $0x8] sm:$0xff]   ;;  %v1364_v17 = vld [vmem:[%s1651_s1] sm:$0xff]   ;;  %v1376_v23 = vld [vmem:[%s1510_s11 + $0x90] ss:$8 sps:$4 sm:$0xff]  }
  0x14   : > { %752 = vmatprep.mubr.bf16.mxu1 %v1370_v12  ;;  %v1377_v24 = vld [vmem:[%s1510_s11 + $0x24] ss:$8 sps:$4 sm:$0xff]   ;;  %v1381_v26 = vld [vmem:[%s1510_s11 + $0x20] ss:$8 sps:$4 sm:$0xff]   ;;  %v1383_v28 = vld [vmem:[%s1510_s11 + $0x34] ss:$8 sps:$4 sm:$0xff]  }
  0x15   : > { %v1379_v25 = vld [vmem:[%s1510_s11 + $0xa4] ss:$8 sps:$4 sm:$0xff]   ;;  %v1382_v27 = vld [vmem:[%s1510_s11 + $0xa0] ss:$8 sps:$4 sm:$0xff]   ;;  %v1385_v29 = vld [vmem:[%s1510_s11 + $0xb4] ss:$8 sps:$4 sm:$0xff]  }
  0x16   : > { %1202 = vmatpush3.bf16.msra.mxu0 %v1354_v5  ;;  %1319 = vmatpush3.bf16.msra.mxu1 %v1354_v5  ;;  %v1387_v30 = vld [vmem:[%s1510_s11 + $0x30] ss:$8 sps:$4 sm:$0xff]   ;;  %v1389_v32 = vld [vmem:[%s1510_s11 + $0x44] ss:$8 sps:$4 sm:$0xff]   ;;  %v1393_v34 = vld [vmem:[%s1510_s11 + $0x40] ss:$8 sps:$4 sm:$0xff]  }
  0x17   : > { %1203 = vmatprep.subr.bf16.mxu0 %v1355_v6  ;;  %1312 = vmatprep.subr.bf16.mxu1 %v1355_v6  ;;  %v1388_v31 = vld [vmem:[%s1510_s11 + $0xb0] ss:$8 sps:$4 sm:$0xff]   ;;  %v1391_v33 = vld [vmem:[%s1510_s11 + $0xc4] ss:$8 sps:$4 sm:$0xff]   ;;  %v1394_v35 = vld [vmem:[%s1510_s11 + $0xc0] ss:$8 sps:$4 sm:$0xff]  }
  0x18   : > { %v1395_v36 = vld [vmem:[%s1510_s11 + $0x54] ss:$8 sps:$4 sm:$0xff]   ;;  %v1399_v38 = vld [vmem:[%s1510_s11 + $0x50] ss:$8 sps:$4 sm:$0xff]   ;;  %v1401_v40 = vld [vmem:[%s1510_s11 + $0x64] ss:$8 sps:$4 sm:$0xff]  }
  0x19   : > { %v1397_v37 = vld [vmem:[%s1510_s11 + $0xd4] ss:$8 sps:$4 sm:$0xff]   ;;  %v1400_v39 = vld [vmem:[%s1510_s11 + $0xd0] ss:$8 sps:$4 sm:$0xff]   ;;  %v1403_v41 = vld [vmem:[%s1510_s11 + $0xe4] ss:$8 sps:$4 sm:$0xff]  }
  0x1a   : > { %1204 = vmatpush3.bf16.msra.mxu0 %v1356_v7  ;;  %1320 = vmatpush3.bf16.msra.mxu1 %v1356_v7  ;;  %v1405_v42 = vld [vmem:[%s1510_s11 + $0x60] ss:$8 sps:$4 sm:$0xff]   ;;  %v1407_v44 = vld [vmem:[%s1510_s11 + $0x74] ss:$8 sps:$4 sm:$0xff]   ;;  %v1411_v46 = vld [vmem:[%s1510_s11 + $0x70] ss:$8 sps:$4 sm:$0xff]  }
  0x1b   : > { %1205 = vmatprep.subr.bf16.mxu0 %v1357_v8  ;;  %1313 = vmatprep.subr.bf16.mxu1 %v1357_v8  ;;  %v1406_v43 = vld [vmem:[%s1510_s11 + $0xe0] ss:$8 sps:$4 sm:$0xff]   ;;  %v1409_v45 = vld [vmem:[%s1510_s11 + $0xf4] ss:$8 sps:$4 sm:$0xff]   ;;  %v1412_v47 = vld [vmem:[%s1510_s11 + $0xf0] ss:$8 sps:$4 sm:$0xff]  }
  0x1c   : > { %v1568_v51 = vld [vmem:[%s1652_s2] ss:$0 sm:$0xff] }
  0x1e   : > { %1206 = vmatpush3.bf16.msra.mxu0 %v1358_v9  ;;  %1321 = vmatpush3.bf16.msra.mxu1 %v1358_v9 }
  0x1f   : > { %1207 = vmatprep.subr.bf16.mxu0 %v1359_v10  ;;  %1314 = vmatprep.subr.bf16.mxu1 %v1359_v10 }
  0x22   : > { %1208 = vmatpush3.bf16.msra.mxu0 %v1360_v13  ;;  %1322 = vmatpush3.bf16.msra.mxu1 %v1360_v13 }
  0x23   : > { %1209 = vmatprep.subr.bf16.mxu0 %v1361_v14  ;;  %1315 = vmatprep.subr.bf16.mxu1 %v1361_v14 }
  0x26   : > { %1210 = vmatpush3.bf16.msra.mxu0 %v1362_v15  ;;  %1323 = vmatpush3.bf16.msra.mxu1 %v1362_v15 }
  0x27   : > { %1211 = vmatprep.subr.bf16.mxu0 %v1363_v16  ;;  %1316 = vmatprep.subr.bf16.mxu1 %v1363_v16 }
  0x2a   : > { %1212 = vmatpush3.bf16.msra.mxu0 %v1364_v17  ;;  %1324 = vmatpush3.bf16.msra.mxu1 %v1364_v17 }
  0x2d   : > { %689 = vmatmul.mubr.bf16.vlgmr.msra.gmra.mxu0 %v1365_v18  ;;  %753 = vmatmul.mubr.bf16.vlgmr.msra.gmra.mxu1 %v1368_v19 }
  0x2e   : > { %696 = vmatprep.mubr.bf16.mxu0 %v1371_v20  ;;  %760 = vmatprep.mubr.bf16.mxu1 %v1373_v21 }
  0x35   : > { %697 = vmatmul.mubr.bf16.gmra.mxu0 %v1375_v22  ;;  %761 = vmatmul.mubr.bf16.gmra.mxu1 %v1376_v23 }
  0x36   : > { %704 = vmatprep.mubr.bf16.mxu0 %v1377_v24  ;;  %768 = vmatprep.mubr.bf16.mxu1 %v1379_v25 }
  0x3d   : > { %705 = vmatmul.mubr.bf16.gmra.mxu0 %v1381_v26  ;;  %769 = vmatmul.mubr.bf16.gmra.mxu1 %v1382_v27 }
  0x3e   : > { %712 = vmatprep.mubr.bf16.mxu0 %v1383_v28  ;;  %776 = vmatprep.mubr.bf16.mxu1 %v1385_v29 }
  0x45   : > { %713 = vmatmul.mubr.bf16.gmra.mxu0 %v1387_v30  ;;  %777 = vmatmul.mubr.bf16.gmra.mxu1 %v1388_v31 }
  0x46   : > { %720 = vmatprep.mubr.bf16.mxu0 %v1389_v32  ;;  %784 = vmatprep.mubr.bf16.mxu1 %v1391_v33 }
  0x4d   : > { %721 = vmatmul.mubr.bf16.gmra.mxu0 %v1393_v34  ;;  %785 = vmatmul.mubr.bf16.gmra.mxu1 %v1394_v35 }
  0x4e   : > { %728 = vmatprep.mubr.bf16.mxu0 %v1395_v36  ;;  %792 = vmatprep.mubr.bf16.mxu1 %v1397_v37 }
  0x55   : > { %729 = vmatmul.mubr.bf16.gmra.mxu0 %v1399_v38  ;;  %793 = vmatmul.mubr.bf16.gmra.mxu1 %v1400_v39 }
  0x56   : > { %736 = vmatprep.mubr.bf16.mxu0 %v1401_v40  ;;  %800 = vmatprep.mubr.bf16.mxu1 %v1403_v41 }
  0x5d   : > { %737 = vmatmul.mubr.bf16.gmra.mxu0 %v1405_v42  ;;  %801 = vmatmul.mubr.bf16.gmra.mxu1 %v1406_v43 }
  0x5e   : > { %744 = vmatprep.mubr.bf16.mxu0 %v1407_v44  ;;  %808 = vmatprep.mubr.bf16.mxu1 %v1409_v45 }
  0x65   : > { %745 = vmatmul.mubr.bf16.gmra.mxu0 %v1411_v46  ;;  %809 = vmatmul.mubr.bf16.gmra.mxu1 %v1412_v47 }
  0xed   : > { %v1213_v48 = vpop.f32.mrf.mxu0  ;;  %v1261_v49 = vpop.f32.mrf.mxu1 }
  0xef   : > { %v1214_v50 = vpop.f32.mrf.mxu0  ;;  %v1262_v52 = vpop.f32.mrf.mxu1 }
  0xf0   : > { %v1215_v53 = vadd.f32 %v1214_v50, %v1213_v48  ;;  %v1263_v54 = vadd.f32 %v1262_v52, %v1261_v49 }
  0xf1   : > { %v1216_v55 = vpop.f32.mrf.mxu0  ;;  %v1264_v56 = vpop.f32.mrf.mxu1 }
  0xf2   : > { %v923_v57 = vadd.f32 %v1215_v53, %v1568_v51  ;;  %v939_v58 = vadd.f32 %v1263_v54, %v1568_v51 }
  0xf3   : > { %v1217_v59 = vpop.f32.mrf.mxu0  ;;  %v1265_v60 = vpop.f32.mrf.mxu1 }
  0xf4   : > { %v955_v61 = vmax.f32 %v923_v57, 0.0  ;;  %v971_v62 = vmax.f32 %v939_v58, 0.0  ;;  %v1218_v63 = vadd.f32 %v1217_v59, %v1216_v55  ;;  %v1266_v0 = vadd.f32 %v1265_v60, %v1264_v56 }
  0xf5   : > { %v1219_v1 = vpop.f32.mrf.mxu0  ;;  %v1267_v2 = vpop.f32.mrf.mxu1 }
  0xf6   : > { %987 = vst [vmem:[%s1577_s8] sm:$0xff] %v955_v61  ;;  %1003 = vst [vmem:[%s1577_s8 + $0x80] sm:$0xff] %v971_v62  ;;  %v924_v3 = vadd.f32 %v1218_v63, %v1568_v51  ;;  %v940_v4 = vadd.f32 %v1266_v0, %v1568_v51 }
  0xf7   : > { %v1220_v5 = vpop.f32.mrf.mxu0  ;;  %v1268_v6 = vpop.f32.mrf.mxu1 }
  0xf8   : > { %v956_v7 = vmax.f32 %v924_v3, 0.0  ;;  %v972_v8 = vmax.f32 %v940_v4, 0.0  ;;  %v1221_v9 = vadd.f32 %v1220_v5, %v1219_v1  ;;  %v1269_v10 = vadd.f32 %v1268_v6, %v1267_v2 }
  0xf9   : > { %v1222_v11 = vpop.f32.mrf.mxu0  ;;  %v1270_v12 = vpop.f32.mrf.mxu1 }
  0xfa   : > { %988 = vst [vmem:[%s1577_s8 + $0x8] sm:$0xff] %v956_v7  ;;  %1004 = vst [vmem:[%s1577_s8 + $0x88] sm:$0xff] %v972_v8  ;;  %v925_v13 = vadd.f32 %v1221_v9, %v1568_v51  ;;  %v941_v14 = vadd.f32 %v1269_v10, %v1568_v51 }
  0xfb   : > { %v1223_v15 = vpop.f32.mrf.mxu0  ;;  %v1271_v16 = vpop.f32.mrf.mxu1 }
  0xfc   : > { %v957_v17 = vmax.f32 %v925_v13, 0.0  ;;  %v973_v18 = vmax.f32 %v941_v14, 0.0  ;;  %v1224_v19 = vadd.f32 %v1223_v15, %v1222_v11  ;;  %v1272_v20 = vadd.f32 %v1271_v16, %v1270_v12 }
  0xfd   : > { %v1225_v21 = vpop.f32.mrf.mxu0  ;;  %v1273_v22 = vpop.f32.mrf.mxu1 }
  0xfe   : > { %989 = vst [vmem:[%s1577_s8 + $0x10] sm:$0xff] %v957_v17  ;;  %1005 = vst [vmem:[%s1577_s8 + $0x90] sm:$0xff] %v973_v18  ;;  %v926_v23 = vadd.f32 %v1224_v19, %v1568_v51  ;;  %v942_v24 = vadd.f32 %v1272_v20, %v1568_v51 }
  0xff   : > { %v1226_v25 = vpop.f32.mrf.mxu0  ;;  %v1274_v26 = vpop.f32.mrf.mxu1 }
 0x100   : > { %v958_v27 = vmax.f32 %v926_v23, 0.0  ;;  %v974_v28 = vmax.f32 %v942_v24, 0.0  ;;  %v1227_v29 = vadd.f32 %v1226_v25, %v1225_v21  ;;  %v1275_v30 = vadd.f32 %v1274_v26, %v1273_v22 }
 0x101   : > { %v1228_v31 = vpop.f32.mrf.mxu0  ;;  %v1276_v32 = vpop.f32.mrf.mxu1 }
 0x102   : > { %990 = vst [vmem:[%s1577_s8 + $0x18] sm:$0xff] %v958_v27  ;;  %1006 = vst [vmem:[%s1577_s8 + $0x98] sm:$0xff] %v974_v28  ;;  %v927_v33 = vadd.f32 %v1227_v29, %v1568_v51  ;;  %v943_v34 = vadd.f32 %v1275_v30, %v1568_v51 }
 0x103   : > { %v1229_v35 = vpop.f32.mrf.mxu0  ;;  %v1277_v36 = vpop.f32.mrf.mxu1 }
 0x104   : > { %v959_v37 = vmax.f32 %v927_v33, 0.0  ;;  %v975_v38 = vmax.f32 %v943_v34, 0.0  ;;  %v1230_v39 = vadd.f32 %v1229_v35, %v1228_v31  ;;  %v1278_v40 = vadd.f32 %v1277_v36, %v1276_v32 }
 0x105   : > { %v1231_v41 = vpop.f32.mrf.mxu0  ;;  %v1279_v42 = vpop.f32.mrf.mxu1 }
 0x106   : > { %991 = vst [vmem:[%s1577_s8 + $0x20] sm:$0xff] %v959_v37  ;;  %1007 = vst [vmem:[%s1577_s8 + $0xa0] sm:$0xff] %v975_v38  ;;  %v928_v43 = vadd.f32 %v1230_v39, %v1568_v51  ;;  %v944_v44 = vadd.f32 %v1278_v40, %v1568_v51 }
 0x107   : > { %v1232_v45 = vpop.f32.mrf.mxu0  ;;  %v1280_v46 = vpop.f32.mrf.mxu1 }
 0x108   : > { %v960_v47 = vmax.f32 %v928_v43, 0.0  ;;  %v976_v48 = vmax.f32 %v944_v44, 0.0  ;;  %v1233_v49 = vadd.f32 %v1232_v45, %v1231_v41  ;;  %v1281_v50 = vadd.f32 %v1280_v46, %v1279_v42 }
 0x109   : > { %v1234_v52 = vpop.f32.mrf.mxu0  ;;  %v1282_v53 = vpop.f32.mrf.mxu1 }
 0x10a   : > { %992 = vst [vmem:[%s1577_s8 + $0x28] sm:$0xff] %v960_v47  ;;  %1008 = vst [vmem:[%s1577_s8 + $0xa8] sm:$0xff] %v976_v48  ;;  %v929_v54 = vadd.f32 %v1233_v49, %v1568_v51  ;;  %v945_v55 = vadd.f32 %v1281_v50, %v1568_v51 }
 0x10b   : > { %v1235_v56 = vpop.f32.mrf.mxu0  ;;  %v1283_v57 = vpop.f32.mrf.mxu1 }
 0x10c   : > { %v961_v58 = vmax.f32 %v929_v54, 0.0  ;;  %v977_v59 = vmax.f32 %v945_v55, 0.0  ;;  %v1236_v60 = vadd.f32 %v1235_v56, %v1234_v52  ;;  %v1284_v61 = vadd.f32 %v1283_v57, %v1282_v53 }
 0x10d   : > { %v1237_v62 = vpop.f32.mrf.mxu0  ;;  %v1285_v63 = vpop.f32.mrf.mxu1 }
 0x10e   : > { %993 = vst [vmem:[%s1577_s8 + $0x30] sm:$0xff] %v961_v58  ;;  %1009 = vst [vmem:[%s1577_s8 + $0xb0] sm:$0xff] %v977_v59  ;;  %v930_v0 = vadd.f32 %v1236_v60, %v1568_v51  ;;  %v946_v1 = vadd.f32 %v1284_v61, %v1568_v51 }
 0x10f   : > { %v1238_v2 = vpop.f32.mrf.mxu0  ;;  %v1286_v3 = vpop.f32.mrf.mxu1 }
 0x110   : > { %v962_v4 = vmax.f32 %v930_v0, 0.0  ;;  %v978_v5 = vmax.f32 %v946_v1, 0.0  ;;  %v1239_v6 = vadd.f32 %v1238_v2, %v1237_v62  ;;  %v1287_v7 = vadd.f32 %v1286_v3, %v1285_v63 }
 0x111   : > { %v1240_v8 = vpop.f32.mrf.mxu0  ;;  %v1288_v9 = vpop.f32.mrf.mxu1 }
 0x112   : > { %994 = vst [vmem:[%s1577_s8 + $0x38] sm:$0xff] %v962_v4  ;;  %1010 = vst [vmem:[%s1577_s8 + $0xb8] sm:$0xff] %v978_v5  ;;  %v931_v10 = vadd.f32 %v1239_v6, %v1568_v51  ;;  %v947_v11 = vadd.f32 %v1287_v7, %v1568_v51 }
 0x113   : > { %v1241_v12 = vpop.f32.mrf.mxu0  ;;  %v1289_v13 = vpop.f32.mrf.mxu1 }
 0x114   : > { %v963_v14 = vmax.f32 %v931_v10, 0.0  ;;  %v979_v15 = vmax.f32 %v947_v11, 0.0  ;;  %v1242_v16 = vadd.f32 %v1241_v12, %v1240_v8  ;;  %v1290_v17 = vadd.f32 %v1289_v13, %v1288_v9 }
 0x115   : > { %v1243_v18 = vpop.f32.mrf.mxu0  ;;  %v1291_v19 = vpop.f32.mrf.mxu1 }
 0x116   : > { %995 = vst [vmem:[%s1577_s8 + $0x40] sm:$0xff] %v963_v14  ;;  %1011 = vst [vmem:[%s1577_s8 + $0xc0] sm:$0xff] %v979_v15  ;;  %v932_v20 = vadd.f32 %v1242_v16, %v1568_v51  ;;  %v948_v21 = vadd.f32 %v1290_v17, %v1568_v51 }
 0x117   : > { %v1244_v22 = vpop.f32.mrf.mxu0  ;;  %v1292_v23 = vpop.f32.mrf.mxu1 }
 0x118   : > { %v964_v24 = vmax.f32 %v932_v20, 0.0  ;;  %v980_v25 = vmax.f32 %v948_v21, 0.0  ;;  %v1245_v26 = vadd.f32 %v1244_v22, %v1243_v18  ;;  %v1293_v27 = vadd.f32 %v1292_v23, %v1291_v19 }
 0x119   : > { %v1246_v28 = vpop.f32.mrf.mxu0  ;;  %v1294_v29 = vpop.f32.mrf.mxu1 }
 0x11a   : > { %996 = vst [vmem:[%s1577_s8 + $0x48] sm:$0xff] %v964_v24  ;;  %1012 = vst [vmem:[%s1577_s8 + $0xc8] sm:$0xff] %v980_v25  ;;  %v933_v30 = vadd.f32 %v1245_v26, %v1568_v51  ;;  %v949_v31 = vadd.f32 %v1293_v27, %v1568_v51 }
 0x11b   : > { %v1247_v32 = vpop.f32.mrf.mxu0  ;;  %v1295_v33 = vpop.f32.mrf.mxu1 }
 0x11c   : > { %v965_v34 = vmax.f32 %v933_v30, 0.0  ;;  %v981_v35 = vmax.f32 %v949_v31, 0.0  ;;  %v1248_v36 = vadd.f32 %v1247_v32, %v1246_v28  ;;  %v1296_v37 = vadd.f32 %v1295_v33, %v1294_v29 }
 0x11d   : > { %v1249_v38 = vpop.f32.mrf.mxu0  ;;  %v1297_v39 = vpop.f32.mrf.mxu1 }
 0x11e   : > { %997 = vst [vmem:[%s1577_s8 + $0x50] sm:$0xff] %v965_v34  ;;  %1013 = vst [vmem:[%s1577_s8 + $0xd0] sm:$0xff] %v981_v35  ;;  %v934_v40 = vadd.f32 %v1248_v36, %v1568_v51  ;;  %v950_v41 = vadd.f32 %v1296_v37, %v1568_v51 }
 0x11f   : > { %v1250_v42 = vpop.f32.mrf.mxu0  ;;  %v1298_v43 = vpop.f32.mrf.mxu1 }
 0x120   : > { %v966_v44 = vmax.f32 %v934_v40, 0.0  ;;  %v982_v45 = vmax.f32 %v950_v41, 0.0  ;;  %v1251_v46 = vadd.f32 %v1250_v42, %v1249_v38  ;;  %v1299_v47 = vadd.f32 %v1298_v43, %v1297_v39 }
 0x121   : > { %v1252_v48 = vpop.f32.mrf.mxu0  ;;  %v1300_v49 = vpop.f32.mrf.mxu1 }
 0x122   : > { %998 = vst [vmem:[%s1577_s8 + $0x58] sm:$0xff] %v966_v44  ;;  %1014 = vst [vmem:[%s1577_s8 + $0xd8] sm:$0xff] %v982_v45  ;;  %v935_v50 = vadd.f32 %v1251_v46, %v1568_v51  ;;  %v951_v52 = vadd.f32 %v1299_v47, %v1568_v51 }
 0x123   : > { %v1253_v53 = vpop.f32.mrf.mxu0  ;;  %v1301_v54 = vpop.f32.mrf.mxu1 }
 0x124   : > { %v967_v55 = vmax.f32 %v935_v50, 0.0  ;;  %v983_v56 = vmax.f32 %v951_v52, 0.0  ;;  %v1254_v57 = vadd.f32 %v1253_v53, %v1252_v48  ;;  %v1302_v58 = vadd.f32 %v1301_v54, %v1300_v49 }
 0x125   : > { %v1255_v59 = vpop.f32.mrf.mxu0  ;;  %v1303_v60 = vpop.f32.mrf.mxu1 }
 0x126   : > { %999 = vst [vmem:[%s1577_s8 + $0x60] sm:$0xff] %v967_v55  ;;  %1015 = vst [vmem:[%s1577_s8 + $0xe0] sm:$0xff] %v983_v56  ;;  %v936_v61 = vadd.f32 %v1254_v57, %v1568_v51  ;;  %v952_v62 = vadd.f32 %v1302_v58, %v1568_v51 }
 0x127   : > { %v1256_v63 = vpop.f32.mrf.mxu0  ;;  %v1304_v0 = vpop.f32.mrf.mxu1 }
 0x128   : > { %v968_v1 = vmax.f32 %v936_v61, 0.0  ;;  %v984_v2 = vmax.f32 %v952_v62, 0.0  ;;  %v1257_v3 = vadd.f32 %v1256_v63, %v1255_v59  ;;  %v1305_v4 = vadd.f32 %v1304_v0, %v1303_v60 }
 0x129   : > { %v1258_v5 = vpop.f32.mrf.mxu0  ;;  %v1306_v6 = vpop.f32.mrf.mxu1 }
 0x12a   : > { %1000 = vst [vmem:[%s1577_s8 + $0x68] sm:$0xff] %v968_v1  ;;  %1016 = vst [vmem:[%s1577_s8 + $0xe8] sm:$0xff] %v984_v2  ;;  %v937_v7 = vadd.f32 %v1257_v3, %v1568_v51  ;;  %v953_v8 = vadd.f32 %v1305_v4, %v1568_v51 }
 0x12b   : > { %v1259_v9 = vpop.f32.mrf.mxu0  ;;  %v1307_v10 = vpop.f32.mrf.mxu1 }
 0x12c   : > { %v969_v11 = vmax.f32 %v937_v7, 0.0  ;;  %v985_v12 = vmax.f32 %v953_v8, 0.0  ;;  %v1260_v13 = vadd.f32 %v1259_v9, %v1258_v5  ;;  %v1308_v14 = vadd.f32 %v1307_v10, %v1306_v6 }
 0x12e   : > { %1001 = vst [vmem:[%s1577_s8 + $0x70] sm:$0xff] %v969_v11  ;;  %1017 = vst [vmem:[%s1577_s8 + $0xf0] sm:$0xff] %v985_v12  ;;  %v938_v15 = vadd.f32 %v1260_v13, %v1568_v51  ;;  %v954_v16 = vadd.f32 %v1308_v14, %v1568_v51 }
 0x130   : > { %v970_v17 = vmax.f32 %v938_v15, 0.0  ;;  %v986_v18 = vmax.f32 %v954_v16, 0.0 }
 0x132   : > { %1002 = vst [vmem:[%s1577_s8 + $0x78] sm:$0xff] %v970_v17  ;;  %1018 = vst [vmem:[%s1577_s8 + $0xf8] sm:$0xff] %v986_v18 }
 0x133 PF: > { %s13_s14 = sadd.s32 1, %s1435_s14   ;;  %s1654_s12 = smov %s1431_s13 }
 0x134   : > { %p10_p5 = scmp.ge.s32.totalorder %s13_s14, 4   ;;  %s1655_s13 = smov %s1657_s15 }
 0x136   :  { %12 = sbr.rel (!%p10_p5) target bundleno = 2 (0x2), region = 76 }

// kernel: _lambda_.58
= control target key start
LH: loop header
LB: loop body
LE: loop exit
PB: predicated region body
PF: predicated region fallthrough
CT: control target
= control target key end

     0   :  { %s602_s1 = inlined_call_operand.vmem [shape: bf16[128,128], index: 1, kind: input, shape index: {}]   ;;  %s603_s0 = inlined_call_operand.vmem [shape: bf16[128,128], index: 0, kind: input, shape index: {}]   ;;  %s604_s2 = inlined_call_operand.vmem [shape: f32[1,128], index: 2, kind: input, shape index: {}]   ;;  %s605_s3 = inlined_call_operand.vmem [shape: f32[128,128], index: 3, kind: output, shape index: {}]  }
   0x1   :  { %v467_v0 = vld [vmem:[%s602_s1 + $0x38] sm:$0xff]   ;;  %v468_v1 = vld [vmem:[%s602_s1 + $0x30] sm:$0xff]   ;;  %v469_v2 = vld [vmem:[%s602_s1 + $0x28] sm:$0xff]  }
   0x2   :  { %419 = vmatprep.subr.bf16.mxu0 %v467_v0  ;;  %451 = vmatprep.subr.bf16.mxu1 %v467_v0  ;;  %v470_v3 = vld [vmem:[%s602_s1 + $0x20] sm:$0xff]   ;;  %v471_v6 = vld [vmem:[%s602_s1 + $0x18] sm:$0xff]   ;;  %v472_v7 = vld [vmem:[%s602_s1 + $0x10] sm:$0xff]  }
   0x3   :  { %420 = vmatpush3.bf16.msra.mxu0 %v467_v0  ;;  %459 = vmatpush3.bf16.msra.mxu1 %v467_v0  ;;  %v475_v4 = vld [vmem:[%s603_s0] sm:$0xff]   ;;  %v473_v8 = vld [vmem:[%s602_s1 + $0x8] sm:$0xff]   ;;  %v479_v12 = vld [vmem:[%s603_s0 + $0x10] sm:$0xff]  }
   0x4   :  { %421 = vmatprep.subr.bf16.mxu0 %v468_v1  ;;  %452 = vmatprep.subr.bf16.mxu1 %v468_v1  ;;  %v476_v5 = vld [vmem:[%s603_s0 + $0x20] sm:$0xff]   ;;  %v477_v10 = vld [vmem:[%s603_s0 + $0x8] sm:$0xff]   ;;  %v480_v13 = vld [vmem:[%s603_s0 + $0x30] sm:$0xff]  }
   0x5   :  { %435 = vmatprep.mubr.bf16.mxu0 %v475_v4  ;;  %443 = vmatprep.mubr.bf16.mxu1 %v476_v5  ;;  %v474_v9 = vld [vmem:[%s602_s1] sm:$0xff]   ;;  %v478_v11 = vld [vmem:[%s603_s0 + $0x28] sm:$0xff]   ;;  %v481_v14 = vld [vmem:[%s603_s0 + $0x18] sm:$0xff]  }
   0x6   :  { %v482_v15 = vld [vmem:[%s603_s0 + $0x38] sm:$0xff]   ;;  %v402_v16 = vld [vmem:[%s604_s2] ss:$0 sm:$0xff] }
   0x7   :  { %422 = vmatpush3.bf16.msra.mxu0 %v468_v1  ;;  %460 = vmatpush3.bf16.msra.mxu1 %v468_v1 }
   0x8   :  { %423 = vmatprep.subr.bf16.mxu0 %v469_v2  ;;  %453 = vmatprep.subr.bf16.mxu1 %v469_v2 }
   0xb   :  { %424 = vmatpush3.bf16.msra.mxu0 %v469_v2  ;;  %461 = vmatpush3.bf16.msra.mxu1 %v469_v2 }
   0xc   :  { %425 = vmatprep.subr.bf16.mxu0 %v470_v3  ;;  %454 = vmatprep.subr.bf16.mxu1 %v470_v3 }
   0xf   :  { %426 = vmatpush3.bf16.msra.mxu0 %v470_v3  ;;  %462 = vmatpush3.bf16.msra.mxu1 %v470_v3 }
  0x10   :  { %427 = vmatprep.subr.bf16.mxu0 %v471_v6  ;;  %455 = vmatprep.subr.bf16.mxu1 %v471_v6 }
  0x13   :  { %428 = vmatpush3.bf16.msra.mxu0 %v471_v6  ;;  %463 = vmatpush3.bf16.msra.mxu1 %v471_v6 }
  0x14   :  { %429 = vmatprep.subr.bf16.mxu0 %v472_v7  ;;  %456 = vmatprep.subr.bf16.mxu1 %v472_v7 }
  0x17   :  { %430 = vmatpush3.bf16.msra.mxu0 %v472_v7  ;;  %464 = vmatpush3.bf16.msra.mxu1 %v472_v7 }
  0x18   :  { %431 = vmatprep.subr.bf16.mxu0 %v473_v8  ;;  %457 = vmatprep.subr.bf16.mxu1 %v473_v8 }
  0x1b   :  { %432 = vmatpush3.bf16.msra.mxu0 %v473_v8  ;;  %465 = vmatpush3.bf16.msra.mxu1 %v473_v8 }
  0x1c   :  { %433 = vmatprep.subr.bf16.mxu0 %v474_v9  ;;  %458 = vmatprep.subr.bf16.mxu1 %v474_v9 }
  0x1f   :  { %434 = vmatpush3.bf16.msra.mxu0 %v474_v9  ;;  %466 = vmatpush3.bf16.msra.mxu1 %v474_v9 }
  0x22   :  { %436 = vmatmul.mubr.bf16.vlgmr.msra.gmra.mxu0 %v477_v10  ;;  %444 = vmatmul.mubr.bf16.vlgmr.msra.gmra.mxu1 %v478_v11 }
  0x23   :  { %439 = vmatprep.mubr.bf16.mxu0 %v479_v12  ;;  %447 = vmatprep.mubr.bf16.mxu1 %v480_v13 }
  0x2a   :  { %440 = vmatmul.mubr.bf16.gmra.mxu0 %v481_v14  ;;  %448 = vmatmul.mubr.bf16.gmra.mxu1 %v482_v15 }
  0xe2   :  { %v437_v17 = vpop.f32.mrf.mxu0  ;;  %v445_v18 = vpop.f32.mrf.mxu1 }
  0xe3   :  { %v336_v19 = vadd.f32 %v437_v17, %v402_v16  ;;  %v344_v20 = vadd.f32 %v445_v18, %v402_v16 }
  0xe4   :  { %v213_v21 = vpop.f32.mrf.mxu0  ;;  %v245_v22 = vpop.f32.mrf.mxu1 }
  0xe5   :  { %v352_v23 = vmax.f32 %v336_v19, 0.0  ;;  %v360_v24 = vmax.f32 %v344_v20, 0.0  ;;  %v334_v25 = vadd.f32 %v402_v16, %v213_v21  ;;  %v342_v26 = vadd.f32 %v402_v16, %v245_v22 }
  0xe6   :  { %v438_v27 = vpop.f32.mrf.mxu0  ;;  %v446_v28 = vpop.f32.mrf.mxu1 }
  0xe7   :  { %368 = vst [vmem:[%s605_s3 + $0x10] sm:$0xff] %v352_v23  ;;  %376 = vst [vmem:[%s605_s3 + $0x50] sm:$0xff] %v360_v24  ;;  %v350_v29 = vmax.f32 %v334_v25, 0.0  ;;  %v358_v30 = vmax.f32 %v342_v26, 0.0  ;;  %v337_v31 = vadd.f32 %v438_v27, %v402_v16  ;;  %v345_v32 = vadd.f32 %v446_v28, %v402_v16 }
  0xe8   :  { %v216_v33 = vpop.f32.mrf.mxu0  ;;  %v248_v34 = vpop.f32.mrf.mxu1 }
  0xe9   :  { %366 = vst [vmem:[%s605_s3] sm:$0xff] %v350_v29  ;;  %374 = vst [vmem:[%s605_s3 + $0x40] sm:$0xff] %v358_v30  ;;  %v353_v35 = vmax.f32 %v337_v31, 0.0  ;;  %v361_v36 = vmax.f32 %v345_v32, 0.0  ;;  %v335_v37 = vadd.f32 %v402_v16, %v216_v33  ;;  %v343_v38 = vadd.f32 %v402_v16, %v248_v34 }
  0xea   :  { %v441_v39 = vpop.f32.mrf.mxu0  ;;  %v449_v40 = vpop.f32.mrf.mxu1 }
  0xeb   :  { %369 = vst [vmem:[%s605_s3 + $0x18] sm:$0xff] %v353_v35  ;;  %377 = vst [vmem:[%s605_s3 + $0x58] sm:$0xff] %v361_v36  ;;  %v351_v41 = vmax.f32 %v335_v37, 0.0  ;;  %v359_v42 = vmax.f32 %v343_v38, 0.0  ;;  %v340_v43 = vadd.f32 %v441_v39, %v402_v16  ;;  %v348_v44 = vadd.f32 %v449_v40, %v402_v16 }
  0xec   :  { %v229_v45 = vpop.f32.mrf.mxu0  ;;  %v261_v46 = vpop.f32.mrf.mxu1 }
  0xed   :  { %367 = vst [vmem:[%s605_s3 + $0x8] sm:$0xff] %v351_v41  ;;  %375 = vst [vmem:[%s605_s3 + $0x48] sm:$0xff] %v359_v42  ;;  %v356_v47 = vmax.f32 %v340_v43, 0.0  ;;  %v364_v48 = vmax.f32 %v348_v44, 0.0  ;;  %v338_v49 = vadd.f32 %v402_v16, %v229_v45  ;;  %v346_v50 = vadd.f32 %v402_v16, %v261_v46 }
  0xee   :  { %v442_v51 = vpop.f32.mrf.mxu0  ;;  %v450_v52 = vpop.f32.mrf.mxu1 }
  0xef   :  { %372 = vst [vmem:[%s605_s3 + $0x30] sm:$0xff] %v356_v47  ;;  %380 = vst [vmem:[%s605_s3 + $0x70] sm:$0xff] %v364_v48  ;;  %v354_v53 = vmax.f32 %v338_v49, 0.0  ;;  %v362_v54 = vmax.f32 %v346_v50, 0.0  ;;  %v341_v55 = vadd.f32 %v442_v51, %v402_v16  ;;  %v349_v56 = vadd.f32 %v450_v52, %v402_v16 }
  0xf0   :  { %v232_v57 = vpop.f32.mrf.mxu0  ;;  %v264_v58 = vpop.f32.mrf.mxu1 }
  0xf1   :  { %370 = vst [vmem:[%s605_s3 + $0x20] sm:$0xff] %v354_v53  ;;  %378 = vst [vmem:[%s605_s3 + $0x60] sm:$0xff] %v362_v54  ;;  %v357_v59 = vmax.f32 %v341_v55, 0.0  ;;  %v365_v60 = vmax.f32 %v349_v56, 0.0  ;;  %v339_v61 = vadd.f32 %v402_v16, %v232_v57  ;;  %v347_v62 = vadd.f32 %v402_v16, %v264_v58 }
  0xf3   :  { %373 = vst [vmem:[%s605_s3 + $0x38] sm:$0xff] %v357_v59  ;;  %381 = vst [vmem:[%s605_s3 + $0x78] sm:$0xff] %v365_v60  ;;  %v355_v63 = vmax.f32 %v339_v61, 0.0  ;;  %v363_v0 = vmax.f32 %v347_v62, 0.0 }
  0xf5   :  { %371 = vst [vmem:[%s605_s3 + $0x28] sm:$0xff] %v355_v63  ;;  %379 = vst [vmem:[%s605_s3 + $0x68] sm:$0xff] %v363_v0 }

// kernel: _lambda_.61
= control target key start
LH: loop header
LB: loop body
LE: loop exit
PB: predicated region body
PF: predicated region fallthrough
CT: control target
= control target key end

     0   :  { %s586_s1 = inlined_call_operand.vmem [shape: bf16[128,128], index: 1, kind: input, shape index: {}]   ;;  %s587_s0 = inlined_call_operand.vmem [shape: bf16[128,128], index: 0, kind: input, shape index: {}]   ;;  %s588_s2 = inlined_call_operand.vmem [shape: f32[1,128], index: 2, kind: input, shape index: {}]   ;;  %s589_s3 = inlined_call_operand.vmem [shape: f32[128,128], index: 3, kind: output, shape index: {}]  }
   0x1   :  { %v451_v0 = vld [vmem:[%s586_s1 + $0x38] sm:$0xff]   ;;  %v452_v1 = vld [vmem:[%s586_s1 + $0x30] sm:$0xff]   ;;  %v453_v2 = vld [vmem:[%s586_s1 + $0x28] sm:$0xff]  }
   0x2   :  { %403 = vmatprep.subr.bf16.mxu0 %v451_v0  ;;  %435 = vmatprep.subr.bf16.mxu1 %v451_v0  ;;  %v454_v3 = vld [vmem:[%s586_s1 + $0x20] sm:$0xff]   ;;  %v455_v6 = vld [vmem:[%s586_s1 + $0x18] sm:$0xff]   ;;  %v456_v7 = vld [vmem:[%s586_s1 + $0x10] sm:$0xff]  }
   0x3   :  { %404 = vmatpush3.bf16.msra.mxu0 %v451_v0  ;;  %443 = vmatpush3.bf16.msra.mxu1 %v451_v0  ;;  %v459_v4 = vld [vmem:[%s587_s0] sm:$0xff]   ;;  %v457_v8 = vld [vmem:[%s586_s1 + $0x8] sm:$0xff]   ;;  %v463_v12 = vld [vmem:[%s587_s0 + $0x10] sm:$0xff]  }
   0x4   :  { %405 = vmatprep.subr.bf16.mxu0 %v452_v1  ;;  %436 = vmatprep.subr.bf16.mxu1 %v452_v1  ;;  %v460_v5 = vld [vmem:[%s587_s0 + $0x20] sm:$0xff]   ;;  %v461_v10 = vld [vmem:[%s587_s0 + $0x8] sm:$0xff]   ;;  %v464_v13 = vld [vmem:[%s587_s0 + $0x30] sm:$0xff]  }
   0x5   :  { %419 = vmatprep.mubr.bf16.mxu0 %v459_v4  ;;  %427 = vmatprep.mubr.bf16.mxu1 %v460_v5  ;;  %v458_v9 = vld [vmem:[%s586_s1] sm:$0xff]   ;;  %v462_v11 = vld [vmem:[%s587_s0 + $0x28] sm:$0xff]   ;;  %v465_v14 = vld [vmem:[%s587_s0 + $0x18] sm:$0xff]  }
   0x6   :  { %v466_v15 = vld [vmem:[%s587_s0 + $0x38] sm:$0xff]   ;;  %v386_v16 = vld [vmem:[%s588_s2] ss:$0 sm:$0xff] }
   0x7   :  { %406 = vmatpush3.bf16.msra.mxu0 %v452_v1  ;;  %444 = vmatpush3.bf16.msra.mxu1 %v452_v1 }
   0x8   :  { %407 = vmatprep.subr.bf16.mxu0 %v453_v2  ;;  %437 = vmatprep.subr.bf16.mxu1 %v453_v2 }
   0xb   :  { %408 = vmatpush3.bf16.msra.mxu0 %v453_v2  ;;  %445 = vmatpush3.bf16.msra.mxu1 %v453_v2 }
   0xc   :  { %409 = vmatprep.subr.bf16.mxu0 %v454_v3  ;;  %438 = vmatprep.subr.bf16.mxu1 %v454_v3 }
   0xf   :  { %410 = vmatpush3.bf16.msra.mxu0 %v454_v3  ;;  %446 = vmatpush3.bf16.msra.mxu1 %v454_v3 }
  0x10   :  { %411 = vmatprep.subr.bf16.mxu0 %v455_v6  ;;  %439 = vmatprep.subr.bf16.mxu1 %v455_v6 }
  0x13   :  { %412 = vmatpush3.bf16.msra.mxu0 %v455_v6  ;;  %447 = vmatpush3.bf16.msra.mxu1 %v455_v6 }
  0x14   :  { %413 = vmatprep.subr.bf16.mxu0 %v456_v7  ;;  %440 = vmatprep.subr.bf16.mxu1 %v456_v7 }
  0x17   :  { %414 = vmatpush3.bf16.msra.mxu0 %v456_v7  ;;  %448 = vmatpush3.bf16.msra.mxu1 %v456_v7 }
  0x18   :  { %415 = vmatprep.subr.bf16.mxu0 %v457_v8  ;;  %441 = vmatprep.subr.bf16.mxu1 %v457_v8 }
  0x1b   :  { %416 = vmatpush3.bf16.msra.mxu0 %v457_v8  ;;  %449 = vmatpush3.bf16.msra.mxu1 %v457_v8 }
  0x1c   :  { %417 = vmatprep.subr.bf16.mxu0 %v458_v9  ;;  %442 = vmatprep.subr.bf16.mxu1 %v458_v9 }
  0x1f   :  { %418 = vmatpush3.bf16.msra.mxu0 %v458_v9  ;;  %450 = vmatpush3.bf16.msra.mxu1 %v458_v9 }
  0x22   :  { %420 = vmatmul.mubr.bf16.vlgmr.msra.gmra.mxu0 %v461_v10  ;;  %428 = vmatmul.mubr.bf16.vlgmr.msra.gmra.mxu1 %v462_v11 }
  0x23   :  { %423 = vmatprep.mubr.bf16.mxu0 %v463_v12  ;;  %431 = vmatprep.mubr.bf16.mxu1 %v464_v13 }
  0x2a   :  { %424 = vmatmul.mubr.bf16.gmra.mxu0 %v465_v14  ;;  %432 = vmatmul.mubr.bf16.gmra.mxu1 %v466_v15 }
  0xe2   :  { %v421_v17 = vpop.f32.mrf.mxu0  ;;  %v429_v18 = vpop.f32.mrf.mxu1 }
  0xe3   :  { %v336_v19 = vadd.f32 %v421_v17, %v386_v16  ;;  %v344_v20 = vadd.f32 %v429_v18, %v386_v16 }
  0xe4   :  { %v213_v21 = vpop.f32.mrf.mxu0  ;;  %v245_v22 = vpop.f32.mrf.mxu1 }
  0xe5   :  { %352 = vst [vmem:[%s589_s3 + $0x10] sm:$0xff] %v336_v19  ;;  %360 = vst [vmem:[%s589_s3 + $0x50] sm:$0xff] %v344_v20  ;;  %v334_v23 = vadd.f32 %v386_v16, %v213_v21  ;;  %v342_v24 = vadd.f32 %v386_v16, %v245_v22 }
  0xe6   :  { %v422_v25 = vpop.f32.mrf.mxu0  ;;  %v430_v26 = vpop.f32.mrf.mxu1 }
  0xe7   :  { %350 = vst [vmem:[%s589_s3] sm:$0xff] %v334_v23  ;;  %358 = vst [vmem:[%s589_s3 + $0x40] sm:$0xff] %v342_v24  ;;  %v337_v27 = vadd.f32 %v422_v25, %v386_v16  ;;  %v345_v28 = vadd.f32 %v430_v26, %v386_v16 }
  0xe8   :  { %v216_v29 = vpop.f32.mrf.mxu0  ;;  %v248_v30 = vpop.f32.mrf.mxu1 }
  0xe9   :  { %353 = vst [vmem:[%s589_s3 + $0x18] sm:$0xff] %v337_v27  ;;  %361 = vst [vmem:[%s589_s3 + $0x58] sm:$0xff] %v345_v28  ;;  %v335_v31 = vadd.f32 %v386_v16, %v216_v29  ;;  %v343_v32 = vadd.f32 %v386_v16, %v248_v30 }
  0xea   :  { %v425_v33 = vpop.f32.mrf.mxu0  ;;  %v433_v34 = vpop.f32.mrf.mxu1 }
  0xeb   :  { %351 = vst [vmem:[%s589_s3 + $0x8] sm:$0xff] %v335_v31  ;;  %359 = vst [vmem:[%s589_s3 + $0x48] sm:$0xff] %v343_v32  ;;  %v340_v35 = vadd.f32 %v425_v33, %v386_v16  ;;  %v348_v36 = vadd.f32 %v433_v34, %v386_v16 }
  0xec   :  { %v229_v37 = vpop.f32.mrf.mxu0  ;;  %v261_v38 = vpop.f32.mrf.mxu1 }
  0xed   :  { %356 = vst [vmem:[%s589_s3 + $0x30] sm:$0xff] %v340_v35  ;;  %364 = vst [vmem:[%s589_s3 + $0x70] sm:$0xff] %v348_v36  ;;  %v338_v39 = vadd.f32 %v386_v16, %v229_v37  ;;  %v346_v40 = vadd.f32 %v386_v16, %v261_v38 }
  0xee   :  { %v426_v41 = vpop.f32.mrf.mxu0  ;;  %v434_v42 = vpop.f32.mrf.mxu1 }
  0xef   :  { %354 = vst [vmem:[%s589_s3 + $0x20] sm:$0xff] %v338_v39  ;;  %362 = vst [vmem:[%s589_s3 + $0x60] sm:$0xff] %v346_v40  ;;  %v341_v43 = vadd.f32 %v426_v41, %v386_v16  ;;  %v349_v44 = vadd.f32 %v434_v42, %v386_v16 }
  0xf0   :  { %v232_v45 = vpop.f32.mrf.mxu0  ;;  %v264_v46 = vpop.f32.mrf.mxu1 }
  0xf1   :  { %357 = vst [vmem:[%s589_s3 + $0x38] sm:$0xff] %v341_v43  ;;  %365 = vst [vmem:[%s589_s3 + $0x78] sm:$0xff] %v349_v44  ;;  %v339_v47 = vadd.f32 %v386_v16, %v232_v45  ;;  %v347_v48 = vadd.f32 %v386_v16, %v264_v46 }
  0xf3   :  { %355 = vst [vmem:[%s589_s3 + $0x28] sm:$0xff] %v339_v47  ;;  %363 = vst [vmem:[%s589_s3 + $0x68] sm:$0xff] %v347_v48 }

// kernel: _lambda_.66
= control target key start
LH: loop header
LB: loop body
LE: loop exit
PB: predicated region body
PF: predicated region fallthrough
CT: control target
= control target key end

     0   :  { %s310_s1 = inlined_call_operand.vmem [shape: bf16[128,128], index: 1, kind: input, shape index: {}]   ;;  %s311_s0 = inlined_call_operand.vmem [shape: bf16[32,128], index: 0, kind: input, shape index: {}]   ;;  %s312_s2 = inlined_call_operand.vmem [shape: f32[1,128], index: 2, kind: input, shape index: {}]   ;;  %s313_s3 = inlined_call_operand.vmem [shape: f32[32,128], index: 3, kind: output, shape index: {}]  }
   0x1   :  { %v235_v0 = vld [vmem:[%s310_s1 + $0x38] sm:$0xff]   ;;  %v236_v1 = vld [vmem:[%s310_s1 + $0x30] sm:$0xff]   ;;  %v237_v2 = vld [vmem:[%s310_s1 + $0x28] sm:$0xff]  }
   0x2   :  { %215 = vmatprep.subr.bf16.mxu0 %v235_v0  ;;  %v238_v3 = vld [vmem:[%s310_s1 + $0x20] sm:$0xff]   ;;  %v239_v5 = vld [vmem:[%s310_s1 + $0x18] sm:$0xff]   ;;  %v240_v6 = vld [vmem:[%s310_s1 + $0x10] sm:$0xff]  }
   0x3   :  { %216 = vmatpush3.bf16.msra.mxu0 %v235_v0  ;;  %v243_v4 = vld [vmem:[%s311_s0] sm:$0xff]   ;;  %v241_v7 = vld [vmem:[%s310_s1 + $0x8] sm:$0xff]  }
   0x4   :  { %217 = vmatprep.subr.bf16.mxu0 %v236_v1  ;;  %231 = vmatprep.mubr.bf16.mxu0 %v243_v4  ;;  %v242_v8 = vld [vmem:[%s310_s1] sm:$0xff]   ;;  %v244_v9 = vld [vmem:[%s311_s0 + $0x8] sm:$0xff]  }
   0x5   :  { %v204_v10 = vld [vmem:[%s312_s2] ss:$0 sm:$0xff] }
   0x7   :  { %218 = vmatpush3.bf16.msra.mxu0 %v236_v1 }
   0x8   :  { %219 = vmatprep.subr.bf16.mxu0 %v237_v2 }
   0xb   :  { %220 = vmatpush3.bf16.msra.mxu0 %v237_v2 }
   0xc   :  { %221 = vmatprep.subr.bf16.mxu0 %v238_v3 }
   0xf   :  { %222 = vmatpush3.bf16.msra.mxu0 %v238_v3 }
  0x10   :  { %223 = vmatprep.subr.bf16.mxu0 %v239_v5 }
  0x13   :  { %224 = vmatpush3.bf16.msra.mxu0 %v239_v5 }
  0x14   :  { %225 = vmatprep.subr.bf16.mxu0 %v240_v6 }
  0x17   :  { %226 = vmatpush3.bf16.msra.mxu0 %v240_v6 }
  0x18   :  { %227 = vmatprep.subr.bf16.mxu0 %v241_v7 }
  0x1b   :  { %228 = vmatpush3.bf16.msra.mxu0 %v241_v7 }
  0x1c   :  { %229 = vmatprep.subr.bf16.mxu0 %v242_v8 }
  0x1f   :  { %230 = vmatpush3.bf16.msra.mxu0 %v242_v8 }
  0x22   :  { %232 = vmatmul.mubr.bf16.vlgmr.msra.gmra.mxu0 %v244_v9 }
  0xe2   :  { %v233_v11 = vpop.f32.mrf.mxu0 }
  0xe3   :  { %v180_v12 = vadd.f32 %v233_v11, %v204_v10 }
  0xe4   :  { %v141_v13 = vpop.f32.mrf.mxu0 }
  0xe5   :  { %v184_v14 = vmax.f32 %v180_v12, 0.0  ;;  %v178_v15 = vadd.f32 %v204_v10, %v141_v13 }
  0xe6   :  { %v234_v16 = vpop.f32.mrf.mxu0 }
  0xe7   :  { %188 = vst [vmem:[%s313_s3 + $0x10] sm:$0xff] %v184_v14  ;;  %v182_v17 = vmax.f32 %v178_v15, 0.0  ;;  %v181_v18 = vadd.f32 %v234_v16, %v204_v10 }
  0xe8   :  { %v144_v19 = vpop.f32.mrf.mxu0 }
  0xe9   :  { %186 = vst [vmem:[%s313_s3] sm:$0xff] %v182_v17  ;;  %v185_v20 = vmax.f32 %v181_v18, 0.0  ;;  %v179_v21 = vadd.f32 %v204_v10, %v144_v19 }
  0xeb   :  { %189 = vst [vmem:[%s313_s3 + $0x18] sm:$0xff] %v185_v20  ;;  %v183_v22 = vmax.f32 %v179_v21, 0.0 }
  0xed   :  { %187 = vst [vmem:[%s313_s3 + $0x8] sm:$0xff] %v183_v22 }

// kernel: _lambda_.65
= control target key start
LH: loop header
LB: loop body
LE: loop exit
PB: predicated region body
PF: predicated region fallthrough
CT: control target
= control target key end

     0   :  { %s306_s1 = inlined_call_operand.vmem [shape: bf16[128,128], index: 1, kind: input, shape index: {}]   ;;  %s307_s0 = inlined_call_operand.vmem [shape: bf16[32,128], index: 0, kind: input, shape index: {}]   ;;  %s308_s2 = inlined_call_operand.vmem [shape: f32[1,128], index: 2, kind: input, shape index: {}]   ;;  %s309_s3 = inlined_call_operand.vmem [shape: f32[32,128], index: 3, kind: output, shape index: {}]  }
   0x1   :  { %v231_v0 = vld [vmem:[%s306_s1 + $0x38] sm:$0xff]   ;;  %v232_v1 = vld [vmem:[%s306_s1 + $0x30] sm:$0xff]   ;;  %v233_v2 = vld [vmem:[%s306_s1 + $0x28] sm:$0xff]  }
   0x2   :  { %211 = vmatprep.subr.bf16.mxu0 %v231_v0  ;;  %v234_v3 = vld [vmem:[%s306_s1 + $0x20] sm:$0xff]   ;;  %v235_v5 = vld [vmem:[%s306_s1 + $0x18] sm:$0xff]   ;;  %v236_v6 = vld [vmem:[%s306_s1 + $0x10] sm:$0xff]  }
   0x3   :  { %212 = vmatpush3.bf16.msra.mxu0 %v231_v0  ;;  %v239_v4 = vld [vmem:[%s307_s0] sm:$0xff]   ;;  %v237_v7 = vld [vmem:[%s306_s1 + $0x8] sm:$0xff]  }
   0x4   :  { %213 = vmatprep.subr.bf16.mxu0 %v232_v1  ;;  %227 = vmatprep.mubr.bf16.mxu0 %v239_v4  ;;  %v238_v8 = vld [vmem:[%s306_s1] sm:$0xff]   ;;  %v240_v9 = vld [vmem:[%s307_s0 + $0x8] sm:$0xff]  }
   0x5   :  { %v200_v10 = vld [vmem:[%s308_s2] ss:$0 sm:$0xff] }
   0x7   :  { %214 = vmatpush3.bf16.msra.mxu0 %v232_v1 }
   0x8   :  { %215 = vmatprep.subr.bf16.mxu0 %v233_v2 }
   0xb   :  { %216 = vmatpush3.bf16.msra.mxu0 %v233_v2 }
   0xc   :  { %217 = vmatprep.subr.bf16.mxu0 %v234_v3 }
   0xf   :  { %218 = vmatpush3.bf16.msra.mxu0 %v234_v3 }
  0x10   :  { %219 = vmatprep.subr.bf16.mxu0 %v235_v5 }
  0x13   :  { %220 = vmatpush3.bf16.msra.mxu0 %v235_v5 }
  0x14   :  { %221 = vmatprep.subr.bf16.mxu0 %v236_v6 }
  0x17   :  { %222 = vmatpush3.bf16.msra.mxu0 %v236_v6 }
  0x18   :  { %223 = vmatprep.subr.bf16.mxu0 %v237_v7 }
  0x1b   :  { %224 = vmatpush3.bf16.msra.mxu0 %v237_v7 }
  0x1c   :  { %225 = vmatprep.subr.bf16.mxu0 %v238_v8 }
  0x1f   :  { %226 = vmatpush3.bf16.msra.mxu0 %v238_v8 }
  0x22   :  { %228 = vmatmul.mubr.bf16.vlgmr.msra.gmra.mxu0 %v240_v9 }
  0xe2   :  { %v229_v11 = vpop.f32.mrf.mxu0 }
  0xe3   :  { %v180_v12 = vadd.f32 %v229_v11, %v200_v10 }
  0xe4   :  { %v141_v13 = vpop.f32.mrf.mxu0 }
  0xe5   :  { %184 = vst [vmem:[%s309_s3 + $0x10] sm:$0xff] %v180_v12  ;;  %v178_v14 = vadd.f32 %v200_v10, %v141_v13 }
  0xe6   :  { %v230_v15 = vpop.f32.mrf.mxu0 }
  0xe7   :  { %182 = vst [vmem:[%s309_s3] sm:$0xff] %v178_v14  ;;  %v181_v16 = vadd.f32 %v230_v15, %v200_v10 }
  0xe8   :  { %v144_v17 = vpop.f32.mrf.mxu0 }
  0xe9   :  { %185 = vst [vmem:[%s309_s3 + $0x18] sm:$0xff] %v181_v16  ;;  %v179_v18 = vadd.f32 %v200_v10, %v144_v17 }
  0xeb   :  { %183 = vst [vmem:[%s309_s3 + $0x8] sm:$0xff] %v179_v18 }

// kernel: _lambda_.80
= control target key start
LH: loop header
LB: loop body
LE: loop exit
PB: predicated region body
PF: predicated region fallthrough
CT: control target
= control target key end

     0   :  { %v194_v0 = vmov 0.0   ;;  %vm195_vm0 = vmmov 0   ;;  %s249_s1 = inlined_call_operand.vmem [shape: bf16[128,128], index: 1, kind: input, shape index: {}]   ;;  %s250_s0 = inlined_call_operand.vmem [shape: bf16[8,128], index: 0, kind: input, shape index: {}]   ;;  %s251_s2 = inlined_call_operand.vmem [shape: f32[1,128], index: 2, kind: input, shape index: {}]   ;;  %s252_s3 = inlined_call_operand.vmem [shape: f32[8,128], index: 3, kind: output, shape index: {}]  }
   0x1   :  { %164 = vmatprep.subr.bf16.mxu0 %v194_v0  ;;  %v186_v1 = vld [vmem:[%s249_s1 + $0x38] sm:$0xff]   ;;  %180 = vmatprep.mubr.msk.bf16.mxu0 %vm195_vm0, %v194_v0  ;;  %v187_v2 = vld [vmem:[%s249_s1 + $0x30] sm:$0xff]   ;;  %v188_v3 = vld [vmem:[%s249_s1 + $0x28] sm:$0xff]  }
   0x2   :  { %165 = vmatpush3.bf16.msra.mxu0 %v186_v1  ;;  %v189_v4 = vld [vmem:[%s249_s1 + $0x20] sm:$0xff]   ;;  %v190_v5 = vld [vmem:[%s249_s1 + $0x18] sm:$0xff]   ;;  %v191_v6 = vld [vmem:[%s249_s1 + $0x10] sm:$0xff]  }
   0x3   :  { %166 = vmatprep.subr.bf16.mxu0 %v194_v0  ;;  %v192_v7 = vld [vmem:[%s249_s1 + $0x8] sm:$0xff]   ;;  %v193_v8 = vld [vmem:[%s249_s1] sm:$0xff]  }
   0x4   :  { %v21_v9 = vld [vmem:[%s250_s0] sm:$0xf] }
   0x5   :  { %v154_v10 = vld [vmem:[%s251_s2] ss:$0 sm:$0xff] }
   0x6   :  { %167 = vmatpush3.bf16.msra.mxu0 %v187_v2 }
   0x7   :  { %168 = vmatprep.subr.bf16.mxu0 %v194_v0 }
   0xa   :  { %169 = vmatpush3.bf16.msra.mxu0 %v188_v3 }
   0xb   :  { %170 = vmatprep.subr.bf16.mxu0 %v194_v0 }
   0xe   :  { %171 = vmatpush3.bf16.msra.mxu0 %v189_v4 }
   0xf   :  { %172 = vmatprep.subr.bf16.mxu0 %v194_v0 }
  0x12   :  { %173 = vmatpush3.bf16.msra.mxu0 %v190_v5 }
  0x13   :  { %174 = vmatprep.subr.bf16.mxu0 %v194_v0 }
  0x16   :  { %175 = vmatpush3.bf16.msra.mxu0 %v191_v6 }
  0x17   :  { %176 = vmatprep.subr.bf16.mxu0 %v194_v0 }
  0x1a   :  { %177 = vmatpush3.bf16.msra.mxu0 %v192_v7 }
  0x1b   :  { %178 = vmatprep.subr.bf16.mxu0 %v194_v0 }
  0x1e   :  { %179 = vmatpush3.bf16.msra.mxu0 %v193_v8 }
  0x21   :  { %181 = vmatmul.mubr.bf16.vlgmr.msra.gmra.mxu0 %v21_v9 }
  0xe1   :  { %v120_v11 = vpop.f32.mrf.mxu0 }
  0xe2   :  { %v139_v12 = vadd.f32 %v154_v10, %v120_v11 }
  0xe3   :  { %v182_v13 = vpop.f32.mrf.mxu0 }
  0xe4   :  { %v140_v14 = vmax.f32 %v139_v12, 0.0 }
  0xe5   :  { %v123_v15 = vpop.f32.mrf.mxu0 }
  0xe6   :  { %141 = vst [vmem:[%s252_s3] sm:$0xff] %v140_v14 }
  0xe7   :  { %v183_v16 = vpop.f32.mrf.mxu0 }

// kernel: _lambda_.83
= control target key start
LH: loop header
LB: loop body
LE: loop exit
PB: predicated region body
PF: predicated region fallthrough
CT: control target
= control target key end

     0   :  { %8 = vsyncpa [#allocation4], 0  ;;  %s230_s12 = smov [#allocation3]   ;;  %s286_s0 = inlined_call_operand.vmem [shape: bf16[8,128], index: 0, kind: input, shape index: {}]   ;;  %s287_s1 = inlined_call_operand.vmem [shape: bf16[128,128], index: 1, kind: input, shape index: {}]   ;;  %s288_s2 = inlined_call_operand.hbm [shape: f32[1,128], index: 2, kind: input, shape index: {}]   ;;  %s289_s3 = inlined_call_operand.vmem [shape: f32[8,128], index: 3, kind: output, shape index: {}]  }
   0x1   :  { %s19_s13 = sshll.u32 %s230_s12, 4  ;;  %s20_s13 = int_to_ptr.vmem [resolvable:$true] %s19_s13 }
   0x2   :  { %s216_s14 = scalar_lea.vmem %s20_s13, 16  ;;  %s220_s15 = scalar_lea.vmem %s20_s13, 32 }
   0x3   :  { %p217_p0 = scmp.ne.s32.totalorder %s20_s13, %s216_s14  ;;  %p221_p1 = scmp.lt.s32.totalorder %s20_s13, %s20_s13 }
   0x4   :  { %p222_p2 = scmp.lt.s32.totalorder %s220_s15, %s216_s14 }
   0x6   :  { %p223_p3 = por %p222_p2, %p221_p1 }
   0x8   :  { %p224_p4 = pnand %p223_p3, %p217_p0 }
   0xa   :  { %227 = shalt.err (!%p224_p4)
}
   0xb   :  { %22 = dma.hbm_to_vmem [thread:$0]  %s288_s2, 16, %s20_s13, [#allocation4]  }
   0xc   :  { %228 = dma.done.wait [#allocation4], 16  }
   0xd   :  { %229 = vsyncadd [#allocation4], 4294967280  ;;  %v231_v0 = vmov 0.0   ;;  %vm232_vm0 = vmmov 0   ;;  %v200_v1 = vld [vmem:[%s287_s1 + $0x38] sm:$0xff]   ;;  %v201_v2 = vld [vmem:[%s287_s1 + $0x30] sm:$0xff]  }
   0xe   :  { %177 = vmatprep.subr.bf16.mxu0 %v231_v0  ;;  %193 = vmatprep.mubr.msk.bf16.mxu0 %vm232_vm0, %v231_v0  ;;  %v202_v3 = vld [vmem:[%s287_s1 + $0x28] sm:$0xff]   ;;  %v203_v4 = vld [vmem:[%s287_s1 + $0x20] sm:$0xff]   ;;  %v204_v5 = vld [vmem:[%s287_s1 + $0x18] sm:$0xff]  }
   0xf   :  { %178 = vmatpush3.bf16.msra.mxu0 %v200_v1  ;;  %v205_v6 = vld [vmem:[%s287_s1 + $0x10] sm:$0xff]   ;;  %v206_v7 = vld [vmem:[%s287_s1 + $0x8] sm:$0xff]   ;;  %v207_v8 = vld [vmem:[%s287_s1] sm:$0xff]  }
  0x10   :  { %179 = vmatprep.subr.bf16.mxu0 %v231_v0  ;;  %v33_v9 = vld [vmem:[%s286_s0] sm:$0xf] }
  0x11   :  { %v167_v10 = vld [vmem:[#allocation3] ss:$0 sm:$0xff] }
  0x13   :  { %180 = vmatpush3.bf16.msra.mxu0 %v201_v2 }
  0x14   :  { %181 = vmatprep.subr.bf16.mxu0 %v231_v0 }
  0x17   :  { %182 = vmatpush3.bf16.msra.mxu0 %v202_v3 }
  0x18   :  { %183 = vmatprep.subr.bf16.mxu0 %v231_v0 }
  0x1b   :  { %184 = vmatpush3.bf16.msra.mxu0 %v203_v4 }
  0x1c   :  { %185 = vmatprep.subr.bf16.mxu0 %v231_v0 }
  0x1f   :  { %186 = vmatpush3.bf16.msra.mxu0 %v204_v5 }
  0x20   :  { %187 = vmatprep.subr.bf16.mxu0 %v231_v0 }
  0x23   :  { %188 = vmatpush3.bf16.msra.mxu0 %v205_v6 }
  0x24   :  { %189 = vmatprep.subr.bf16.mxu0 %v231_v0 }
  0x27   :  { %190 = vmatpush3.bf16.msra.mxu0 %v206_v7 }
  0x28   :  { %191 = vmatprep.subr.bf16.mxu0 %v231_v0 }
  0x2b   :  { %192 = vmatpush3.bf16.msra.mxu0 %v207_v8 }
  0x2e   :  { %194 = vmatmul.mubr.bf16.vlgmr.msra.gmra.mxu0 %v33_v9 }
  0xee   :  { %v132_v11 = vpop.f32.mrf.mxu0 }
  0xef   :  { %v151_v12 = vadd.f32 %v167_v10, %v132_v11 }
  0xf0   :  { %v195_v13 = vpop.f32.mrf.mxu0 }
  0xf1   :  { %v152_v14 = vmax.f32 %v151_v12, 0.0 }
  0xf2   :  { %v135_v15 = vpop.f32.mrf.mxu0 }
  0xf3   :  { %153 = vst [vmem:[%s289_s3] sm:$0xff] %v152_v14 }
  0xf4   :  { %v196_v16 = vpop.f32.mrf.mxu0 }
  0xf5   :  { %158 = vsyncpa [#allocation4], 1 }

// kernel: _lambda_.79
= control target key start
LH: loop header
LB: loop body
LE: loop exit
PB: predicated region body
PF: predicated region fallthrough
CT: control target
= control target key end

     0   :  { %v193_v0 = vmov 0.0   ;;  %vm194_vm0 = vmmov 0   ;;  %s248_s1 = inlined_call_operand.vmem [shape: bf16[128,128], index: 1, kind: input, shape index: {}]   ;;  %s249_s0 = inlined_call_operand.vmem [shape: bf16[8,128], index: 0, kind: input, shape index: {}]   ;;  %s250_s2 = inlined_call_operand.vmem [shape: f32[1,128], index: 2, kind: input, shape index: {}]   ;;  %s251_s3 = inlined_call_operand.vmem [shape: f32[8,128], index: 3, kind: output, shape index: {}]  }
   0x1   :  { %163 = vmatprep.subr.bf16.mxu0 %v193_v0  ;;  %v185_v1 = vld [vmem:[%s248_s1 + $0x38] sm:$0xff]   ;;  %179 = vmatprep.mubr.msk.bf16.mxu0 %vm194_vm0, %v193_v0  ;;  %v186_v2 = vld [vmem:[%s248_s1 + $0x30] sm:$0xff]   ;;  %v187_v3 = vld [vmem:[%s248_s1 + $0x28] sm:$0xff]  }
   0x2   :  { %164 = vmatpush3.bf16.msra.mxu0 %v185_v1  ;;  %v188_v4 = vld [vmem:[%s248_s1 + $0x20] sm:$0xff]   ;;  %v189_v5 = vld [vmem:[%s248_s1 + $0x18] sm:$0xff]   ;;  %v190_v6 = vld [vmem:[%s248_s1 + $0x10] sm:$0xff]  }
   0x3   :  { %165 = vmatprep.subr.bf16.mxu0 %v193_v0  ;;  %v191_v7 = vld [vmem:[%s248_s1 + $0x8] sm:$0xff]   ;;  %v192_v8 = vld [vmem:[%s248_s1] sm:$0xff]  }
   0x4   :  { %v21_v9 = vld [vmem:[%s249_s0] sm:$0xf] }
   0x5   :  { %v153_v10 = vld [vmem:[%s250_s2] ss:$0 sm:$0xff] }
   0x6   :  { %166 = vmatpush3.bf16.msra.mxu0 %v186_v2 }
   0x7   :  { %167 = vmatprep.subr.bf16.mxu0 %v193_v0 }
   0xa   :  { %168 = vmatpush3.bf16.msra.mxu0 %v187_v3 }
   0xb   :  { %169 = vmatprep.subr.bf16.mxu0 %v193_v0 }
   0xe   :  { %170 = vmatpush3.bf16.msra.mxu0 %v188_v4 }
   0xf   :  { %171 = vmatprep.subr.bf16.mxu0 %v193_v0 }
  0x12   :  { %172 = vmatpush3.bf16.msra.mxu0 %v189_v5 }
  0x13   :  { %173 = vmatprep.subr.bf16.mxu0 %v193_v0 }
  0x16   :  { %174 = vmatpush3.bf16.msra.mxu0 %v190_v6 }
  0x17   :  { %175 = vmatprep.subr.bf16.mxu0 %v193_v0 }
  0x1a   :  { %176 = vmatpush3.bf16.msra.mxu0 %v191_v7 }
  0x1b   :  { %177 = vmatprep.subr.bf16.mxu0 %v193_v0 }
  0x1e   :  { %178 = vmatpush3.bf16.msra.mxu0 %v192_v8 }
  0x21   :  { %180 = vmatmul.mubr.bf16.vlgmr.msra.gmra.mxu0 %v21_v9 }
  0xe1   :  { %v120_v11 = vpop.f32.mrf.mxu0 }
  0xe2   :  { %v139_v12 = vadd.f32 %v153_v10, %v120_v11 }
  0xe3   :  { %v181_v13 = vpop.f32.mrf.mxu0 }
  0xe4   :  { %140 = vst [vmem:[%s251_s3] sm:$0xff] %v139_v12 }
  0xe5   :  { %v123_v14 = vpop.f32.mrf.mxu0 }
  0xe7   :  { %v182_v15 = vpop.f32.mrf.mxu0 }

// kernel: _lambda_.84
= control target key start
LH: loop header
LB: loop body
LE: loop exit
PB: predicated region body
PF: predicated region fallthrough
CT: control target
= control target key end

     0   :  { %8 = vsyncpa [#allocation4], 0  ;;  %s312_s12 = smov [#allocation3]   ;;  %s390_s0 = inlined_call_operand.vmem [shape: bf16[8,256], index: 0, kind: input, shape index: {}]   ;;  %s391_s1 = inlined_call_operand.vmem [shape: bf16[256,128], index: 1, kind: input, shape index: {}]   ;;  %s392_s2 = inlined_call_operand.hbm [shape: f32[1,128], index: 2, kind: input, shape index: {}]   ;;  %s393_s3 = inlined_call_operand.vmem [shape: f32[8,128], index: 3, kind: output, shape index: {}]  }
   0x1   :  { %s19_s13 = sshll.u32 %s312_s12, 4  ;;  %s20_s13 = int_to_ptr.vmem [resolvable:$true] %s19_s13 }
   0x2   :  { %s298_s14 = scalar_lea.vmem %s20_s13, 16  ;;  %s302_s15 = scalar_lea.vmem %s20_s13, 32 }
   0x3   :  { %p299_p0 = scmp.ne.s32.totalorder %s20_s13, %s298_s14  ;;  %p303_p1 = scmp.lt.s32.totalorder %s20_s13, %s20_s13 }
   0x4   :  { %p304_p2 = scmp.lt.s32.totalorder %s302_s15, %s298_s14 }
   0x6   :  { %p305_p3 = por %p304_p2, %p303_p1 }
   0x8   :  { %p306_p4 = pnand %p305_p3, %p299_p0 }
   0xa   :  { %309 = shalt.err (!%p306_p4)
}
   0xb   :  { %22 = dma.hbm_to_vmem [thread:$0]  %s392_s2, 16, %s20_s13, [#allocation4]  }
   0xc   :  { %310 = dma.done.wait [#allocation4], 16  }
   0xd   :  { %311 = vsyncadd [#allocation4], 4294967280  ;;  %v272_v0 = vld [vmem:[%s391_s1 + $0x78] sm:$0xff]   ;;  %v274_v2 = vld [vmem:[%s391_s1 + $0x70] sm:$0xff]  }
   0xe   :  { %v273_v1 = vld [vmem:[%s391_s1 + $0x38] sm:$0xff]   ;;  %249 = vmatprep.subr.bf16.mxu0 %v272_v0  ;;  %v275_v3 = vld [vmem:[%s391_s1 + $0x30] sm:$0xff]   ;;  %v276_v4 = vld [vmem:[%s391_s1 + $0x68] sm:$0xff]  }
   0xf   :  { %250 = vmatpush3.bf16.msra.mxu0 %v273_v1  ;;  %v277_v5 = vld [vmem:[%s391_s1 + $0x28] sm:$0xff]   ;;  %v278_v6 = vld [vmem:[%s391_s1 + $0x60] sm:$0xff]   ;;  %v280_v8 = vld [vmem:[%s391_s1 + $0x58] sm:$0xff]  }
  0x10   :  { %251 = vmatprep.subr.bf16.mxu0 %v274_v2  ;;  %v279_v7 = vld [vmem:[%s391_s1 + $0x20] sm:$0xff]   ;;  %v281_v9 = vld [vmem:[%s391_s1 + $0x18] sm:$0xff]   ;;  %v282_v10 = vld [vmem:[%s391_s1 + $0x50] sm:$0xff]  }
  0x11   :  { %v33_v11 = vld [vmem:[%s390_s0] sm:$0xff]  ;;  %v283_v13 = vld [vmem:[%s391_s1 + $0x10] sm:$0xff]   ;;  %v284_v14 = vld [vmem:[%s391_s1 + $0x48] sm:$0xff]  }
  0x12   :  { %v231_v12 = vcombine.high %v33_v11, %v33_v11  ;;  %v285_v15 = vld [vmem:[%s391_s1 + $0x8] sm:$0xff]   ;;  %v286_v16 = vld [vmem:[%s391_s1 + $0x40] sm:$0xff]   ;;  %v230_v18 = vcombine.low %v33_v11, %v33_v11 }
  0x13   :  { %252 = vmatpush3.bf16.msra.mxu0 %v275_v3  ;;  %v287_v17 = vld [vmem:[%s391_s1] sm:$0xff]  }
  0x14   :  { %253 = vmatprep.subr.bf16.mxu0 %v276_v4  ;;  %201 = vmatprep.mubr.bf16.mxu0 %v231_v12  ;;  %v248_v21 = vld [vmem:[#allocation3] ss:$0 sm:$0xff] }
  0x17   :  { %254 = vmatpush3.bf16.msra.mxu0 %v277_v5 }
  0x18   :  { %255 = vmatprep.subr.bf16.mxu0 %v278_v6 }
  0x1b   :  { %256 = vmatpush3.bf16.msra.mxu0 %v279_v7 }
  0x1c   :  { %257 = vmatprep.subr.bf16.mxu0 %v280_v8 }
  0x1f   :  { %258 = vmatpush3.bf16.msra.mxu0 %v281_v9 }
  0x20   :  { %259 = vmatprep.subr.bf16.mxu0 %v282_v10 }
  0x23   :  { %260 = vmatpush3.bf16.msra.mxu0 %v283_v13 }
  0x24   :  { %261 = vmatprep.subr.bf16.mxu0 %v284_v14 }
  0x27   :  { %262 = vmatpush3.bf16.msra.mxu0 %v285_v15 }
  0x28   :  { %263 = vmatprep.subr.bf16.mxu0 %v286_v16 }
  0x2b   :  { %264 = vmatpush3.bf16.msra.mxu0 %v287_v17 }
  0x2e   :  { %202 = vmatmul.mubr.bf16.vlgmr.msra.gmra.mxu0 %v230_v18 }
  0xee   :  { %v265_v19 = vpop.f32.mrf.mxu0 }
  0xf0   :  { %v266_v20 = vpop.f32.mrf.mxu0 }
  0xf1   :  { %v267_v22 = vadd.f32 %v266_v20, %v265_v19 }
  0xf2   :  { %v268_v23 = vpop.f32.mrf.mxu0 }
  0xf3   :  { %v222_v24 = vadd.f32 %v267_v22, %v248_v21 }
  0xf4   :  { %v269_v25 = vpop.f32.mrf.mxu0 }
  0xf5   :  { %v223_v26 = vmax.f32 %v222_v24, 0.0 }
  0xf7   :  { %224 = vst [vmem:[%s393_s3] sm:$0xff] %v223_v26 }
  0xf8   :  { %229 = vsyncpa [#allocation4], 1 }

// kernel: _lambda_.86
= control target key start
LH: loop header
LB: loop body
LE: loop exit
PB: predicated region body
PF: predicated region fallthrough
CT: control target
= control target key end

     0   :  { %8 = vsyncpa [#allocation4], 0  ;;  %s229_s12 = smov [#allocation3]   ;;  %s285_s0 = inlined_call_operand.vmem [shape: bf16[8,128], index: 0, kind: input, shape index: {}]   ;;  %s286_s1 = inlined_call_operand.vmem [shape: bf16[128,128], index: 1, kind: input, shape index: {}]   ;;  %s287_s2 = inlined_call_operand.hbm [shape: f32[1,128], index: 2, kind: input, shape index: {}]   ;;  %s288_s3 = inlined_call_operand.vmem [shape: f32[8,128], index: 3, kind: output, shape index: {}]  }
   0x1   :  { %s19_s13 = sshll.u32 %s229_s12, 4  ;;  %s20_s13 = int_to_ptr.vmem [resolvable:$true] %s19_s13 }
   0x2   :  { %s215_s14 = scalar_lea.vmem %s20_s13, 16  ;;  %s219_s15 = scalar_lea.vmem %s20_s13, 32 }
   0x3   :  { %p216_p0 = scmp.ne.s32.totalorder %s20_s13, %s215_s14  ;;  %p220_p1 = scmp.lt.s32.totalorder %s20_s13, %s20_s13 }
   0x4   :  { %p221_p2 = scmp.lt.s32.totalorder %s219_s15, %s215_s14 }
   0x6   :  { %p222_p3 = por %p221_p2, %p220_p1 }
   0x8   :  { %p223_p4 = pnand %p222_p3, %p216_p0 }
   0xa   :  { %226 = shalt.err (!%p223_p4)
}
   0xb   :  { %22 = dma.hbm_to_vmem [thread:$0]  %s287_s2, 16, %s20_s13, [#allocation4]  }
   0xc   :  { %227 = dma.done.wait [#allocation4], 16  }
   0xd   :  { %228 = vsyncadd [#allocation4], 4294967280  ;;  %v230_v0 = vmov 0.0   ;;  %vm231_vm0 = vmmov 0   ;;  %v199_v1 = vld [vmem:[%s286_s1 + $0x38] sm:$0xff]   ;;  %v200_v2 = vld [vmem:[%s286_s1 + $0x30] sm:$0xff]  }
   0xe   :  { %176 = vmatprep.subr.bf16.mxu0 %v230_v0  ;;  %192 = vmatprep.mubr.msk.bf16.mxu0 %vm231_vm0, %v230_v0  ;;  %v201_v3 = vld [vmem:[%s286_s1 + $0x28] sm:$0xff]   ;;  %v202_v4 = vld [vmem:[%s286_s1 + $0x20] sm:$0xff]   ;;  %v203_v5 = vld [vmem:[%s286_s1 + $0x18] sm:$0xff]  }
   0xf   :  { %177 = vmatpush3.bf16.msra.mxu0 %v199_v1  ;;  %v204_v6 = vld [vmem:[%s286_s1 + $0x10] sm:$0xff]   ;;  %v205_v7 = vld [vmem:[%s286_s1 + $0x8] sm:$0xff]   ;;  %v206_v8 = vld [vmem:[%s286_s1] sm:$0xff]  }
  0x10   :  { %178 = vmatprep.subr.bf16.mxu0 %v230_v0  ;;  %v33_v9 = vld [vmem:[%s285_s0] sm:$0xf] }
  0x11   :  { %v166_v10 = vld [vmem:[#allocation3] ss:$0 sm:$0xff] }
  0x13   :  { %179 = vmatpush3.bf16.msra.mxu0 %v200_v2 }
  0x14   :  { %180 = vmatprep.subr.bf16.mxu0 %v230_v0 }
  0x17   :  { %181 = vmatpush3.bf16.msra.mxu0 %v201_v3 }
  0x18   :  { %182 = vmatprep.subr.bf16.mxu0 %v230_v0 }
  0x1b   :  { %183 = vmatpush3.bf16.msra.mxu0 %v202_v4 }
  0x1c   :  { %184 = vmatprep.subr.bf16.mxu0 %v230_v0 }
  0x1f   :  { %185 = vmatpush3.bf16.msra.mxu0 %v203_v5 }
  0x20   :  { %186 = vmatprep.subr.bf16.mxu0 %v230_v0 }
  0x23   :  { %187 = vmatpush3.bf16.msra.mxu0 %v204_v6 }
  0x24   :  { %188 = vmatprep.subr.bf16.mxu0 %v230_v0 }
  0x27   :  { %189 = vmatpush3.bf16.msra.mxu0 %v205_v7 }
  0x28   :  { %190 = vmatprep.subr.bf16.mxu0 %v230_v0 }
  0x2b   :  { %191 = vmatpush3.bf16.msra.mxu0 %v206_v8 }
  0x2e   :  { %193 = vmatmul.mubr.bf16.vlgmr.msra.gmra.mxu0 %v33_v9 }
  0xee   :  { %v132_v11 = vpop.f32.mrf.mxu0 }
  0xef   :  { %v151_v12 = vadd.f32 %v166_v10, %v132_v11 }
  0xf0   :  { %v194_v13 = vpop.f32.mrf.mxu0 }
  0xf1   :  { %152 = vst [vmem:[%s288_s3] sm:$0xff] %v151_v12 }
  0xf2   :  { %v135_v14 = vpop.f32.mrf.mxu0 }
  0xf4   :  { %v195_v15 = vpop.f32.mrf.mxu0 }
  0xf5   :  { %157 = vsyncpa [#allocation4], 1 }

// kernel: _lambda_.105
= control target key start
LH: loop header
LB: loop body
LE: loop exit
PB: predicated region body
PF: predicated region fallthrough
CT: control target
= control target key end

     0   :  { %v233_v1 = vmov 0   ;;  %v172_v18 = vlaneseq  ;;  %s314_s1 = inlined_call_operand.vmem [shape: bf16[128,256], index: 1, kind: input, shape index: {}]   ;;  %s315_s0 = inlined_call_operand.vmem [shape: bf16[8,128], index: 0, kind: input, shape index: {}]   ;;  %s316_s2 = inlined_call_operand.vmem [shape: f32[1,256], index: 2, kind: input, shape index: {}]   ;;  %s317_s3 = inlined_call_operand.vmem [shape: f32[8,256], index: 3, kind: output, shape index: {}]  }
   0x1   :  { %v209_v0 = vld [vmem:[%s314_s1 + $0x74] ss:$8 sps:$4 sm:$0xff]   ;;  %152 = vmatprep.mubr.bf16.mxu0 %v233_v1  ;;  %v211_v2 = vld [vmem:[%s314_s1 + $0x70] ss:$8 sps:$4 sm:$0xff]   ;;  %v212_v3 = vld [vmem:[%s314_s1 + $0x64] ss:$8 sps:$4 sm:$0xff]  }
   0x2   :  { %120 = vmatprep.subr.bf16.mxu0 %v209_v0  ;;  %v214_v4 = vld [vmem:[%s314_s1 + $0x60] ss:$8 sps:$4 sm:$0xff]   ;;  %v215_v5 = vld [vmem:[%s314_s1 + $0x54] ss:$8 sps:$4 sm:$0xff]   ;;  %v217_v6 = vld [vmem:[%s314_s1 + $0x50] ss:$8 sps:$4 sm:$0xff]  }
   0x3   :  { %121 = vmatpush1.bf16.msra.mxu0 %v211_v2  ;;  %v218_v7 = vld [vmem:[%s314_s1 + $0x44] ss:$8 sps:$4 sm:$0xff]   ;;  %v220_v8 = vld [vmem:[%s314_s1 + $0x40] ss:$8 sps:$4 sm:$0xff]   ;;  %v221_v9 = vld [vmem:[%s314_s1 + $0x34] ss:$8 sps:$4 sm:$0xff]  }
   0x4   :  { %122 = vmatprep.subr.bf16.mxu0 %v212_v3  ;;  %v223_v10 = vld [vmem:[%s314_s1 + $0x30] ss:$8 sps:$4 sm:$0xff]   ;;  %v224_v11 = vld [vmem:[%s314_s1 + $0x24] ss:$8 sps:$4 sm:$0xff]   ;;  %v226_v12 = vld [vmem:[%s314_s1 + $0x20] ss:$8 sps:$4 sm:$0xff]  }
   0x5   :  { %v227_v13 = vld [vmem:[%s314_s1 + $0x14] ss:$8 sps:$4 sm:$0xff]   ;;  %v229_v14 = vld [vmem:[%s314_s1 + $0x10] ss:$8 sps:$4 sm:$0xff]   ;;  %v230_v15 = vld [vmem:[%s314_s1 + $0x4] ss:$8 sps:$4 sm:$0xff]  }
   0x6   :  { %v232_v16 = vld [vmem:[%s314_s1] ss:$8 sps:$4 sm:$0xff]   ;;  %v173_v19 = vshrl.u32 %v172_v18, 7 }
   0x7   :  { %123 = vmatpush1.bf16.msra.mxu0 %v214_v4  ;;  %v23_v17 = vld [vmem:[%s315_s0] sm:$0xf] }
   0x8   :  { %124 = vmatprep.subr.bf16.mxu0 %v215_v5  ;;  %v174_v20 = vsub.s32 0, %v173_v19  ;;  %v170_v21 = vld [vmem:[%s316_s2] sm:$0x3]  ;;  %v178_v22 = vsub.s32 1, %v173_v19 }
   0xa   :  { %v175_v23 = vrot.slane %v170_v21, %v174_v20  ;;  %v179_v24 = vrot.slane %v170_v21, %v178_v22 }
   0xb   :  { %125 = vmatpush1.bf16.msra.mxu0 %v217_v6 }
   0xc   :  { %126 = vmatprep.subr.bf16.mxu0 %v218_v7 }
   0xf   :  { %127 = vmatpush1.bf16.msra.mxu0 %v220_v8 }
  0x10   :  { %128 = vmatprep.subr.bf16.mxu0 %v221_v9 }
  0x13   :  { %129 = vmatpush1.bf16.msra.mxu0 %v223_v10 }
  0x14   :  { %130 = vmatprep.subr.bf16.mxu0 %v224_v11 }
  0x17   :  { %131 = vmatpush1.bf16.msra.mxu0 %v226_v12 }
  0x18   :  { %132 = vmatprep.subr.bf16.mxu0 %v227_v13 }
  0x1b   :  { %133 = vmatpush1.bf16.msra.mxu0 %v229_v14 }
  0x1c   :  { %134 = vmatprep.subr.bf16.mxu0 %v230_v15 }
  0x1f   :  { %135 = vmatpush1.bf16.msra.mxu0 %v232_v16 }
  0x22   :  { %153 = vmatmul.mubr.bf16.vlgmr.msra.gmra.mxu0 %v23_v17 }
  0xe2   :  { %v154_v25 = vpop.f32.mrf.mxu0 }
  0xe3   :  { %v182_v26 = vadd.f32 %v175_v23, %v154_v25 }
  0xe4   :  { %v156_v27 = vpop.f32.mrf.mxu0 }
  0xe5   :  { %v184_v28 = vmax.f32 %v182_v26, 0.0  ;;  %v183_v29 = vadd.f32 %v179_v24, %v156_v27 }
  0xe6   :  { %v158_v30 = vpop.f32.mrf.mxu0 }
  0xe7   :  { %186 = vst [vmem:[%s317_s3] sm:$0xff] %v184_v28  ;;  %v185_v31 = vmax.f32 %v183_v29, 0.0 }
  0xe8   :  { %v159_v32 = vpop.f32.mrf.mxu0 }
  0xe9   :  { %187 = vst [vmem:[%s317_s3 + $0x8] sm:$0xff] %v185_v31 }

// kernel: _lambda_.104
= control target key start
LH: loop header
LB: loop body
LE: loop exit
PB: predicated region body
PF: predicated region fallthrough
CT: control target
= control target key end

     0   :  { %v434_v0 = vmov 0.0   ;;  %vm435_vm0 = vmmov 0   ;;  %s540_s1 = inlined_call_operand.vmem [shape: bf16[384,128], index: 1, kind: input, shape index: {}]   ;;  %s541_s0 = inlined_call_operand.vmem [shape: bf16[8,384], index: 0, kind: input, shape index: {}]   ;;  %s542_s2 = inlined_call_operand.vmem [shape: f32[1,128], index: 2, kind: input, shape index: {}]   ;;  %s543_s3 = inlined_call_operand.vmem [shape: f32[8,128], index: 3, kind: output, shape index: {}]  }
   0x1   :  { %385 = vmatprep.subr.bf16.mxu1 %v434_v0  ;;  %v407_v1 = vld [vmem:[%s540_s1 + $0x78] sm:$0xff]   ;;  %401 = vmatprep.mubr.msk.bf16.mxu1 %vm435_vm0, %v434_v0  ;;  %v410_v4 = vld [vmem:[%s540_s1 + $0x70] sm:$0xff]   ;;  %v413_v7 = vld [vmem:[%s540_s1 + $0x68] sm:$0xff]  }
   0x2   :  { %v408_v2 = vld [vmem:[%s540_s1 + $0xb8] sm:$0xff]   ;;  %354 = vmatprep.subr.bf16.mxu0 %v407_v1  ;;  %v411_v5 = vld [vmem:[%s540_s1 + $0xb0] sm:$0xff]   ;;  %v414_v8 = vld [vmem:[%s540_s1 + $0xa8] sm:$0xff]  }
   0x3   :  { %v409_v3 = vld [vmem:[%s540_s1 + $0x38] sm:$0xff]   ;;  %386 = vmatpush3.bf16.msra.mxu1 %v408_v2  ;;  %v412_v6 = vld [vmem:[%s540_s1 + $0x30] sm:$0xff]   ;;  %v415_v9 = vld [vmem:[%s540_s1 + $0x28] sm:$0xff]  }
   0x4   :  { %355 = vmatpush3.bf16.msra.mxu0 %v409_v3  ;;  %387 = vmatprep.subr.bf16.mxu1 %v434_v0  ;;  %v416_v10 = vld [vmem:[%s540_s1 + $0x60] sm:$0xff]   ;;  %v419_v13 = vld [vmem:[%s540_s1 + $0x58] sm:$0xff]   ;;  %v422_v16 = vld [vmem:[%s540_s1 + $0x50] sm:$0xff]  }
   0x5   :  { %356 = vmatprep.subr.bf16.mxu0 %v410_v4  ;;  %v417_v11 = vld [vmem:[%s540_s1 + $0xa0] sm:$0xff]   ;;  %v420_v14 = vld [vmem:[%s540_s1 + $0x98] sm:$0xff]   ;;  %v423_v17 = vld [vmem:[%s540_s1 + $0x90] sm:$0xff]  }
   0x6   :  { %v418_v12 = vld [vmem:[%s540_s1 + $0x20] sm:$0xff]   ;;  %v421_v15 = vld [vmem:[%s540_s1 + $0x18] sm:$0xff]   ;;  %v424_v18 = vld [vmem:[%s540_s1 + $0x10] sm:$0xff]  }
   0x7   :  { %388 = vmatpush3.bf16.msra.mxu1 %v411_v5  ;;  %v425_v19 = vld [vmem:[%s540_s1 + $0x48] sm:$0xff]   ;;  %v21_v22 = vld [vmem:[%s541_s0] sm:$0xff] }
   0x8   :  { %357 = vmatpush3.bf16.msra.mxu0 %v412_v6  ;;  %389 = vmatprep.subr.bf16.mxu1 %v434_v0  ;;  %v426_v20 = vld [vmem:[%s540_s1 + $0x88] sm:$0xff]   ;;  %v428_v23 = vld [vmem:[%s540_s1 + $0x40] sm:$0xff]   ;;  %v327_v24 = vcombine.high %v21_v22, %v21_v22  ;;  %v326_v28 = vcombine.low %v21_v22, %v21_v22 }
   0x9   :  { %358 = vmatprep.subr.bf16.mxu0 %v413_v7  ;;  %v427_v21 = vld [vmem:[%s540_s1 + $0x8] sm:$0xff]   ;;  %v429_v25 = vld [vmem:[%s540_s1 + $0x80] sm:$0xff]  }
   0xa   :  { %258 = vmatprep.mubr.bf16.mxu0 %v327_v24  ;;  %v430_v26 = vld [vmem:[%s540_s1] sm:$0xff]   ;;  %v433_v27 = vld [vmem:[%s541_s0 + $0x8] ss:$0 sps:$4 sm:$0xff]  }
   0xb   :  { %390 = vmatpush3.bf16.msra.mxu1 %v414_v8  ;;  %v353_v35 = vld [vmem:[%s542_s2] ss:$0 sm:$0xff] }
   0xc   :  { %359 = vmatpush3.bf16.msra.mxu0 %v415_v9  ;;  %391 = vmatprep.subr.bf16.mxu1 %v434_v0 }
   0xd   :  { %360 = vmatprep.subr.bf16.mxu0 %v416_v10 }
   0xf   :  { %392 = vmatpush3.bf16.msra.mxu1 %v417_v11 }
  0x10   :  { %361 = vmatpush3.bf16.msra.mxu0 %v418_v12  ;;  %393 = vmatprep.subr.bf16.mxu1 %v434_v0 }
  0x11   :  { %362 = vmatprep.subr.bf16.mxu0 %v419_v13 }
  0x13   :  { %394 = vmatpush3.bf16.msra.mxu1 %v420_v14 }
  0x14   :  { %363 = vmatpush3.bf16.msra.mxu0 %v421_v15  ;;  %395 = vmatprep.subr.bf16.mxu1 %v434_v0 }
  0x15   :  { %364 = vmatprep.subr.bf16.mxu0 %v422_v16 }
  0x17   :  { %396 = vmatpush3.bf16.msra.mxu1 %v423_v17 }
  0x18   :  { %365 = vmatpush3.bf16.msra.mxu0 %v424_v18  ;;  %397 = vmatprep.subr.bf16.mxu1 %v434_v0 }
  0x19   :  { %366 = vmatprep.subr.bf16.mxu0 %v425_v19 }
  0x1b   :  { %398 = vmatpush3.bf16.msra.mxu1 %v426_v20 }
  0x1c   :  { %367 = vmatpush3.bf16.msra.mxu0 %v427_v21  ;;  %399 = vmatprep.subr.bf16.mxu1 %v434_v0 }
  0x1d   :  { %368 = vmatprep.subr.bf16.mxu0 %v428_v23 }
  0x1f   :  { %400 = vmatpush3.bf16.msra.mxu1 %v429_v25 }
  0x20   :  { %369 = vmatpush3.bf16.msra.mxu0 %v430_v26 }
  0x22   :  { %402 = vmatmul.mubr.bf16.vlgmr.msra.gmra.mxu1 %v433_v27 }
  0x23   :  { %259 = vmatmul.mubr.bf16.vlgmr.msra.gmra.mxu0 %v326_v28 }
  0xe2   :  { %v300_v29 = vpop.f32.mrf.mxu1 }
  0xe3   :  { %v370_v30 = vpop.f32.mrf.mxu0 }
  0xe4   :  { %v403_v31 = vpop.f32.mrf.mxu1 }
  0xe5   :  { %v371_v32 = vpop.f32.mrf.mxu0 }
  0xe6   :  { %v372_v33 = vadd.f32 %v371_v32, %v370_v30  ;;  %v303_v34 = vpop.f32.mrf.mxu1 }
  0xe7   :  { %v373_v36 = vpop.f32.mrf.mxu0 }
  0xe8   :  { %v301_v37 = vadd.f32 %v372_v33, %v300_v29  ;;  %v404_v38 = vpop.f32.mrf.mxu1 }
  0xe9   :  { %v374_v39 = vpop.f32.mrf.mxu0 }
  0xea   :  { %v319_v40 = vadd.f32 %v353_v35, %v301_v37 }
  0xec   :  { %v320_v41 = vmax.f32 %v319_v40, 0.0 }
  0xee   :  { %321 = vst [vmem:[%s543_s3] sm:$0xff] %v320_v41 }

// kernel: _lambda_.106
= control target key start
LH: loop header
LB: loop body
LE: loop exit
PB: predicated region body
PF: predicated region fallthrough
CT: control target
= control target key end

     0   :  { %v231_v1 = vmov 0   ;;  %v172_v18 = vlaneseq  ;;  %s312_s1 = inlined_call_operand.vmem [shape: bf16[128,256], index: 1, kind: input, shape index: {}]   ;;  %s313_s0 = inlined_call_operand.vmem [shape: bf16[8,128], index: 0, kind: input, shape index: {}]   ;;  %s314_s2 = inlined_call_operand.vmem [shape: f32[1,256], index: 2, kind: input, shape index: {}]   ;;  %s315_s3 = inlined_call_operand.vmem [shape: f32[8,256], index: 3, kind: output, shape index: {}]  }
   0x1   :  { %v207_v0 = vld [vmem:[%s312_s1 + $0x74] ss:$8 sps:$4 sm:$0xff]   ;;  %152 = vmatprep.mubr.bf16.mxu0 %v231_v1  ;;  %v209_v2 = vld [vmem:[%s312_s1 + $0x70] ss:$8 sps:$4 sm:$0xff]   ;;  %v210_v3 = vld [vmem:[%s312_s1 + $0x64] ss:$8 sps:$4 sm:$0xff]  }
   0x2   :  { %120 = vmatprep.subr.bf16.mxu0 %v207_v0  ;;  %v212_v4 = vld [vmem:[%s312_s1 + $0x60] ss:$8 sps:$4 sm:$0xff]   ;;  %v213_v5 = vld [vmem:[%s312_s1 + $0x54] ss:$8 sps:$4 sm:$0xff]   ;;  %v215_v6 = vld [vmem:[%s312_s1 + $0x50] ss:$8 sps:$4 sm:$0xff]  }
   0x3   :  { %121 = vmatpush1.bf16.msra.mxu0 %v209_v2  ;;  %v216_v7 = vld [vmem:[%s312_s1 + $0x44] ss:$8 sps:$4 sm:$0xff]   ;;  %v218_v8 = vld [vmem:[%s312_s1 + $0x40] ss:$8 sps:$4 sm:$0xff]   ;;  %v219_v9 = vld [vmem:[%s312_s1 + $0x34] ss:$8 sps:$4 sm:$0xff]  }
   0x4   :  { %122 = vmatprep.subr.bf16.mxu0 %v210_v3  ;;  %v221_v10 = vld [vmem:[%s312_s1 + $0x30] ss:$8 sps:$4 sm:$0xff]   ;;  %v222_v11 = vld [vmem:[%s312_s1 + $0x24] ss:$8 sps:$4 sm:$0xff]   ;;  %v224_v12 = vld [vmem:[%s312_s1 + $0x20] ss:$8 sps:$4 sm:$0xff]  }
   0x5   :  { %v225_v13 = vld [vmem:[%s312_s1 + $0x14] ss:$8 sps:$4 sm:$0xff]   ;;  %v227_v14 = vld [vmem:[%s312_s1 + $0x10] ss:$8 sps:$4 sm:$0xff]   ;;  %v228_v15 = vld [vmem:[%s312_s1 + $0x4] ss:$8 sps:$4 sm:$0xff]  }
   0x6   :  { %v230_v16 = vld [vmem:[%s312_s1] ss:$8 sps:$4 sm:$0xff]   ;;  %v173_v19 = vshrl.u32 %v172_v18, 7 }
   0x7   :  { %123 = vmatpush1.bf16.msra.mxu0 %v212_v4  ;;  %v23_v17 = vld [vmem:[%s313_s0] sm:$0xf] }
   0x8   :  { %124 = vmatprep.subr.bf16.mxu0 %v213_v5  ;;  %v174_v20 = vsub.s32 0, %v173_v19  ;;  %v170_v21 = vld [vmem:[%s314_s2] sm:$0x3]  ;;  %v178_v22 = vsub.s32 1, %v173_v19 }
   0xa   :  { %v175_v23 = vrot.slane %v170_v21, %v174_v20  ;;  %v179_v24 = vrot.slane %v170_v21, %v178_v22 }
   0xb   :  { %125 = vmatpush1.bf16.msra.mxu0 %v215_v6 }
   0xc   :  { %126 = vmatprep.subr.bf16.mxu0 %v216_v7 }
   0xf   :  { %127 = vmatpush1.bf16.msra.mxu0 %v218_v8 }
  0x10   :  { %128 = vmatprep.subr.bf16.mxu0 %v219_v9 }
  0x13   :  { %129 = vmatpush1.bf16.msra.mxu0 %v221_v10 }
  0x14   :  { %130 = vmatprep.subr.bf16.mxu0 %v222_v11 }
  0x17   :  { %131 = vmatpush1.bf16.msra.mxu0 %v224_v12 }
  0x18   :  { %132 = vmatprep.subr.bf16.mxu0 %v225_v13 }
  0x1b   :  { %133 = vmatpush1.bf16.msra.mxu0 %v227_v14 }
  0x1c   :  { %134 = vmatprep.subr.bf16.mxu0 %v228_v15 }
  0x1f   :  { %135 = vmatpush1.bf16.msra.mxu0 %v230_v16 }
  0x22   :  { %153 = vmatmul.mubr.bf16.vlgmr.msra.gmra.mxu0 %v23_v17 }
  0xe2   :  { %v154_v25 = vpop.f32.mrf.mxu0 }
  0xe3   :  { %v182_v26 = vadd.f32 %v175_v23, %v154_v25 }
  0xe4   :  { %v156_v27 = vpop.f32.mrf.mxu0 }
  0xe5   :  { %184 = vst [vmem:[%s315_s3] sm:$0xff] %v182_v26  ;;  %v183_v28 = vadd.f32 %v179_v24, %v156_v27 }
  0xe6   :  { %v158_v29 = vpop.f32.mrf.mxu0 }
  0xe7   :  { %185 = vst [vmem:[%s315_s3 + $0x8] sm:$0xff] %v183_v28 }
  0xe8   :  { %v159_v30 = vpop.f32.mrf.mxu0 }

</bundles_post_ra>
